<compile_context>
chip_gen: v6e
topology: v6e:2x2x1
jax: 0.10.0
libtpu: 0.0.40
codegen_flags: <defaults>
</compile_context>

<pallas_src>
import functools

import numpy as np
import jax
import jax.numpy as jnp
from jax.experimental import pallas as pl
from jax.experimental.pallas import tpu as pltpu

BN_EPS = 1e-3        # ocnn pytorch/ocnn/modules.py: bn_eps = 0.001
K = 27               # 3x3x3 octree-conv neighborhood
LANE = 128           # TPU lane width; channels are padded to a multiple of this


def _round_up(x, m):
    return (x + m - 1) // m * m


# ----------------------------- Pallas kernels ------------------------------
def matmul_stats_kernel(col_ref, w_ref, y_ref, stats_ref):
    """One row tile of  y = col @ w  plus per-tile BN statistics.

    col_ref  : (TH, Kc)    bf16  gathered neighbor features (lane dim = Kc)
    w_ref    : (Kc, Cp)    bf16  conv weight (constant block -> resident)
    y_ref    : (TH, Cp)    f32   pre-BN conv output tile
    stats_ref: (1, 2, Cp)  f32   [sum(y), sum(y*y)] over this tile
    """
    y = jnp.dot(col_ref[...], w_ref[...], preferred_element_type=jnp.float32)
    y_ref[...] = y
    s = jnp.sum(y, axis=0, keepdims=True)
    ss = jnp.sum(y * y, axis=0, keepdims=True)
    stats_ref[...] = jnp.concatenate([s, ss], axis=0)[None]


def matmul_with_stats(col, w, *, th):
    hp, kc = col.shape
    cp = w.shape[1]
    nt = hp // th
    return pl.pallas_call(
        matmul_stats_kernel,
        out_shape=(jax.ShapeDtypeStruct((hp, cp), jnp.float32),
                   jax.ShapeDtypeStruct((nt, 2, cp), jnp.float32)),
        grid=(nt,),
        in_specs=[pl.BlockSpec((th, kc), lambda i: (i, 0)),
                  pl.BlockSpec((kc, cp), lambda i: (0, 0))],
        out_specs=(pl.BlockSpec((th, cp), lambda i: (i, 0)),
                   pl.BlockSpec((1, 2, cp), lambda i: (i, 0, 0))),
        compiler_params=pltpu.CompilerParams(
            dimension_semantics=("parallel",)),
    )(col, w)


def bn_apply_kernel(y_ref, stats_ref, g_ref, b_ref, *rest, h_true, mode):
    """Apply training-mode BN (global stats) + residual + ReLU on one row tile."""
    if mode == "relu":
        (o_ref,) = rest
    elif mode == "add_id":
        sc_ref, o_ref = rest
    else:  # "add_proj"
        ysc_ref, scstats_ref, scg_ref, scb_ref, o_ref = rest

    inv_n = 1.0 / float(h_true)

    def bn(y, st_ref, g, b):
        mean = st_ref[0:1, :] * inv_n
        var = st_ref[1:2, :] * inv_n - mean * mean          # biased variance
        scale = g * jax.lax.rsqrt(var + BN_EPS)
        return (y - mean) * scale + b

    out = bn(y_ref[...], stats_ref, g_ref[...], b_ref[...])
    if mode == "add_id":
        out = out + sc_ref[...]
    elif mode == "add_proj":
        out = out + bn(ysc_ref[...], scstats_ref, scg_ref[...], scb_ref[...])
    o_ref[...] = jnp.maximum(out, 0.0)


def bn_apply(y, stats, gamma, beta, *, h_true, th, mode,
             shortcut=None, sc_stats=None, sc_gamma=None, sc_beta=None):
    hp, cp = y.shape
    nt = hp // th
    row = pl.BlockSpec((th, cp), lambda i: (i, 0))
    st = pl.BlockSpec((2, cp), lambda i: (0, 0))
    vec = pl.BlockSpec((1, cp), lambda i: (0, 0))

    inputs, specs = [y, stats, gamma, beta], [row, st, vec, vec]
    if mode == "add_id":
        inputs += [shortcut]
        specs += [row]
    elif mode == "add_proj":
        inputs += [shortcut, sc_stats, sc_gamma, sc_beta]
        specs += [row, st, vec, vec]

    return pl.pallas_call(
        functools.partial(bn_apply_kernel, h_true=h_true, mode=mode),
        out_shape=jax.ShapeDtypeStruct((hp, cp), jnp.float32),
        grid=(nt,),
        in_specs=specs,
        out_specs=row,
        compiler_params=pltpu.CompilerParams(
            dimension_semantics=("parallel",)),
    )(*inputs)


# ------------------------------- wrappers -----------------------------------
def gather_col(feat, neigh):
    """ocnn octree2col for kernel_size=[3], stride=1: (H, C) -> (H, 27*C).
    Missing neighbors (-1) read an explicit zero row (never alias node 0)."""
    h, c = feat.shape
    feat_pad = jnp.concatenate([feat, jnp.zeros((1, c), feat.dtype)], axis=0)
    idx = jnp.where(neigh < 0, h, neigh)
    col = jnp.take(feat_pad, idx.reshape(-1), axis=0)
    return col.reshape(h, K * c)
    # TODO(synk): for octrees whose features do not fit VMEM, replace this XLA
    # gather with an in-kernel double-buffered DMA gather (pl.ANY +
    # pltpu.make_async_copy) driven by the neighbor table.


def _pad_rows(a, hp):
    return jnp.pad(a, ((0, hp - a.shape[0]), (0, 0)))


def octree_resblock2(x, neigh, p, *, h_pad, th):
    """x: (H_true, C_pad) f32 (zero-padded channels) -> (H_true, Cout_pad)."""
    h_true = x.shape[0]

    # conv3x3a -> BN -> ReLU
    col1 = _pad_rows(gather_col(x, neigh), h_pad).astype(jnp.bfloat16)
    y1, st1 = matmul_with_stats(col1, p["wa"], th=th)
    st1 = jnp.sum(st1, axis=0)                          # (2, Cp) global stats
    c1 = bn_apply(y1, st1, p["ga"], p["ba"], h_true=h_true, th=th,
                  mode="relu")[:h_true]

    # conv3x3b -> BN, fused with shortcut + add + ReLU
    col2 = _pad_rows(gather_col(c1, neigh), h_pad).astype(jnp.bfloat16)
    y2, st2 = matmul_with_stats(col2, p["wb"], th=th)
    st2 = jnp.sum(st2, axis=0)

    if p["project"]:                                    # 1x1 conv + BN shortcut
        xb = _pad_rows(x, h_pad).astype(jnp.bfloat16)
        ysc, stsc = matmul_with_stats(xb, p["w1"], th=th)
        stsc = jnp.sum(stsc, axis=0)
        out = bn_apply(y2, st2, p["gb"], p["bb"], h_true=h_true, th=th,
                       mode="add_proj", shortcut=ysc, sc_stats=stsc,
                       sc_gamma=p["g1"], sc_beta=p["b1"])
    else:                                               # identity shortcut
        out = bn_apply(y2, st2, p["gb"], p["bb"], h_true=h_true, th=th,
                       mode="add_id", shortcut=_pad_rows(x, h_pad))
    return out[:h_true]


def octree_resblocks2(data_nchw, neigh, blocks, *, th=128):
    """data_nchw: (1, C_in, H, 1) -> (1, C_out, H, 1), matching the ocnn module."""
    _, c_in, h, _ = data_nchw.shape
    c_out = blocks[-1]["cout"]
    cp_in = blocks[0]["cin_pad"]
    th = min(th, _round_up(h, 8))
    h_pad = _round_up(h, th)

    x = jnp.transpose(data_nchw[0, :, :, 0], (1, 0))            # (H, C_in)
    x = jnp.pad(x, ((0, 0), (0, cp_in - c_in)))                 # lane padding
    for p in blocks:
        x = octree_resblock2(x, neigh, p, h_pad=h_pad, th=th)
    return jnp.transpose(x[:, :c_out], (1, 0))[None, :, :, None]


# ------------------------- deterministic parameters -------------------------
def init_params(key, channel_in, channel_out, resblk_num):
    channels = [channel_in] + [channel_out] * resblk_num
    blocks = []
    for i in range(resblk_num):
        cin, cout = channels[i], channels[i + 1]
        key, k1, k2, k3 = jax.random.split(key, 4)
        p = {"cin": cin, "cout": cout,
             # ocnn OctreeConv weight as (K*Cin, Cout), no bias
             "wa": jax.random.normal(k1, (K * cin, cout), jnp.float32) / np.sqrt(K * cin),
             "ga": jnp.ones((1, cout), jnp.float32),
             "ba": jnp.zeros((1, cout), jnp.float32),
             "wb": jax.random.normal(k2, (K * cout, cout), jnp.float32) / np.sqrt(K * cout),
             "gb": jnp.ones((1, cout), jnp.float32),
             "bb": jnp.zeros((1, cout), jnp.float32)}
        if cin != cout:
            # OctreeConv1x1Bn: Conv1d(kernel_size=1, bias=False) + BN
            p["w1"] = jax.random.normal(k3, (cin, cout), jnp.float32) / np.sqrt(cin)
            p["g1"] = jnp.ones((1, cout), jnp.float32)
            p["b1"] = jnp.zeros((1, cout), jnp.float32)
        blocks.append(p)
    return blocks


def _pad_tap_weight(w, cin, cout, ci_p, co_p):
    # Pad per 3x3x3 tap so rows line up with the (H, K*Cin_pad) col matrix.
    w = w.reshape(K, cin, cout)
    w = jnp.pad(w, ((0, 0), (0, ci_p - cin), (0, co_p - cout)))
    return w.reshape(K * ci_p, co_p).astype(jnp.bfloat16)


def _pad_chan_vec(v, co_p):
    # Padded gamma entries are zero, so padded channels stay exactly zero.
    return jnp.pad(v, ((0, 0), (0, co_p - v.shape[1])))


def prepare_params(blocks_raw):
    """Pad channels to lane (128) multiples and cast conv weights to bf16."""
    prepped = []
    for p in blocks_raw:
        cin, cout = p["cin"], p["cout"]
        ci_p, co_p = _round_up(cin, LANE), _round_up(cout, LANE)
        q = {"cin": cin, "cout": cout, "cin_pad": ci_p, "cout_pad": co_p,
             "project": cin != cout,
             "wa": _pad_tap_weight(p["wa"], cin, cout, ci_p, co_p),
             "ga": _pad_chan_vec(p["ga"], co_p), "ba": _pad_chan_vec(p["ba"], co_p),
             "wb": _pad_tap_weight(p["wb"], cout, cout, co_p, co_p),
             "gb": _pad_chan_vec(p["gb"], co_p), "bb": _pad_chan_vec(p["bb"], co_p)}
        if q["project"]:
            q["w1"] = jnp.pad(p["w1"],
                              ((0, ci_p - cin), (0, co_p - cout))).astype(jnp.bfloat16)
            q["g1"] = _pad_chan_vec(p["g1"], co_p)
            q["b1"] = _pad_chan_vec(p["b1"], co_p)
        prepped.append(q)
    return prepped


# --------------------------- pure-JAX reference ------------------------------
def reference_forward(data_nchw, neigh, blocks_raw):
    x = jnp.transpose(data_nchw[0, :, :, 0], (1, 0))
    h = x.shape[0]

    def gather(feat):
        fp = jnp.concatenate([feat, jnp.zeros((1, feat.shape[1]), feat.dtype)], 0)
        idx = jnp.where(neigh < 0, h, neigh)
        return jnp.take(fp, idx.reshape(-1), axis=0).reshape(h, -1)

    def bn(y, g, b):
        mu = jnp.mean(y, axis=0, keepdims=True)
        var = jnp.mean(jnp.square(y - mu), axis=0, keepdims=True)
        return (y - mu) * jax.lax.rsqrt(var + BN_EPS) * g + b

    for p in blocks_raw:
        c1 = jnp.maximum(bn(gather(x) @ p["wa"], p["ga"], p["ba"]), 0.0)
        c2 = bn(gather(c1) @ p["wb"], p["gb"], p["bb"])
        sc = bn(x @ p["w1"], p["g1"], p["b1"]) if "w1" in p else x
        x = jnp.maximum(c2 + sc, 0.0)
    return jnp.transpose(x, (1, 0))[None, :, :, None]


def build_neighbor_table(grid=6):
    # Synthetic full octree at this depth: nodes on a grid^3 lattice,
    # 27-neighborhood with -1 for out-of-bounds neighbors.
    h = grid ** 3
    coords = np.stack(np.meshgrid(np.arange(grid), np.arange(grid), np.arange(grid),
                                  indexing="ij"), -1).reshape(-1, 3)
    offsets = [(dx, dy, dz) for dx in (-1, 0, 1) for dy in (-1, 0, 1) for dz in (-1, 0, 1)]
    neigh = np.full((h, K), -1, np.int32)
    for n in range(h):
        for k, off in enumerate(offsets):
            c = coords[n] + np.asarray(off)
            if np.all((c >= 0) & (c < grid)):
                neigh[n, k] = c[0] * grid * grid + c[1] * grid + c[2]
    return neigh


if __name__ == "__main__":
    grid = 6
    H = grid ** 3                           # 216 octree nodes at depth d
    channel_in, channel_out, resblk_num = 8, 16, 2

    neigh = jnp.asarray(build_neighbor_table(grid), jnp.int32)   # (H, 27)

    key = jax.random.PRNGKey(0)
    key, kd = jax.random.split(key)
    data = jax.random.normal(kd, (1, channel_in, H, 1), jnp.float32)  # ocnn NCHW
    blocks_raw = init_params(key, channel_in, channel_out, resblk_num)
    blocks = prepare_params(blocks_raw)

    out = jax.block_until_ready(octree_resblocks2(data, neigh, blocks))
    assert out.shape == (1, channel_out, H, 1)
    assert bool(jnp.all(jnp.isfinite(out))) and bool(jnp.all(out >= 0.0))

    ref = jax.block_until_ready(reference_forward(data, neigh, blocks_raw))
    err = float(jnp.max(jnp.abs(out - ref)))
    assert err < 0.35, f"mismatch vs f32 reference: max abs err = {err}"
    print("KERNEL_OK")
</pallas_src>

<mosaic_0001>
module attributes {stable_mosaic.version = 11 : i64} {
  func.func @matmul_stats_kernel(%arg0: i32, %arg1: memref<128x3456xbf16, #tpu.memory_space<vmem>>, %arg2: memref<3456x128xbf16, #tpu.memory_space<vmem>>, %arg3: memref<128x128xf32, #tpu.memory_space<vmem>>, %arg4: memref<1x2x128xf32, #tpu.memory_space<vmem>>) attributes {dimension_semantics = [#tpu.dimension_semantics<parallel>], iteration_bounds = array<i64: 2>, scalar_prefetch = 0 : i64, scratch_operands = 0 : i64, tpu.core_type = #tpu.core_type<tc>, window_params = [{transform_indices = @transform_0, window_bounds = array<i64: 128, 3456>}, {pipeline_mode = #tpu.pipeline_mode<synchronous>, transform_indices = @transform_1, window_bounds = array<i64: 3456, 128>}, {transform_indices = @transform_2, window_bounds = array<i64: 128, 128>}, {transform_indices = @transform_3, window_bounds = array<i64: 1, 2, 128>}]} {
    %c0 = arith.constant 0 : index
    %c0_0 = arith.constant 0 : index
    %0 = vector.load %arg1[%c0, %c0_0] : memref<128x3456xbf16, #tpu.memory_space<vmem>>, vector<128x3456xbf16>
    %c0_1 = arith.constant 0 : index
    %c0_2 = arith.constant 0 : index
    %1 = vector.load %arg2[%c0_1, %c0_2] : memref<3456x128xbf16, #tpu.memory_space<vmem>>, vector<3456x128xbf16>
    %cst = arith.constant dense<0.000000e+00> : vector<128x128xf32>
    %2 = tpu.matmul %0, %1, %cst {dimension_numbers = #tpu.dot_dimension_numbers<[1], [0], [0], [1], [0, 0, 1, 1], [], []>} : vector<128x3456xbf16>, vector<3456x128xbf16>, vector<128x128xf32> -> vector<128x128xf32>
    %c0_3 = arith.constant 0 : index
    %c0_4 = arith.constant 0 : index
    %3 = vector.load %arg3[%c0_3, %c0_4] : memref<128x128xf32, #tpu.memory_space<vmem>>, vector<128x128xf32>
    tpu.vector_store %arg3[%c0_3, %c0_4], %2 {strides = array<i32>} : memref<128x128xf32, #tpu.memory_space<vmem>>, vector<128x128xf32>,
    %cst_5 = arith.constant dense<0.000000e+00> : vector<128xf32>
    %4 = vector.multi_reduction <add>, %2, %cst_5 [0] : vector<128x128xf32> to vector<128xf32>
    %5 = vector.shape_cast %4 : vector<128xf32> to vector<1x128xf32>
    %6 = arith.mulf %2, %2 : vector<128x128xf32>
    %cst_6 = arith.constant dense<0.000000e+00> : vector<128xf32>
    %7 = vector.multi_reduction <add>, %6, %cst_6 [0] : vector<128x128xf32> to vector<128xf32>
    %8 = vector.shape_cast %7 : vector<128xf32> to vector<1x128xf32>
    %9 = tpu.concatenate %5, %8 in 0 : vector<1x128xf32>, vector<1x128xf32> -> vector<2x128xf32>
    %10 = vector.shape_cast %9 : vector<2x128xf32> to vector<1x2x128xf32>
    %c0_7 = arith.constant 0 : index
    %c0_8 = arith.constant 0 : index
    %c0_9 = arith.constant 0 : index
    %11 = vector.load %arg4[%c0_7, %c0_8, %c0_9] : memref<1x2x128xf32, #tpu.memory_space<vmem>>, vector<1x2x128xf32>
    tpu.vector_store %arg4[%c0_7, %c0_8, %c0_9], %10 {strides = array<i32>} : memref<1x2x128xf32, #tpu.memory_space<vmem>>, vector<1x2x128xf32>,
    return
  }
  func.func @transform_0(%arg0: i32) -> (i32, i32) {
    %c0_i32 = arith.constant 0 : i32
    %c0_i32_0 = arith.constant 0 : i32
    return %arg0, %c0_i32 : i32, i32
  }
  func.func @transform_1(%arg0: i32) -> (i32, i32) {
    %c0_i32 = arith.constant 0 : i32
    %c0_i32_0 = arith.constant 0 : i32
    %c0_i32_1 = arith.constant 0 : i32
    return %c0_i32, %c0_i32_0 : i32, i32
  }
  func.func @transform_2(%arg0: i32) -> (i32, i32) {
    %c0_i32 = arith.constant 0 : i32
    %c0_i32_0 = arith.constant 0 : i32
    return %arg0, %c0_i32 : i32, i32
  }
  func.func @transform_3(%arg0: i32) -> (i32, i32, i32) {
    %c0_i32 = arith.constant 0 : i32
    %c0_i32_0 = arith.constant 0 : i32
    %c0_i32_1 = arith.constant 0 : i32
    return %arg0, %c0_i32, %c0_i32_0 : i32, i32, i32
  }
}

</mosaic_0001>

<bundles_post_ra>
// kernel: tpu_custom_call.1
= control target key start
LH: loop header
LB: loop body
LE: loop exit
PB: predicated region body
PF: predicated region fallthrough
CT: control target
= control target key end

     0   :  { %9 = vsyncpa [#allocation3], 0  ;;  %s7823_s0 = inlined_call_operand.hbm [shape: bf16[256,3456], index: 0, kind: input, shape index: {}]   ;;  %s7824_s1 = inlined_call_operand.hbm [shape: bf16[3456,128], index: 1, kind: input, shape index: {}]   ;;  %s7825_s2 = inlined_call_operand.hbm [shape: f32[256,128], index: 2, kind: output, shape index: {0}]   ;;  %s7826_s3 = inlined_call_operand.hbm [shape: f32[2,2,128], index: 3, kind: output, shape index: {1}]  }
   0x1   :  { %11 = vsyncpa [#allocation3 + $0x1], 0 }
   0x2   :  { %12 = vsyncpa [#allocation6], 0 }
   0x3   :  { %13 = vsyncpa [#allocation4], 0 }
   0x4   :  { %15 = vsyncpa [#allocation4 + $0x1], 0 }
   0x5   :  { %16 = vsyncpa [#allocation9], 0 }
   0x6   :  { %18 = vsyncpa [#allocation9 + $0x1], 0  ;;  %s6963_s12 = smov 0   ;;  %s6965_s13 = smov 0  }
   0x7   :  { %s6967_s14 = smov 0   ;;  %s6969_s15 = smov 0  }
   0x8 LB: > { %s6984_s16 = sadd.s32 4294967295, %s6931_s15   ;;  %s4841_s17 = sadd.s32 4294967294, %s6931_s15   ;;  %s6931_s15 = sphi %s6969_s15, %s7904_s15   ;;  %s6927_s14 = sphi %s6967_s14, %s7903_s14   ;;  %s6923_s13 = sphi %s6965_s13, %s7902_s13   ;;  %s6919_s12 = sphi %s6963_s12, %s7901_s12  }
   0x9   : > { %p44_p0 = scmp.ne.s32.totalorder %s6923_s13, %s6919_s12  ;;  %p7827_p1 = scmp.eq.s32.totalorder %s6984_s16, 0 }
   0xa   : > { %p95_p3 = scmp.eq.s32.totalorder %s4841_s17, 1  ;;  %p4842_p5 = scmp.ge.s32.totalorder %s6931_s15, 1 }
   0xb   : > { %p6993_p4 = por %p7827_p1, %p44_p0  ;;  %p128_p7 = scmp.lt.s32.totalorder %s6931_s15, 3 }
   0xc   : > { %p6998_p6 = por %p95_p3, %p44_p0  ;;  %s6933_s21 = smov [#allocation5]  }
   0xd   : > { %s7831_s18 = scalar_select %p6993_p4, 1, 0 }
   0xe   : > { %s7832_s19 = scalar_select %p6998_p6, 1, 0 }
   0xf   : > { %p7003_p8 = pnand %p4842_p5, %p128_p7  ;;  %s140_s22 = sshll.u32 %s6933_s21, 4  ;;  %s141_s22 = int_to_ptr.vmem [resolvable:$true] %s140_s22 }
  0x10   : > { %s7017_s24 = sadd.s32 1, %s6931_s15   ;;  %s31_s25 = sadd.s32 1, %s6927_s14 }
  0x11   : > { %s7833_s20 = scalar_select %p7003_p8, 1, 0 }
  0x12   : > { %p6185_p9 = pneg %p7003_p8  ;;  %s28_s26 = ssub.s32 %s6931_s15, %s7017_s24 }
  0x13   : > { %s6790_s27 = scalar_lea.vmem %s141_s22, 27648  ;;  %p6798_p5 = scmp.lt.s32.totalorder %s141_s22, %s141_s22 }
  0x14   : > { %p7012_p11 = pnand %p6185_p9, %p7827_p1  ;;  %p6791_p13 = scmp.ne.s32.totalorder %s141_s22, %s6790_s27 }
  0x15   : > { %p6799_p7 = scmp.lt.s32.totalorder %s6790_s27, %s6790_s27 }
  0x16   : > { %p6781_p12 = pneg %p7012_p11 }
  0x17   : > { %p6800_p10 = por %p6799_p7, %p6798_p5 }
  0x18   : > { %p6793_p0 = pnand %p6791_p13, %p6781_p12 }
  0x1a   : > { %p6794_p3 = pneg %p6793_p0 }
  0x1c   : > { %p6801_p2 = pnand %p6800_p10, %p6794_p3 }
  0x1e   : > { %6804 = shalt.err (!%p6801_p2)
}
  0x1f   : > { %s6934_s28 = smov 64   ;;  %s6935_s29 = smov 4  }
  0x20   : > { %6188 = dma.hbm_to_vmem [thread:$0]  (!%p7012_p11), %s7824_s1, 27648, %s141_s22, [#allocation6], %s6934_s28, %s6934_s28, %s6935_s29  }
  0x21   : > { %p29_p9 = scmp.eq.s32.totalorder %s28_s26, 0  ;;  %p38_p12 = scmp.ne.s32.totalorder %s6927_s14, %s6923_s13 }
  0x22   : > { %p39_p10 = scmp.eq.s32.totalorder %s6931_s15, 0  ;;  %p6201_p2 = scmp.lt.s32.totalorder %s6931_s15, 2 }
  0x23   : > { %s7034_s5 = scalar_select %p29_p9, %s6927_s14, %s31_s25  }
  0x24   : > { %p40_p13 = por %p39_p10, %p38_p12  ;;  %p7835_p0 = scmp.eq.s32.totalorder %s6984_s16, 1 }
  0x25   : > { %s154_s7 = sand.u32 1, %s6927_s14   ;;  %s6173_s8 = smul.u32 27648, %s6931_s15 }
  0x26   : > { %p7038_p3 = por %p7835_p0, %p38_p12  ;;  %s6172_s9 = smul.u32 1728, %s154_s7 }
  0x27   : > { %s7047_s17 = scalar_lea.hbm %s7823_s0, %s6173_s8  ;;  %p7049_p11 = pnand %p6201_p2, %p40_p13 }
  0x28   : > { %s7836_s6 = scalar_select %p7038_p3, 1, 0 }
  0x29   : > { %s158_s22 = scalar_lea.vmem [#allocation2], %s6172_s9  ;;  %s7055_s25 = scalar_lea.sflag [#allocation3], %s154_s7 }
  0x2a   : > { %s166_s23 = sshll.u32 %s158_s22, 4  ;;  %s6805_s26 = scalar_lea.hbm %s7047_s17, 27648  ;;  %s7053_s23 = int_to_ptr.vmem [resolvable:$true] %s166_s23 }
  0x2b   : > { %p6806_p5 = scmp.ne.s32.totalorder %s7047_s17, %s6805_s26  ;;  %p6807_p7 = pneg %p7049_p11 }
  0x2c   : > { %s6810_s29 = scalar_lea.hbm %s7823_s0, 55296  ;;  %p6811_p10 = scmp.lt.s32.totalorder %s7047_s17, %s7823_s0 }
  0x2d   : > { %p6808_p9 = pnand %p6807_p7, %p6806_p5  ;;  %p6812_p2 = scmp.lt.s32.totalorder %s6810_s29, %s6805_s26 }
  0x2f   : > { %p6809_p12 = pneg %p6808_p9  ;;  %p6813_p13 = por %p6812_p2, %p6811_p10 }
  0x31   : > { %p6814_p0 = pnand %p6813_p13, %p6809_p12 }
  0x33   : > { %6817 = shalt.err (!%p6814_p0)
}
  0x34   : > { %s6818_s7 = scalar_lea.vmem %s7053_s23, 27648  ;;  %s6936_s8 = smov [#allocation2]  }
  0x35   : > { %p6819_p1 = scmp.ne.s32.totalorder %s7053_s23, %s6818_s7  ;;  %s6823_s9 = sshll.u32 %s6936_s8, 4  ;;  %s6824_s9 = int_to_ptr.vmem [resolvable:$false] %s6823_s9 }
  0x36   : > { %s6825_s10 = scalar_lea.vmem %s6824_s9, 55296  ;;  %p6826_p9 = scmp.lt.s32.totalorder %s7053_s23, %s6824_s9 }
  0x37   : > { %p6821_p6 = pnand %p6819_p1, %p6807_p7  ;;  %p6827_p3 = scmp.lt.s32.totalorder %s6825_s10, %s6818_s7 }
  0x39   : > { %p6822_p5 = pneg %p6821_p6  ;;  %p6828_p4 = por %p6827_p3, %p6826_p9 }
  0x3b   : > { %p6829_p8 = pnand %p6828_p4, %p6822_p5 }
  0x3d   : > { %6832 = shalt.err (!%p6829_p8)
}
  0x3e   : > { %s6937_s11 = smov 1728   ;;  %s6938_s22 = smov 108  }
  0x3f   : > { %6192 = dma.hbm_to_vmem [thread:$0]  (!%p7049_p11), %s7047_s17, 27648, %s7053_s23, %s7055_s25, %s6937_s11, %s6937_s11, %s6938_s22  }
  0x40   : > { %p7838_p1 = scmp.ne.s32.totalorder %s7833_s20, 0 }
  0x42   : > { %178 = sbr.rel (%p7838_p1) target bundleno = 798 (0x31e), region = 28 }
  0x47   : > { %s7079_s26 = sand.u32 1, %s6923_s13   ;;  %p7839_p4 = scmp.ne.s32.totalorder %s7831_s18, 0 }
  0x48   : > { %s6174_s27 = smul.u32 1728, %s7079_s26  ;;  %s181_s28 = scalar_lea.sflag [#allocation3], %s7079_s26 }
  0x4a   : > { %s7083_s29 = scalar_lea.vmem [#allocation2], %s6174_s27 }
  0x4b   : > { %6902 = dma.done.wait (%p7839_p4), %s181_s28, 27648  }
  0x4c   : > { %6904 = vsyncadd (%p7839_p4), %s181_s28, 4294939648  ;;  %p7840_p6 = scmp.eq.s32.totalorder %s6984_s16, 0 }
  0x4e   : > { %6906 = dma.done.wait (%p7840_p6), [#allocation6], 27648   ;;  %p7841_p8 = pmov %p7840_p6 }
  0x4f   : > { %v6243_v0 = vld [vmem:[#allocation5 + $0x78] sm:$0xff]   ;;  %v6247_v4 = vld [vmem:[#allocation5 + $0x70] sm:$0xff]   ;;  %v6251_v8 = vld [vmem:[#allocation5 + $0x68] sm:$0xff]   ;;  %s4850_s18 = sshll.u32 %s7079_s26, 7  ;;  %s5291_s17 = sshll.u32 %s6984_s16, 11 }
  0x50   : > { %6908 = vsyncadd (%p7841_p8), [#allocation6], 4294939648  ;;  %v6244_v1 = vld [vmem:[#allocation5 + $0xf8] sm:$0xff]   ;;  %5292 = vmatprep.subr.bf16.mxu0 %v6243_v0  ;;  %v6248_v5 = vld [vmem:[#allocation5 + $0xf0] sm:$0xff]   ;;  %s7662_s20 = scalar_lea.vmem [#allocation7], %s4850_s18  ;;  %s7753_s30 = scalar_lea.hbm %s7825_s2, %s5291_s17 }
  0x51   : > { %v6245_v2 = vld [vmem:[#allocation5 + $0x38] sm:$0xff]   ;;  %5356 = vmatprep.subr.bf16.mxu1 %v6244_v1  ;;  %v6249_v6 = vld [vmem:[#allocation5 + $0x30] sm:$0xff]   ;;  %v6252_v9 = vld [vmem:[#allocation5 + $0xe8] sm:$0xff]   ;;  %s4713_s21 = sshll.u32 %s7662_s20, 4  ;;  %s4695_s4 = scalar_lea.sflag [#allocation4], %s7079_s26  ;;  %s7755_s21 = int_to_ptr.vmem [resolvable:$true] %s4713_s21 }
  0x52   : > { %v6246_v3 = vld [vmem:[#allocation5 + $0xb8] sm:$0xff]   ;;  %5293 = vmatpush3.bf16.msra.mxu0 %v6245_v2  ;;  %v6250_v7 = vld [vmem:[#allocation5 + $0xb0] sm:$0xff]   ;;  %v6253_v10 = vld [vmem:[#allocation5 + $0x28] sm:$0xff]   ;;  %s6833_s7 = scalar_lea.vmem %s7755_s21, 2048  ;;  %p7898_p11 = scmp.ne.s32.totalorder %s7836_s6, 0 }
  0x53   : > { %5357 = vmatpush3.bf16.msra.mxu1 %v6246_v3  ;;  %5294 = vmatprep.subr.bf16.mxu0 %v6247_v4  ;;  %v6254_v11 = vld [vmem:[#allocation5 + $0xa8] sm:$0xff]   ;;  %v6255_v12 = vld [vmem:[#allocation5 + $0x60] sm:$0xff]   ;;  %v6259_v16 = vld [vmem:[#allocation5 + $0x58] sm:$0xff]   ;;  %p6834_p3 = scmp.ne.s32.totalorder %s7755_s21, %s6833_s7  ;;  %s6939_s8 = smov [#allocation7]  }
  0x54   : > { %5358 = vmatprep.subr.bf16.mxu1 %v6248_v5  ;;  %v6256_v13 = vld [vmem:[#allocation5 + $0xe0] sm:$0xff]   ;;  %v6260_v17 = vld [vmem:[#allocation5 + $0xd8] sm:$0xff]   ;;  %v6263_v20 = vld [vmem:[#allocation5 + $0x50] sm:$0xff]   ;;  %s6837_s9 = sshll.u32 %s6939_s8, 4  ;;  %s6838_s9 = int_to_ptr.vmem [resolvable:$false] %s6837_s9 }
  0x55   : > { %v6257_v14 = vld [vmem:[#allocation5 + $0x20] sm:$0xff]   ;;  %v6261_v18 = vld [vmem:[#allocation5 + $0x18] sm:$0xff]   ;;  %v6264_v21 = vld [vmem:[#allocation5 + $0xd0] sm:$0xff]   ;;  %p6835_p7 = pnand %p6834_p3, %p7898_p11  ;;  %s6839_s10 = scalar_lea.vmem %s6838_s9, 4096 }
  0x56   : > { %5295 = vmatpush3.bf16.msra.mxu0 %v6249_v6  ;;  %v6258_v15 = vld [vmem:[#allocation5 + $0xa0] sm:$0xff]   ;;  %v6262_v19 = vld [vmem:[#allocation5 + $0x98] sm:$0xff]   ;;  %v6265_v22 = vld [vmem:[#allocation5 + $0x10] sm:$0xff]   ;;  %p6840_p10 = scmp.lt.s32.totalorder %s7755_s21, %s6838_s9  ;;  %p6841_p2 = scmp.lt.s32.totalorder %s6839_s10, %s6833_s7 }
  0x57   : > { %5359 = vmatpush3.bf16.msra.mxu1 %v6250_v7  ;;  %5296 = vmatprep.subr.bf16.mxu0 %v6251_v8  ;;  %v6266_v23 = vld [vmem:[#allocation5 + $0x90] sm:$0xff]   ;;  %v6267_v24 = vld [vmem:[#allocation5 + $0x48] sm:$0xff]   ;;  %v6271_v28 = vld [vmem:[#allocation5 + $0x40] sm:$0xff]   ;;  %p6836_p12 = pneg %p6835_p7 }
  0x58   : > { %5360 = vmatprep.subr.bf16.mxu1 %v6252_v9  ;;  %v6268_v25 = vld [vmem:[#allocation5 + $0xc8] sm:$0xff]   ;;  %v6272_v29 = vld [vmem:[#allocation5 + $0xc0] sm:$0xff]   ;;  %v6281_v36 = vld [vmem:[#allocation5 + $0x178] sm:$0xff]   ;;  %p6842_p13 = por %p6841_p2, %p6840_p10 }
  0x59   : > { %v6269_v26 = vld [vmem:[#allocation5 + $0x8] sm:$0xff]   ;;  %v6273_v30 = vld [vmem:[#allocation5] sm:$0xff]   ;;  %v6282_v37 = vld [vmem:[#allocation5 + $0x138] sm:$0xff]  }
  0x5a   : > { %5297 = vmatpush3.bf16.msra.mxu0 %v6253_v10  ;;  %v6270_v27 = vld [vmem:[#allocation5 + $0x88] sm:$0xff]   ;;  %v6274_v31 = vld [vmem:[#allocation5 + $0x80] sm:$0xff]   ;;  %v6289_v42 = vld [vmem:[#allocation5 + $0x170] sm:$0xff]   ;;  %p6843_p0 = pnand %p6842_p13, %p6836_p12 }
  0x5b   : > { %5361 = vmatpush3.bf16.msra.mxu1 %v6254_v11  ;;  %5298 = vmatprep.subr.bf16.mxu0 %v6255_v12  ;;  %v6275_v32 = vld [vmem:[%s7083_s29] ss:$108 sps:$4 sm:$0xff]   ;;  %v6277_v33 = vld [vmem:[%s7083_s29 + $0x4] ss:$108 sps:$4 sm:$0xff]   ;;  %v6278_v34 = vld [vmem:[%s7083_s29 + $0x8] ss:$108 sps:$4 sm:$0xff]  }
  0x5c   : > { %5362 = vmatprep.subr.bf16.mxu1 %v6256_v13  ;;  %v6280_v35 = vld [vmem:[%s7083_s29 + $0xc] ss:$108 sps:$4 sm:$0xff]   ;;  %3291 = vmatprep.mubr.bf16.mxu0 %v6277_v33  ;;  %v6283_v38 = vld [vmem:[%s7083_s29 + $0xdc] ss:$108 sps:$4 sm:$0xff]   ;;  %v6285_v39 = vld [vmem:[%s7083_s29 + $0xe4] ss:$108 sps:$4 sm:$0xff]  }
  0x5d   : > { %3388 = vmatprep.mubr.bf16.mxu1 %v6280_v35  ;;  %v6287_v40 = vld [vmem:[%s7083_s29 + $0xd8] ss:$108 sps:$4 sm:$0xff]   ;;  %v6288_v41 = vld [vmem:[%s7083_s29 + $0xe0] ss:$108 sps:$4 sm:$0xff]   ;;  %v6290_v43 = vld [vmem:[#allocation5 + $0x130] sm:$0xff]  }
  0x5e   : > { %5299 = vmatpush3.bf16.msra.mxu0 %v6257_v14  ;;  %v6291_v44 = vld [vmem:[%s7083_s29 + $0x1b4] ss:$108 sps:$4 sm:$0xff]   ;;  %v6293_v45 = vld [vmem:[%s7083_s29 + $0x1bc] ss:$108 sps:$4 sm:$0xff]   ;;  %v6296_v49 = vld [vmem:[%s7083_s29 + $0x1b8] ss:$108 sps:$4 sm:$0xff]  }
  0x5f   : > { %5363 = vmatpush3.bf16.msra.mxu1 %v6258_v15  ;;  %5300 = vmatprep.subr.bf16.mxu0 %v6259_v16  ;;  %v6297_v46 = vld [vmem:[#allocation5 + $0x168] sm:$0xff]   ;;  %v6295_v48 = vld [vmem:[%s7083_s29 + $0x1b0] ss:$108 sps:$4 sm:$0xff]   ;;  %v6301_v51 = vld [vmem:[%s7083_s29 + $0x294] ss:$108 sps:$4 sm:$0xff]  }
  0x60   : > { %5364 = vmatprep.subr.bf16.mxu1 %v6260_v17  ;;  %v6298_v47 = vld [vmem:[#allocation5 + $0x128] sm:$0xff]   ;;  %v6305_v52 = vld [vmem:[#allocation5 + $0x160] sm:$0xff]   ;;  %v6313_v55 = vld [vmem:[#allocation5 + $0x158] sm:$0xff]  }
  0x61   : > { %v6299_v50 = vld [vmem:[%s7083_s29 + $0x28c] ss:$108 sps:$4 sm:$0xff]   ;;  %v6306_v53 = vld [vmem:[#allocation5 + $0x120] sm:$0xff]   ;;  %v6303_v54 = vld [vmem:[%s7083_s29 + $0x288] ss:$108 sps:$4 sm:$0xff]  }
  0x62   : > { %5301 = vmatpush3.bf16.msra.mxu0 %v6261_v18  ;;  %v6304_v56 = vld [vmem:[%s7083_s29 + $0x290] ss:$108 sps:$4 sm:$0xff]   ;;  %v6309_v59 = vld [vmem:[%s7083_s29 + $0x36c] ss:$108 sps:$4 sm:$0xff]   ;;  %v6312_v2 = vld [vmem:[%s7083_s29 + $0x368] ss:$108 sps:$4 sm:$0xff]  }
  0x63   : > { %5365 = vmatpush3.bf16.msra.mxu1 %v6262_v19  ;;  %5302 = vmatprep.subr.bf16.mxu0 %v6263_v20  ;;  %v6307_v57 = vld [vmem:[%s7083_s29 + $0x364] ss:$108 sps:$4 sm:$0xff]   ;;  %v6314_v58 = vld [vmem:[#allocation5 + $0x1f8] sm:$0xff]   ;;  %v6311_v0 = vld [vmem:[%s7083_s29 + $0x360] ss:$108 sps:$4 sm:$0xff]  }
  0x64   : > { %5366 = vmatprep.subr.bf16.mxu1 %v6264_v21  ;;  %v6315_v60 = vld [vmem:[#allocation5 + $0x118] sm:$0xff]   ;;  %v6317_v62 = vld [vmem:[#allocation5 + $0x1f0] sm:$0xff]   ;;  %v6327_v6 = vld [vmem:[#allocation5 + $0x1e8] sm:$0xff]  }
  0x65   : > { %v6316_v61 = vld [vmem:[#allocation5 + $0x1b8] sm:$0xff]   ;;  %v6322_v63 = vld [vmem:[#allocation5 + $0x1b0] sm:$0xff]   ;;  %v6328_v7 = vld [vmem:[#allocation5 + $0x1a8] sm:$0xff]  }
  0x66   : > { %5303 = vmatpush3.bf16.msra.mxu0 %v6265_v22  ;;  %v6325_v1 = vld [vmem:[#allocation5 + $0x150] sm:$0xff]   ;;  %v6318_v3 = vld [vmem:[%s7083_s29 + $0x43c] ss:$108 sps:$4 sm:$0xff]   ;;  %v6329_v8 = vld [vmem:[#allocation5 + $0x1e0] sm:$0xff]  }
  0x67   : > { %5367 = vmatpush3.bf16.msra.mxu1 %v6266_v23  ;;  %5304 = vmatprep.subr.bf16.mxu0 %v6267_v24  ;;  %v6326_v4 = vld [vmem:[#allocation5 + $0x110] sm:$0xff]   ;;  %v6334_v9 = vld [vmem:[#allocation5 + $0x1a0] sm:$0xff]   ;;  %v6337_v13 = vld [vmem:[#allocation5 + $0x148] sm:$0xff]  }
  0x68   : > { %5368 = vmatprep.subr.bf16.mxu1 %v6268_v25  ;;  %v6320_v5 = vld [vmem:[%s7083_s29 + $0x444] ss:$108 sps:$4 sm:$0xff]   ;;  %v6324_v11 = vld [vmem:[%s7083_s29 + $0x440] ss:$108 sps:$4 sm:$0xff]   ;;  %v6332_v14 = vld [vmem:[%s7083_s29 + $0x51c] ss:$108 sps:$4 sm:$0xff]  }
  0x69   : > { %v6323_v10 = vld [vmem:[%s7083_s29 + $0x438] ss:$108 sps:$4 sm:$0xff]   ;;  %v6330_v12 = vld [vmem:[%s7083_s29 + $0x514] ss:$108 sps:$4 sm:$0xff]   ;;  %v6338_v15 = vld [vmem:[#allocation5 + $0x108] sm:$0xff]  }
  0x6a   : > { %5305 = vmatpush3.bf16.msra.mxu0 %v6269_v26  ;;  %v6339_v16 = vld [vmem:[#allocation5 + $0x1d8] sm:$0xff]   ;;  %v6341_v18 = vld [vmem:[#allocation5 + $0x1d0] sm:$0xff]   ;;  %v6349_v24 = vld [vmem:[#allocation5 + $0x140] sm:$0xff]  }
  0x6b   : > { %5369 = vmatpush3.bf16.msra.mxu1 %v6270_v27  ;;  %5306 = vmatprep.subr.bf16.mxu0 %v6271_v28  ;;  %v6340_v17 = vld [vmem:[#allocation5 + $0x198] sm:$0xff]   ;;  %v6346_v20 = vld [vmem:[#allocation5 + $0x190] sm:$0xff]   ;;  %v6350_v25 = vld [vmem:[#allocation5 + $0x100] sm:$0xff]  }
  0x6c   : > { %5370 = vmatprep.subr.bf16.mxu1 %v6272_v29  ;;  %v6335_v19 = vld [vmem:[%s7083_s29 + $0x510] ss:$108 sps:$4 sm:$0xff]   ;;  %v6336_v21 = vld [vmem:[%s7083_s29 + $0x518] ss:$108 sps:$4 sm:$0xff]   ;;  %v6344_v23 = vld [vmem:[%s7083_s29 + $0x5f4] ss:$108 sps:$4 sm:$0xff]  }
  0x6d   : > { %v6342_v22 = vld [vmem:[%s7083_s29 + $0x5ec] ss:$108 sps:$4 sm:$0xff]   ;;  %v6353_v28 = vld [vmem:[#allocation5 + $0x1c0] sm:$0xff]   ;;  %v6354_v35 = vld [vmem:[%s7083_s29 + $0x10] ss:$108 sps:$4 sm:$0xff]  }
  0x6e   : > { %5307 = vmatpush3.bf16.msra.mxu0 %v6273_v30  ;;  %v6351_v26 = vld [vmem:[#allocation5 + $0x1c8] sm:$0xff]   ;;  %v6357_v29 = vld [vmem:[#allocation5 + $0x180] sm:$0xff]   ;;  %v6358_v30 = vld [vmem:[#allocation5 + $0x278] sm:$0xff]  }
  0x6f   : > { %5371 = vmatpush3.bf16.msra.mxu1 %v6274_v31  ;;  %5420 = vmatprep.subr.bf16.mxu0 %v6281_v36  ;;  %v6352_v27 = vld [vmem:[#allocation5 + $0x188] sm:$0xff]   ;;  %v6356_v33 = vld [vmem:[%s7083_s29 + $0x14] ss:$108 sps:$4 sm:$0xff]   ;;  %v6359_v36 = vld [vmem:[%s7083_s29 + $0x18] ss:$108 sps:$4 sm:$0xff]  }
  0x70   : > { %5484 = vmatprep.subr.bf16.mxu1 %v6314_v58  ;;  %v6347_v31 = vld [vmem:[%s7083_s29 + $0x5e8] ss:$108 sps:$4 sm:$0xff]  }
  0x71   : > { %3292 = vmatmul.mubr.bf16.vlgmr.msra.gmra.mxu0 %v6275_v32  ;;  %v6348_v32 = vld [vmem:[%s7083_s29 + $0x5f0] ss:$108 sps:$4 sm:$0xff]  }
  0x72   : > { %3389 = vmatmul.mubr.bf16.vlgmr.msra.gmra.mxu1 %v6278_v34  ;;  %5421 = vmatpush3.bf16.msra.mxu0 %v6282_v37  ;;  %v6361_v34 = vld [vmem:[%s7083_s29 + $0x1c] ss:$108 sps:$4 sm:$0xff]   ;;  %v6400_v58 = vld [vmem:[#allocation5 + $0x2b0] sm:$0xff]  }
  0x73   : > { %3299 = vmatprep.mubr.bf16.mxu0 %v6283_v38  ;;  %3396 = vmatprep.mubr.bf16.mxu1 %v6285_v39  ;;  %v6362_v37 = vld [vmem:[#allocation5 + $0x238] sm:$0xff]   ;;  %v6366_v39 = vld [vmem:[#allocation5 + $0x270] sm:$0xff]  }
  0x74   : > { %5422 = vmatprep.subr.bf16.mxu0 %v6289_v42  ;;  %5485 = vmatpush3.bf16.msra.mxu1 %v6316_v61  ;;  %v6363_v38 = vld [vmem:[%s7083_s29 + $0xec] ss:$108 sps:$4 sm:$0xff]   ;;  %v6365_v42 = vld [vmem:[%s7083_s29 + $0xe8] ss:$108 sps:$4 sm:$0xff]  }
  0x75   : > { %5486 = vmatprep.subr.bf16.mxu1 %v6317_v62  ;;  %v6405_v61 = vld [vmem:[#allocation5 + $0x210] sm:$0xff]   ;;  %v6381_v62 = vld [vmem:[%s7083_s29 + $0x298] ss:$108 sps:$4 sm:$0xff]  }
  0x76   : > { %5423 = vmatpush3.bf16.msra.mxu0 %v6290_v43  ;;  %v6374_v43 = vld [vmem:[#allocation5 + $0x268] sm:$0xff]  }
  0x77   : > { %5424 = vmatprep.subr.bf16.mxu0 %v6297_v46  ;;  %v6375_v46 = vld [vmem:[%s7083_s29 + $0x1cc] ss:$108 sps:$4 sm:$0xff]  }
  0x78   : > { %5487 = vmatpush3.bf16.msra.mxu1 %v6322_v63  ;;  %v6407_v63 = vld [vmem:[#allocation5 + $0x2e8] sm:$0xff]  }
  0x79   : > { %3300 = vmatmul.mubr.bf16.gmra.mxu0 %v6287_v40  ;;  %5488 = vmatprep.subr.bf16.mxu1 %v6327_v6  ;;  %v6367_v40 = vld [vmem:[%s7083_s29 + $0xf4] ss:$108 sps:$4 sm:$0xff]   ;;  %v6414_v6 = vld [vmem:[#allocation5 + $0x248] sm:$0xff]  }
  0x7a   : > { %3397 = vmatmul.mubr.bf16.gmra.mxu1 %v6288_v41  ;;  %3307 = vmatprep.mubr.bf16.mxu0 %v6291_v44  ;;  %v6369_v41 = vld [vmem:[#allocation5 + $0x230] sm:$0xff]  }
  0x7b   : > { %3404 = vmatprep.mubr.bf16.mxu1 %v6293_v45  ;;  %5425 = vmatpush3.bf16.msra.mxu0 %v6298_v47  ;;  %v6370_v44 = vld [vmem:[%s7083_s29 + $0xf0] ss:$108 sps:$4 sm:$0xff]   ;;  %v6377_v47 = vld [vmem:[#allocation5 + $0x228] sm:$0xff]  }
  0x7c   : > { %5426 = vmatprep.subr.bf16.mxu0 %v6305_v52  ;;  %5489 = vmatpush3.bf16.msra.mxu1 %v6328_v7  ;;  %v6371_v45 = vld [vmem:[%s7083_s29 + $0x1c4] ss:$108 sps:$4 sm:$0xff]   ;;  %v6390_v52 = vld [vmem:[#allocation5 + $0x258] sm:$0xff]   ;;  %v6417_v7 = vld [vmem:[#allocation5 + $0x208] sm:$0xff]  }
  0x7d   : > { %5490 = vmatprep.subr.bf16.mxu1 %v6329_v8  ;;  %v6389_v8 = vld [vmem:[%s7083_s29 + $0x370] ss:$108 sps:$4 sm:$0xff]  }
  0x7f   : > { %5427 = vmatpush3.bf16.msra.mxu0 %v6306_v53  ;;  %v6395_v53 = vld [vmem:[#allocation5 + $0x2b8] sm:$0xff]  }
  0x80   : > { %5428 = vmatprep.subr.bf16.mxu0 %v6313_v55  ;;  %5491 = vmatpush3.bf16.msra.mxu1 %v6334_v9  ;;  %v6397_v55 = vld [vmem:[#allocation5 + $0x2f0] sm:$0xff]   ;;  %v6419_v9 = vld [vmem:[#allocation5 + $0x2d8] sm:$0xff]  }
  0x81   : > { %3308 = vmatmul.mubr.bf16.gmra.mxu0 %v6295_v48  ;;  %5492 = vmatprep.subr.bf16.mxu1 %v6339_v16  ;;  %v6382_v48 = vld [vmem:[#allocation5 + $0x260] sm:$0xff]  }
  0x82   : > { %3405 = vmatmul.mubr.bf16.gmra.mxu1 %v6296_v49  ;;  %3315 = vmatprep.mubr.bf16.mxu0 %v6299_v50  ;;  %v6391_v49 = vld [vmem:[#allocation5 + $0x2f8] sm:$0xff]   ;;  %v6385_v50 = vld [vmem:[#allocation5 + $0x220] sm:$0xff]  }
  0x83   : > { %3412 = vmatprep.mubr.bf16.mxu1 %v6301_v51  ;;  %5429 = vmatpush3.bf16.msra.mxu0 %v6315_v60  ;;  %v6373_v51 = vld [vmem:[%s7083_s29 + $0x1c0] ss:$108 sps:$4 sm:$0xff]   ;;  %v6402_v60 = vld [vmem:[#allocation5 + $0x250] sm:$0xff]  }
  0x84   : > { %5430 = vmatprep.subr.bf16.mxu0 %v6325_v1  ;;  %5493 = vmatpush3.bf16.msra.mxu1 %v6340_v17  ;;  %v6408_v1 = vld [vmem:[#allocation5 + $0x2a8] sm:$0xff]   ;;  %v6426_v16 = vld [vmem:[#allocation5 + $0x240] sm:$0xff]  }
  0x85   : > { %5494 = vmatprep.subr.bf16.mxu1 %v6341_v18  ;;  %v6401_v17 = vld [vmem:[%s7083_s29 + $0x448] ss:$108 sps:$4 sm:$0xff]   ;;  %v6429_v18 = vld [vmem:[#allocation5 + $0x200] sm:$0xff]  }
  0x87   : > { %5431 = vmatpush3.bf16.msra.mxu0 %v6326_v4  ;;  %v6392_v4 = vld [vmem:[%s7083_s29 + $0x37c] ss:$108 sps:$4 sm:$0xff]  }
  0x88   : > { %5432 = vmatprep.subr.bf16.mxu0 %v6337_v13  ;;  %5495 = vmatpush3.bf16.msra.mxu1 %v6346_v20  ;;  %v6421_v13 = vld [vmem:[#allocation5 + $0x2d0] sm:$0xff]  }
  0x89   : > { %3316 = vmatmul.mubr.bf16.gmra.mxu0 %v6303_v54  ;;  %5496 = vmatprep.subr.bf16.mxu1 %v6351_v26  ;;  %v6378_v54 = vld [vmem:[%s7083_s29 + $0x1c8] ss:$108 sps:$4 sm:$0xff]   ;;  %v6410_v20 = vld [vmem:[%s7083_s29 + $0x524] ss:$108 sps:$4 sm:$0xff]   ;;  %v6438_v26 = vld [vmem:[#allocation5 + $0x378] sm:$0xff]  }
  0x8a   : > { %3413 = vmatmul.mubr.bf16.gmra.mxu1 %v6304_v56  ;;  %3323 = vmatprep.mubr.bf16.mxu0 %v6307_v57  ;;  %v6379_v56 = vld [vmem:[%s7083_s29 + $0x29c] ss:$108 sps:$4 sm:$0xff]   ;;  %v6383_v57 = vld [vmem:[%s7083_s29 + $0x2a4] ss:$108 sps:$4 sm:$0xff]  }
  0x8b   : > { %3420 = vmatprep.mubr.bf16.mxu1 %v6309_v59  ;;  %5433 = vmatpush3.bf16.msra.mxu0 %v6338_v15  ;;  %v6394_v59 = vld [vmem:[#allocation5 + $0x218] sm:$0xff]   ;;  %v6424_v15 = vld [vmem:[#allocation5 + $0x290] sm:$0xff]  }
  0x8c   : > { %5434 = vmatprep.subr.bf16.mxu0 %v6349_v24  ;;  %5497 = vmatpush3.bf16.msra.mxu1 %v6352_v27  ;;  %v6415_v24 = vld [vmem:[%s7083_s29 + $0x52c] ss:$108 sps:$4 sm:$0xff]  }
  0x8d   : > { %5498 = vmatprep.subr.bf16.mxu1 %v6353_v28  ;;  %v6413_v27 = vld [vmem:[%s7083_s29 + $0x520] ss:$108 sps:$4 sm:$0xff]   ;;  %v6418_v28 = vld [vmem:[%s7083_s29 + $0x528] ss:$108 sps:$4 sm:$0xff]  }
  0x8f   : > { %5435 = vmatpush3.bf16.msra.mxu0 %v6350_v25  ;;  %v6437_v25 = vld [vmem:[#allocation5 + $0x280] sm:$0xff]  }
  0x90   : > { %5548 = vmatprep.subr.bf16.mxu0 %v6358_v30  ;;  %5499 = vmatpush3.bf16.msra.mxu1 %v6357_v29  ;;  %v6422_v29 = vld [vmem:[%s7083_s29 + $0x5fc] ss:$108 sps:$4 sm:$0xff]   ;;  %v6427_v30 = vld [vmem:[%s7083_s29 + $0x604] ss:$108 sps:$4 sm:$0xff]  }
  0x91   : > { %3324 = vmatmul.mubr.bf16.gmra.mxu0 %v6311_v0  ;;  %5612 = vmatprep.subr.bf16.mxu1 %v6391_v49  ;;  %v6386_v0 = vld [vmem:[%s7083_s29 + $0x2a0] ss:$108 sps:$4 sm:$0xff]  }
  0x92   : > { %3421 = vmatmul.mubr.bf16.gmra.mxu1 %v6312_v2  ;;  %3331 = vmatprep.mubr.bf16.mxu0 %v6318_v3  ;;  %v6409_v2 = vld [vmem:[#allocation5 + $0x2e0] sm:$0xff]  }
  0x93   : > { %3428 = vmatprep.mubr.bf16.mxu1 %v6320_v5  ;;  %v6387_v3 = vld [vmem:[%s7083_s29 + $0x374] ss:$108 sps:$4 sm:$0xff]  }
  0x94   : > { %v6412_v5 = vld [vmem:[#allocation5 + $0x2a0] sm:$0xff]  }
  0x95   : > { %v6451_v49 = vld [vmem:[%s7083_s29 + $0x1d4] ss:$108 sps:$4 sm:$0xff]  }
  0x99   : > { %3332 = vmatmul.mubr.bf16.gmra.mxu0 %v6323_v10  ;;  %v6396_v10 = vld [vmem:[%s7083_s29 + $0x378] ss:$108 sps:$4 sm:$0xff]  }
  0x9a   : > { %3429 = vmatmul.mubr.bf16.gmra.mxu1 %v6324_v11  ;;  %3339 = vmatprep.mubr.bf16.mxu0 %v6330_v12  ;;  %v6398_v11 = vld [vmem:[%s7083_s29 + $0x44c] ss:$108 sps:$4 sm:$0xff]  }
  0x9b   : > { %3436 = vmatprep.mubr.bf16.mxu1 %v6332_v14  ;;  %v6420_v12 = vld [vmem:[#allocation5 + $0x298] sm:$0xff]   ;;  %v6403_v14 = vld [vmem:[%s7083_s29 + $0x454] ss:$108 sps:$4 sm:$0xff]  }
  0xa1   : > { %3340 = vmatmul.mubr.bf16.gmra.mxu0 %v6335_v19  ;;  %v6406_v19 = vld [vmem:[%s7083_s29 + $0x450] ss:$108 sps:$4 sm:$0xff]  }
  0xa2   : > { %3437 = vmatmul.mubr.bf16.gmra.mxu1 %v6336_v21  ;;  %3347 = vmatprep.mubr.bf16.mxu0 %v6342_v22  ;;  %v6431_v21 = vld [vmem:[#allocation5 + $0x2c8] sm:$0xff]  }
  0xa3   : > { %3444 = vmatprep.mubr.bf16.mxu1 %v6344_v23  ;;  %v6432_v22 = vld [vmem:[#allocation5 + $0x288] sm:$0xff]   ;;  %v6433_v23 = vld [vmem:[#allocation5 + $0x2c0] sm:$0xff]  }
  0xa9   : > { %3348 = vmatmul.mubr.bf16.gmra.mxu0 %v6347_v31  ;;  %v6425_v31 = vld [vmem:[%s7083_s29 + $0x5f8] ss:$108 sps:$4 sm:$0xff]  }
  0xaa   : > { %3445 = vmatmul.mubr.bf16.gmra.mxu1 %v6348_v32  ;;  %3485 = vmatprep.mubr.bf16.mxu0 %v6356_v33  ;;  %v6430_v32 = vld [vmem:[%s7083_s29 + $0x600] ss:$108 sps:$4 sm:$0xff]   ;;  %v6436_v33 = vld [vmem:[%s7083_s29 + $0x24] ss:$108 sps:$4 sm:$0xff]  }
  0xab   : > { %3582 = vmatprep.mubr.bf16.mxu1 %v6361_v34  ;;  %v6441_v34 = vld [vmem:[%s7083_s29 + $0x2c] ss:$108 sps:$4 sm:$0xff]  }
  0xb1   : > { %3486 = vmatmul.mubr.bf16.vlgmr.msra.gmra.mxu0 %v6354_v35  ;;  %v6434_v35 = vld [vmem:[%s7083_s29 + $0x20] ss:$108 sps:$4 sm:$0xff]  }
  0xb2   : > { %5549 = vmatpush3.bf16.msra.mxu0 %v6362_v37  ;;  %3583 = vmatmul.mubr.bf16.vlgmr.msra.gmra.mxu1 %v6359_v36  ;;  %v6439_v36 = vld [vmem:[%s7083_s29 + $0x28] ss:$108 sps:$4 sm:$0xff]   ;;  %v6442_v37 = vld [vmem:[#allocation5 + $0x338] sm:$0xff]  }
  0xb3   : > { %3493 = vmatprep.mubr.bf16.mxu0 %v6363_v38  ;;  %5550 = vmatprep.subr.bf16.mxu0 %v6366_v39  ;;  %v6471_v38 = vld [vmem:[#allocation5 + $0x3f8] sm:$0xff]  }
  0xb4   : > { %3590 = vmatprep.mubr.bf16.mxu1 %v6367_v40  ;;  %5613 = vmatpush3.bf16.msra.mxu1 %v6395_v53  ;;  %v6443_v39 = vld [vmem:[%s7083_s29 + $0xfc] ss:$108 sps:$4 sm:$0xff]   ;;  %v6446_v40 = vld [vmem:[#allocation5 + $0x370] sm:$0xff]  }
  0xb5   : > { %5614 = vmatprep.subr.bf16.mxu1 %v6397_v55  ;;  %v6487_v53 = vld [vmem:[#allocation5 + $0x3e8] sm:$0xff]   ;;  %v6489_v55 = vld [vmem:[#allocation5 + $0x3e0] sm:$0xff]  }
  0xb6   : > { %5551 = vmatpush3.bf16.msra.mxu0 %v6369_v41  ;;  %v6447_v41 = vld [vmem:[%s7083_s29 + $0x104] ss:$108 sps:$4 sm:$0xff]  }
  0xb7   : > { %5552 = vmatprep.subr.bf16.mxu0 %v6374_v43  ;;  %v6477_v43 = vld [vmem:[#allocation5 + $0x3f0] sm:$0xff]  }
  0xb8   : > { %5615 = vmatpush3.bf16.msra.mxu1 %v6400_v58  ;;  %v6458_v58 = vld [vmem:[%s7083_s29 + $0x1d8] ss:$108 sps:$4 sm:$0xff]  }
  0xb9   : > { %3494 = vmatmul.mubr.bf16.gmra.mxu0 %v6365_v42  ;;  %5616 = vmatprep.subr.bf16.mxu1 %v6407_v63  ;;  %v6475_v42 = vld [vmem:[#allocation5 + $0x3b8] sm:$0xff]  }
  0xba   : > { %3591 = vmatmul.mubr.bf16.gmra.mxu1 %v6370_v44  ;;  %3501 = vmatprep.mubr.bf16.mxu0 %v6371_v45  ;;  %v6449_v44 = vld [vmem:[#allocation5 + $0x330] sm:$0xff]   ;;  %v6445_v45 = vld [vmem:[%s7083_s29 + $0xf8] ss:$108 sps:$4 sm:$0xff]  }
  0xbb   : > { %3598 = vmatprep.mubr.bf16.mxu1 %v6375_v46  ;;  %5553 = vmatpush3.bf16.msra.mxu0 %v6377_v47  ;;  %v6454_v46 = vld [vmem:[#allocation5 + $0x368] sm:$0xff]   ;;  %v6474_v63 = vld [vmem:[#allocation5 + $0x318] sm:$0xff]  }
  0xbc   : > { %5554 = vmatprep.subr.bf16.mxu0 %v6382_v48  ;;  %5617 = vmatpush3.bf16.msra.mxu1 %v6408_v1  ;;  %v6450_v47 = vld [vmem:[%s7083_s29 + $0x100] ss:$108 sps:$4 sm:$0xff]   ;;  %v6480_v48 = vld [vmem:[#allocation5 + $0x3b0] sm:$0xff]  }
  0xbd   : > { %5618 = vmatprep.subr.bf16.mxu1 %v6409_v2  ;;  %v6485_v1 = vld [vmem:[#allocation5 + $0x310] sm:$0xff]   ;;  %v6499_v2 = vld [vmem:[#allocation5 + $0x3d8] sm:$0xff]  }
  0xbf   : > { %5555 = vmatpush3.bf16.msra.mxu0 %v6385_v50  ;;  %v6455_v50 = vld [vmem:[%s7083_s29 + $0x1dc] ss:$108 sps:$4 sm:$0xff]  }
  0xc0   : > { %5556 = vmatprep.subr.bf16.mxu0 %v6390_v52  ;;  %5619 = vmatpush3.bf16.msra.mxu1 %v6412_v5  ;;  %v6462_v52 = vld [vmem:[#allocation5 + $0x360] sm:$0xff]   ;;  %v6501_v5 = vld [vmem:[#allocation5 + $0x3d0] sm:$0xff]  }
  0xc1   : > { %3502 = vmatmul.mubr.bf16.gmra.mxu0 %v6373_v51  ;;  %5620 = vmatprep.subr.bf16.mxu1 %v6419_v9  ;;  %v6457_v51 = vld [vmem:[#allocation5 + $0x328] sm:$0xff]   ;;  %v6504_v9 = vld [vmem:[#allocation5 + $0x390] sm:$0xff]  }
  0xc2   : > { %3599 = vmatmul.mubr.bf16.gmra.mxu1 %v6378_v54  ;;  %3509 = vmatprep.mubr.bf16.mxu0 %v6379_v56  ;;  %v6488_v54 = vld [vmem:[#allocation5 + $0x3a8] sm:$0xff]   ;;  %v6453_v56 = vld [vmem:[%s7083_s29 + $0x1d0] ss:$108 sps:$4 sm:$0xff]  }
  0xc3   : > { %3606 = vmatprep.mubr.bf16.mxu1 %v6383_v57  ;;  %5557 = vmatpush3.bf16.msra.mxu0 %v6394_v59  ;;  %v6465_v57 = vld [vmem:[#allocation5 + $0x320] sm:$0xff]   ;;  %v6459_v59 = vld [vmem:[%s7083_s29 + $0x2ac] ss:$108 sps:$4 sm:$0xff]  }
  0xc4   : > { %5558 = vmatprep.subr.bf16.mxu0 %v6402_v60  ;;  %5621 = vmatpush3.bf16.msra.mxu1 %v6420_v12  ;;  %v6470_v60 = vld [vmem:[#allocation5 + $0x358] sm:$0xff]   ;;  %v6506_v12 = vld [vmem:[#allocation5 + $0x340] sm:$0xff]  }
  0xc5   : > { %5622 = vmatprep.subr.bf16.mxu1 %v6421_v13  ;;  %v6509_v13 = vld [vmem:[#allocation5 + $0x300] sm:$0xff]  }
  0xc7   : > { %5559 = vmatpush3.bf16.msra.mxu0 %v6405_v61  ;;  %v6492_v61 = vld [vmem:[#allocation5 + $0x3a0] sm:$0xff]  }
  0xc8   : > { %5560 = vmatprep.subr.bf16.mxu0 %v6414_v6  ;;  %5623 = vmatpush3.bf16.msra.mxu1 %v6424_v15  ;;  %v6466_v6 = vld [vmem:[%s7083_s29 + $0x2b0] ss:$108 sps:$4 sm:$0xff]   ;;  %v6512_v15 = vld [vmem:[#allocation5 + $0x388] sm:$0xff]  }
  0xc9   : > { %3510 = vmatmul.mubr.bf16.gmra.mxu0 %v6381_v62  ;;  %5624 = vmatprep.subr.bf16.mxu1 %v6431_v21  ;;  %v6463_v62 = vld [vmem:[%s7083_s29 + $0x2b4] ss:$108 sps:$4 sm:$0xff]  }
  0xca   : > { %3607 = vmatmul.mubr.bf16.gmra.mxu1 %v6386_v0  ;;  %3517 = vmatprep.mubr.bf16.mxu0 %v6387_v3  ;;  %v6482_v0 = vld [vmem:[#allocation5 + $0x350] sm:$0xff]   ;;  %v6500_v3 = vld [vmem:[#allocation5 + $0x398] sm:$0xff]   ;;  %v6517_v21 = vld [vmem:[#allocation5 + $0x380] sm:$0xff]  }
  0xcb   : > { %3614 = vmatprep.mubr.bf16.mxu1 %v6392_v4  ;;  %5561 = vmatpush3.bf16.msra.mxu0 %v6417_v7  ;;  %v6461_v4 = vld [vmem:[%s7083_s29 + $0x2a8] ss:$108 sps:$4 sm:$0xff]  }
  0xcc   : > { %5562 = vmatprep.subr.bf16.mxu0 %v6426_v16  ;;  %5625 = vmatpush3.bf16.msra.mxu1 %v6432_v22  ;;  %v6494_v7 = vld [vmem:[#allocation5 + $0x348] sm:$0xff]   ;;  %v6518_v22 = vld [vmem:[#allocation5 + $0x478] sm:$0xff]  }
  0xcd   : > { %5626 = vmatprep.subr.bf16.mxu1 %v6433_v23  ;;  %v6469_v16 = vld [vmem:[%s7083_s29 + $0x380] ss:$108 sps:$4 sm:$0xff]   ;;  %v6481_v23 = vld [vmem:[%s7083_s29 + $0x458] ss:$108 sps:$4 sm:$0xff]  }
  0xcf   : > { %5563 = vmatpush3.bf16.msra.mxu0 %v6429_v18  ;;  %v6476_v18 = vld [vmem:[%s7083_s29 + $0x388] ss:$108 sps:$4 sm:$0xff]  }
  0xd0   : > { %5627 = vmatpush3.bf16.msra.mxu1 %v6437_v25  ;;  %5676 = vmatprep.subr.bf16.mxu0 %v6438_v26  ;;  %v6490_v25 = vld [vmem:[%s7083_s29 + $0x534] ss:$108 sps:$4 sm:$0xff]   ;;  %v6495_v26 = vld [vmem:[%s7083_s29 + $0x53c] ss:$108 sps:$4 sm:$0xff]  }
  0xd1   : > { %3518 = vmatmul.mubr.bf16.gmra.mxu0 %v6389_v8  ;;  %5740 = vmatprep.subr.bf16.mxu1 %v6471_v38  ;;  %v6467_v8 = vld [vmem:[%s7083_s29 + $0x384] ss:$108 sps:$4 sm:$0xff]   ;;  %v6522_v38 = vld [vmem:[#allocation5 + $0x438] sm:$0xff]  }
  0xd2   : > { %3615 = vmatmul.mubr.bf16.gmra.mxu1 %v6396_v10  ;;  %3525 = vmatprep.mubr.bf16.mxu0 %v6398_v11  ;;  %v6472_v10 = vld [vmem:[%s7083_s29 + $0x38c] ss:$108 sps:$4 sm:$0xff]  }
  0xd3   : > { %3622 = vmatprep.mubr.bf16.mxu1 %v6403_v14  ;;  %v6497_v11 = vld [vmem:[#allocation5 + $0x308] sm:$0xff]  }
  0xd4   : > { %v6511_v14 = vld [vmem:[#allocation5 + $0x3c8] sm:$0xff]  }
  0xd9   : > { %3526 = vmatmul.mubr.bf16.gmra.mxu0 %v6401_v17  ;;  %v6513_v17 = vld [vmem:[#allocation5 + $0x3c0] sm:$0xff]  }
  0xda   : > { %3623 = vmatmul.mubr.bf16.gmra.mxu1 %v6406_v19  ;;  %3533 = vmatprep.mubr.bf16.mxu0 %v6410_v20  ;;  %v6478_v19 = vld [vmem:[%s7083_s29 + $0x45c] ss:$108 sps:$4 sm:$0xff]   ;;  %v6483_v20 = vld [vmem:[%s7083_s29 + $0x464] ss:$108 sps:$4 sm:$0xff]  }
  0xdb   : > { %3630 = vmatprep.mubr.bf16.mxu1 %v6415_v24  ;;  %v6486_v24 = vld [vmem:[%s7083_s29 + $0x460] ss:$108 sps:$4 sm:$0xff]  }
  0xe1   : > { %3534 = vmatmul.mubr.bf16.gmra.mxu0 %v6413_v27  ;;  %v6493_v27 = vld [vmem:[%s7083_s29 + $0x530] ss:$108 sps:$4 sm:$0xff]  }
  0xe2   : > { %3631 = vmatmul.mubr.bf16.gmra.mxu1 %v6418_v28  ;;  %3541 = vmatprep.mubr.bf16.mxu0 %v6422_v29  ;;  %v6498_v28 = vld [vmem:[%s7083_s29 + $0x538] ss:$108 sps:$4 sm:$0xff]  }
  0xe3   : > { %3638 = vmatprep.mubr.bf16.mxu1 %v6427_v30  ;;  %v6502_v29 = vld [vmem:[%s7083_s29 + $0x60c] ss:$108 sps:$4 sm:$0xff]   ;;  %v6507_v30 = vld [vmem:[%s7083_s29 + $0x614] ss:$108 sps:$4 sm:$0xff]  }
  0xe9   : > { %3542 = vmatmul.mubr.bf16.gmra.mxu0 %v6425_v31  ;;  %v6551_v31 = vld [vmem:[#allocation5 + $0x4f8] sm:$0xff]  }
  0xea   : > { %3639 = vmatmul.mubr.bf16.gmra.mxu1 %v6430_v32  ;;  %3679 = vmatprep.mubr.bf16.mxu0 %v6436_v33  ;;  %v6505_v32 = vld [vmem:[%s7083_s29 + $0x608] ss:$108 sps:$4 sm:$0xff]   ;;  %v6510_v33 = vld [vmem:[%s7083_s29 + $0x610] ss:$108 sps:$4 sm:$0xff]  }
  0xeb   : > { %3776 = vmatprep.mubr.bf16.mxu1 %v6441_v34  ;;  %v6516_v34 = vld [vmem:[%s7083_s29 + $0x34] ss:$108 sps:$4 sm:$0xff]  }
  0xf1   : > { %3680 = vmatmul.mubr.bf16.vlgmr.msra.gmra.mxu0 %v6434_v35  ;;  %v6521_v35 = vld [vmem:[%s7083_s29 + $0x3c] ss:$108 sps:$4 sm:$0xff]  }
  0xf2   : > { %5677 = vmatpush3.bf16.msra.mxu0 %v6442_v37  ;;  %3777 = vmatmul.mubr.bf16.vlgmr.msra.gmra.mxu1 %v6439_v36  ;;  %v6514_v36 = vld [vmem:[%s7083_s29 + $0x30] ss:$108 sps:$4 sm:$0xff]   ;;  %v6519_v37 = vld [vmem:[%s7083_s29 + $0x38] ss:$108 sps:$4 sm:$0xff]  }
  0xf3   : > { %3687 = vmatprep.mubr.bf16.mxu0 %v6443_v39  ;;  %5678 = vmatprep.subr.bf16.mxu0 %v6446_v40  ;;  %v6523_v39 = vld [vmem:[%s7083_s29 + $0x10c] ss:$108 sps:$4 sm:$0xff]   ;;  %v6526_v40 = vld [vmem:[#allocation5 + $0x470] sm:$0xff]  }
  0xf4   : > { %3784 = vmatprep.mubr.bf16.mxu1 %v6447_v41  ;;  %5741 = vmatpush3.bf16.msra.mxu1 %v6475_v42  ;;  %v6527_v41 = vld [vmem:[%s7083_s29 + $0x114] ss:$108 sps:$4 sm:$0xff]   ;;  %v6556_v42 = vld [vmem:[#allocation5 + $0x4b8] sm:$0xff]  }
  0xf5   : > { %5742 = vmatprep.subr.bf16.mxu1 %v6477_v43 }
  0xf6   : > { %5679 = vmatpush3.bf16.msra.mxu0 %v6449_v44  ;;  %v6557_v44 = vld [vmem:[#allocation5 + $0x4f0] sm:$0xff]  }
  0xf7   : > { %5680 = vmatprep.subr.bf16.mxu0 %v6454_v46  ;;  %v6529_v46 = vld [vmem:[#allocation5 + $0x430] sm:$0xff]  }
  0xf8   : > { %5743 = vmatpush3.bf16.msra.mxu1 %v6480_v48  ;;  %v6525_v48 = vld [vmem:[%s7083_s29 + $0x108] ss:$108 sps:$4 sm:$0xff]  }
  0xf9   : > { %3688 = vmatmul.mubr.bf16.gmra.mxu0 %v6445_v45  ;;  %5744 = vmatprep.subr.bf16.mxu1 %v6487_v53  ;;  %v6531_v53 = vld [vmem:[%s7083_s29 + $0x1e4] ss:$108 sps:$4 sm:$0xff]  }
  0xfa   : > { %3785 = vmatmul.mubr.bf16.gmra.mxu1 %v6450_v47  ;;  %3695 = vmatprep.mubr.bf16.mxu0 %v6451_v49  ;;  %v6534_v49 = vld [vmem:[#allocation5 + $0x468] sm:$0xff]  }
  0xfb   : > { %3792 = vmatprep.mubr.bf16.mxu1 %v6455_v50  ;;  %5681 = vmatpush3.bf16.msra.mxu0 %v6457_v51 }
  0xfc   : > { %5682 = vmatprep.subr.bf16.mxu0 %v6462_v52  ;;  %5745 = vmatpush3.bf16.msra.mxu1 %v6488_v54  ;;  %v6530_v52 = vld [vmem:[%s7083_s29 + $0x110] ss:$108 sps:$4 sm:$0xff]  }
  0xfd   : > { %5746 = vmatprep.subr.bf16.mxu1 %v6489_v55  ;;  %v6561_v54 = vld [vmem:[#allocation5 + $0x4b0] sm:$0xff]  }
  0xff   : > { %5683 = vmatpush3.bf16.msra.mxu0 %v6465_v57  ;;  %v6535_v57 = vld [vmem:[%s7083_s29 + $0x1ec] ss:$108 sps:$4 sm:$0xff]  }
 0x100   : > { %5684 = vmatprep.subr.bf16.mxu0 %v6470_v60  ;;  %5747 = vmatpush3.bf16.msra.mxu1 %v6492_v61  ;;  %v6537_v60 = vld [vmem:[#allocation5 + $0x428] sm:$0xff]  }
 0x101   : > { %3696 = vmatmul.mubr.bf16.gmra.mxu0 %v6453_v56  ;;  %5748 = vmatprep.subr.bf16.mxu1 %v6499_v2  ;;  %v6568_v2 = vld [vmem:[#allocation5 + $0x4a8] sm:$0xff]  }
 0x102   : > { %3793 = vmatmul.mubr.bf16.gmra.mxu1 %v6458_v58  ;;  %3703 = vmatprep.mubr.bf16.mxu0 %v6459_v59  ;;  %v6567_v58 = vld [vmem:[#allocation5 + $0x4e8] sm:$0xff]  }
 0x103   : > { %3800 = vmatprep.mubr.bf16.mxu1 %v6463_v62  ;;  %5685 = vmatpush3.bf16.msra.mxu0 %v6474_v63  ;;  %v6542_v63 = vld [vmem:[#allocation5 + $0x460] sm:$0xff]  }
 0x104   : > { %5686 = vmatprep.subr.bf16.mxu0 %v6482_v0  ;;  %5749 = vmatpush3.bf16.msra.mxu1 %v6500_v3 }
 0x105   : > { %5750 = vmatprep.subr.bf16.mxu1 %v6501_v5  ;;  %v6569_v5 = vld [vmem:[#allocation5 + $0x4e0] sm:$0xff]  }
 0x107   : > { %5687 = vmatpush3.bf16.msra.mxu0 %v6485_v1 }
 0x108   : > { %5688 = vmatprep.subr.bf16.mxu0 %v6494_v7  ;;  %5751 = vmatpush3.bf16.msra.mxu1 %v6504_v9  ;;  %v6545_v7 = vld [vmem:[#allocation5 + $0x420] sm:$0xff]  }
 0x109   : > { %3704 = vmatmul.mubr.bf16.gmra.mxu0 %v6461_v4  ;;  %5752 = vmatprep.subr.bf16.mxu1 %v6511_v14  ;;  %v6538_v14 = vld [vmem:[%s7083_s29 + $0x1e8] ss:$108 sps:$4 sm:$0xff]  }
 0x10a   : > { %3801 = vmatmul.mubr.bf16.gmra.mxu1 %v6466_v6  ;;  %3711 = vmatprep.mubr.bf16.mxu0 %v6467_v8 }
 0x10b   : > { %3808 = vmatprep.mubr.bf16.mxu1 %v6472_v10  ;;  %5689 = vmatpush3.bf16.msra.mxu0 %v6497_v11  ;;  %v6533_v10 = vld [vmem:[%s7083_s29 + $0x1e0] ss:$108 sps:$4 sm:$0xff]   ;;  %v6550_v11 = vld [vmem:[#allocation5 + $0x458] sm:$0xff]  }
 0x10c   : > { %5690 = vmatprep.subr.bf16.mxu0 %v6506_v12  ;;  %5753 = vmatpush3.bf16.msra.mxu1 %v6512_v15  ;;  %v6539_v15 = vld [vmem:[%s7083_s29 + $0x2bc] ss:$108 sps:$4 sm:$0xff]  }
 0x10d   : > { %5754 = vmatprep.subr.bf16.mxu1 %v6513_v17 }
 0x10f   : > { %5691 = vmatpush3.bf16.msra.mxu0 %v6509_v13 }
 0x110   : > { %5755 = vmatpush3.bf16.msra.mxu1 %v6517_v21  ;;  %5804 = vmatprep.subr.bf16.mxu0 %v6518_v22  ;;  %v6555_v22 = vld [vmem:[#allocation5 + $0x418] sm:$0xff]  }
 0x111   : > { %3712 = vmatmul.mubr.bf16.gmra.mxu0 %v6469_v16  ;;  %5868 = vmatprep.subr.bf16.mxu1 %v6551_v31  ;;  %v6573_v16 = vld [vmem:[#allocation5 + $0x4a0] sm:$0xff]   ;;  %v6581_v31 = vld [vmem:[#allocation5 + $0x4d0] sm:$0xff]  }
 0x112   : > { %3809 = vmatmul.mubr.bf16.gmra.mxu1 %v6476_v18  ;;  %3719 = vmatprep.mubr.bf16.mxu0 %v6478_v19  ;;  %v6543_v19 = vld [vmem:[%s7083_s29 + $0x2c4] ss:$108 sps:$4 sm:$0xff]  }
 0x113   : > { %3816 = vmatprep.mubr.bf16.mxu1 %v6483_v20  ;;  %v6579_v20 = vld [vmem:[#allocation5 + $0x4d8] sm:$0xff]  }
 0x119   : > { %3720 = vmatmul.mubr.bf16.gmra.mxu0 %v6481_v23 }
 0x11a   : > { %3817 = vmatmul.mubr.bf16.gmra.mxu1 %v6486_v24  ;;  %3727 = vmatprep.mubr.bf16.mxu0 %v6490_v25  ;;  %v6562_v25 = vld [vmem:[#allocation5 + $0x450] sm:$0xff]  }
 0x11b   : > { %3824 = vmatprep.mubr.bf16.mxu1 %v6495_v26 }
 0x121   : > { %3728 = vmatmul.mubr.bf16.gmra.mxu0 %v6493_v27 }
 0x122   : > { %3825 = vmatmul.mubr.bf16.gmra.mxu1 %v6498_v28  ;;  %3735 = vmatprep.mubr.bf16.mxu0 %v6502_v29  ;;  %v6580_v28 = vld [vmem:[#allocation5 + $0x498] sm:$0xff]  }
 0x123   : > { %3832 = vmatprep.mubr.bf16.mxu1 %v6507_v30 }
 0x129   : > { %3736 = vmatmul.mubr.bf16.gmra.mxu0 %v6505_v32 }
 0x12a   : > { %3833 = vmatmul.mubr.bf16.gmra.mxu1 %v6510_v33  ;;  %3873 = vmatprep.mubr.bf16.mxu0 %v6516_v34  ;;  %v6566_v33 = vld [vmem:[#allocation5 + $0x410] sm:$0xff]  }
 0x12b   : > { %3970 = vmatprep.mubr.bf16.mxu1 %v6521_v35 }
 0x131   : > { %v5308_v43 = vpop.f32.mrf.mxu0  ;;  %3874 = vmatmul.mubr.bf16.vlgmr.msra.gmra.mxu0 %v6514_v36  ;;  %v6541_v36 = vld [vmem:[%s7083_s29 + $0x2b8] ss:$108 sps:$4 sm:$0xff]  }
 0x132   : > { %v5372_v45 = vpop.f32.mrf.mxu1  ;;  %5805 = vmatpush3.bf16.msra.mxu0 %v6522_v38  ;;  %3971 = vmatmul.mubr.bf16.vlgmr.msra.gmra.mxu1 %v6519_v37  ;;  %v6574_v37 = vld [vmem:[#allocation5 + $0x448] sm:$0xff]  }
 0x133   : > { %v5309_v47 = vpop.f32.mrf.mxu0  ;;  %3881 = vmatprep.mubr.bf16.mxu0 %v6523_v39  ;;  %5806 = vmatprep.subr.bf16.mxu0 %v6526_v40  ;;  %v6546_v40 = vld [vmem:[%s7083_s29 + $0x2c0] ss:$108 sps:$4 sm:$0xff]  }
 0x134   : > { %v5310_v50 = vadd.f32 %v5309_v47, %v5308_v43  ;;  %v5373_v51 = vpop.f32.mrf.mxu1  ;;  %3978 = vmatprep.mubr.bf16.mxu1 %v6527_v41  ;;  %5869 = vmatpush3.bf16.msra.mxu1 %v6556_v42  ;;  %v6549_v41 = vld [vmem:[%s7083_s29 + $0x394] ss:$108 sps:$4 sm:$0xff]  }
 0x135   : > { %v5374_v55 = vadd.f32 %v5373_v51, %v5372_v45  ;;  %v5311_v56 = vpop.f32.mrf.mxu0  ;;  %5870 = vmatprep.subr.bf16.mxu1 %v6557_v44  ;;  %v6585_v42 = vld [vmem:[#allocation5 + $0x490] sm:$0xff]   ;;  %v6554_v45 = vld [vmem:[%s7083_s29 + $0x39c] ss:$108 sps:$4 sm:$0xff]   ;;  %v6586_v51 = vld [vmem:[#allocation5 + $0x440] sm:$0xff]  }
 0x136   : > { %v5375_v59 = vpop.f32.mrf.mxu1  ;;  %5807 = vmatpush3.bf16.msra.mxu0 %v6529_v46  ;;  %v6591_v46 = vld [vmem:[#allocation5 + $0x4c8] sm:$0xff]  }
 0x137   : > { %v7199_v61 = vadd.f32 %v5374_v55, %v5310_v50  ;;  %v5312_v62 = vpop.f32.mrf.mxu0  ;;  %5808 = vmatprep.subr.bf16.mxu0 %v6534_v49 }
 0x138   : > { %v5313_v0 = vadd.f32 %v5312_v62, %v5311_v56  ;;  %v5376_v1 = vpop.f32.mrf.mxu1  ;;  %5871 = vmatpush3.bf16.msra.mxu1 %v6561_v54  ;;  %v6592_v54 = vld [vmem:[#allocation5 + $0x488] sm:$0xff]   ;;  %v6547_v62 = vld [vmem:[%s7083_s29 + $0x390] ss:$108 sps:$4 sm:$0xff]  }
 0x139   : > { %v5377_v3 = vadd.f32 %v5376_v1, %v5375_v59  ;;  %v5314_v4 = vpop.f32.mrf.mxu0  ;;  %3882 = vmatmul.mubr.bf16.gmra.mxu0 %v6525_v48  ;;  %5872 = vmatprep.subr.bf16.mxu1 %v6567_v58  ;;  %v6578_v48 = vld [vmem:[#allocation5 + $0x408] sm:$0xff]  }
 0x13a   : > { %v5378_v6 = vpop.f32.mrf.mxu1  ;;  %3979 = vmatmul.mubr.bf16.gmra.mxu1 %v6530_v52  ;;  %3889 = vmatprep.mubr.bf16.mxu0 %v6531_v53 }
 0x13b   : > { %v7201_v8 = vadd.f32 %v5377_v3, %v5313_v0  ;;  %v5315_v9 = vpop.f32.mrf.mxu0  ;;  %3986 = vmatprep.mubr.bf16.mxu1 %v6535_v57  ;;  %5809 = vmatpush3.bf16.msra.mxu0 %v6537_v60  ;;  %v6593_v57 = vld [vmem:[#allocation5 + $0x4c0] sm:$0xff]   ;;  %v6598_v3 = vld [vmem:[#allocation5 + $0x578] sm:$0xff]  }
 0x13c   : > { %v5316_v12 = vadd.f32 %v5315_v9, %v5314_v4  ;;  %v5379_v13 = vpop.f32.mrf.mxu1  ;;  %5810 = vmatprep.subr.bf16.mxu0 %v6542_v63  ;;  %5873 = vmatpush3.bf16.msra.mxu1 %v6568_v2  ;;  %v6590_v63 = vld [vmem:[#allocation5 + $0x400] sm:$0xff]   ;;  %v6560_v9 = vld [vmem:[%s7083_s29 + $0x46c] ss:$108 sps:$4 sm:$0xff]  }
 0x13d   : > { %v5380_v17 = vadd.f32 %v5379_v13, %v5378_v6  ;;  %v5317_v18 = vpop.f32.mrf.mxu0  ;;  %5874 = vmatprep.subr.bf16.mxu1 %v6569_v5  ;;  %v6597_v2 = vld [vmem:[#allocation5 + $0x480] sm:$0xff]  }
 0x13e   : > { %v5381_v21 = vpop.f32.mrf.mxu1  ;;  %v6552_v6 = vld [vmem:[%s7083_s29 + $0x398] ss:$108 sps:$4 sm:$0xff]  }
 0x13f   : > { %v7207_v23 = vadd.f32 %v5380_v17, %v5316_v12  ;;  %v5318_v24 = vpop.f32.mrf.mxu0  ;;  %5811 = vmatpush3.bf16.msra.mxu0 %v6545_v7  ;;  %v6565_v12 = vld [vmem:[%s7083_s29 + $0x474] ss:$108 sps:$4 sm:$0xff]  }
 0x140   : > { %v5319_v26 = vadd.f32 %v5318_v24, %v5317_v18  ;;  %v5382_v27 = vpop.f32.mrf.mxu1  ;;  %5812 = vmatprep.subr.bf16.mxu0 %v6550_v11  ;;  %5875 = vmatpush3.bf16.msra.mxu1 %v6573_v16 }
 0x141   : > { %v5383_v29 = vadd.f32 %v5382_v27, %v5381_v21  ;;  %v5320_v30 = vpop.f32.mrf.mxu0  ;;  %3890 = vmatmul.mubr.bf16.gmra.mxu0 %v6533_v10  ;;  %5876 = vmatprep.subr.bf16.mxu1 %v6579_v20 }
 0x142   : > { %v5384_v32 = vpop.f32.mrf.mxu1  ;;  %3987 = vmatmul.mubr.bf16.gmra.mxu1 %v6538_v14  ;;  %3897 = vmatprep.mubr.bf16.mxu0 %v6539_v15 }
 0x143   : > { %v7209_v34 = vadd.f32 %v5383_v29, %v5319_v26  ;;  %v5321_v35 = vpop.f32.mrf.mxu0  ;;  %3994 = vmatprep.mubr.bf16.mxu1 %v6543_v19  ;;  %5813 = vmatpush3.bf16.msra.mxu0 %v6555_v22  ;;  %v6558_v22 = vld [vmem:[%s7083_s29 + $0x468] ss:$108 sps:$4 sm:$0xff]   ;;  %v6563_v26 = vld [vmem:[%s7083_s29 + $0x470] ss:$108 sps:$4 sm:$0xff]  }
 0x144   : > { %v5322_v38 = vadd.f32 %v5321_v35, %v5320_v30  ;;  %v5385_v39 = vpop.f32.mrf.mxu1  ;;  %5814 = vmatprep.subr.bf16.mxu0 %v6562_v25  ;;  %5877 = vmatpush3.bf16.msra.mxu1 %v6580_v28  ;;  %v6572_v28 = vld [vmem:[%s7083_s29 + $0x544] ss:$108 sps:$4 sm:$0xff]   ;;  %v6631_v35 = vld [vmem:[#allocation5 + $0x5f8] sm:$0xff]  }
 0x145   : > { %v5386_v43 = vadd.f32 %v5385_v39, %v5384_v32  ;;  %v5323_v44 = vpop.f32.mrf.mxu0  ;;  %5878 = vmatprep.subr.bf16.mxu1 %v6581_v31  ;;  %v6577_v31 = vld [vmem:[%s7083_s29 + $0x54c] ss:$108 sps:$4 sm:$0xff]  }
 0x146   : > { %v5387_v47 = vpop.f32.mrf.mxu1 }
 0x147   : > { %v7215_v49 = vadd.f32 %v5386_v43, %v5322_v38  ;;  %v5324_v50 = vpop.f32.mrf.mxu0  ;;  %5815 = vmatpush3.bf16.msra.mxu0 %v6566_v33 }
 0x148   : > { %v5325_v52 = vadd.f32 %v5324_v50, %v5323_v44  ;;  %v5388_v53 = vpop.f32.mrf.mxu1  ;;  %5816 = vmatprep.subr.bf16.mxu0 %v6574_v37  ;;  %5879 = vmatpush3.bf16.msra.mxu1 %v6585_v42 }
 0x149   : > { %v5389_v55 = vadd.f32 %v5388_v53, %v5387_v47  ;;  %v5326_v56 = vpop.f32.mrf.mxu0  ;;  %3898 = vmatmul.mubr.bf16.gmra.mxu0 %v6541_v36  ;;  %5880 = vmatprep.subr.bf16.mxu1 %v6591_v46  ;;  %v6575_v46 = vld [vmem:[%s7083_s29 + $0x548] ss:$108 sps:$4 sm:$0xff]  }
 0x14a   : > { %v5390_v58 = vpop.f32.mrf.mxu1  ;;  %3995 = vmatmul.mubr.bf16.gmra.mxu1 %v6546_v40  ;;  %3905 = vmatprep.mubr.bf16.mxu0 %v6549_v41 }
 0x14b   : > { %v7217_v59 = vadd.f32 %v5389_v55, %v5325_v52  ;;  %v5327_v60 = vpop.f32.mrf.mxu0  ;;  %4002 = vmatprep.mubr.bf16.mxu1 %v6554_v45  ;;  %5817 = vmatpush3.bf16.msra.mxu0 %v6578_v48  ;;  %v6570_v45 = vld [vmem:[%s7083_s29 + $0x540] ss:$108 sps:$4 sm:$0xff]   ;;  %v6584_v48 = vld [vmem:[%s7083_s29 + $0x61c] ss:$108 sps:$4 sm:$0xff]   ;;  %v6589_v52 = vld [vmem:[%s7083_s29 + $0x624] ss:$108 sps:$4 sm:$0xff]  }
 0x14c   : > { %v5328_v0 = vadd.f32 %v5327_v60, %v5326_v56  ;;  %v5391_v1 = vpop.f32.mrf.mxu1  ;;  %5818 = vmatprep.subr.bf16.mxu0 %v6586_v51  ;;  %5881 = vmatpush3.bf16.msra.mxu1 %v6592_v54 }
 0x14d   : > { %v5392_v4 = vadd.f32 %v5391_v1, %v5390_v58  ;;  %v5329_v5 = vpop.f32.mrf.mxu0  ;;  %5882 = vmatprep.subr.bf16.mxu1 %v6593_v57 }
 0x14e   : > { %v5393_v7 = vpop.f32.mrf.mxu1 }
 0x14f   : > { %v7222_v10 = vadd.f32 %v5392_v4, %v5328_v0  ;;  %v5330_v11 = vpop.f32.mrf.mxu0  ;;  %5819 = vmatpush3.bf16.msra.mxu0 %v6590_v63  ;;  %v6587_v4 = vld [vmem:[%s7083_s29 + $0x620] ss:$108 sps:$4 sm:$0xff]  }
 0x150   : > { %v5331_v13 = vadd.f32 %v5330_v11, %v5329_v5  ;;  %v5394_v14 = vpop.f32.mrf.mxu1  ;;  %5883 = vmatpush3.bf16.msra.mxu1 %v6597_v2  ;;  %5932 = vmatprep.subr.bf16.mxu0 %v6598_v3  ;;  %v6582_v2 = vld [vmem:[%s7083_s29 + $0x618] ss:$108 sps:$4 sm:$0xff]  }
 0x151   : > { %v5395_v15 = vadd.f32 %v5394_v14, %v5393_v7  ;;  %v5332_v16 = vpop.f32.mrf.mxu0  ;;  %3906 = vmatmul.mubr.bf16.gmra.mxu0 %v6547_v62  ;;  %5996 = vmatprep.subr.bf16.mxu1 %v6631_v35  ;;  %v6596_v5 = vld [vmem:[%s7083_s29 + $0x44] ss:$108 sps:$4 sm:$0xff]  }
 0x152   : > { %v5396_v17 = vpop.f32.mrf.mxu1  ;;  %4003 = vmatmul.mubr.bf16.gmra.mxu1 %v6552_v6  ;;  %3913 = vmatprep.mubr.bf16.mxu0 %v6560_v9  ;;  %v6601_v9 = vld [vmem:[%s7083_s29 + $0x4c] ss:$108 sps:$4 sm:$0xff]  }
 0x153   : > { %v7225_v18 = vadd.f32 %v5395_v15, %v5331_v13  ;;  %v5333_v19 = vpop.f32.mrf.mxu0  ;;  %4010 = vmatprep.mubr.bf16.mxu1 %v6565_v12 }
 0x154   : > { %v5334_v20 = vadd.f32 %v5333_v19, %v5332_v16  ;;  %v5397_v21 = vpop.f32.mrf.mxu1  ;;  %v6594_v19 = vld [vmem:[%s7083_s29 + $0x40] ss:$108 sps:$4 sm:$0xff]  }
 0x155   : > { %v5398_v24 = vadd.f32 %v5397_v21, %v5396_v17  ;;  %v5335_v25 = vpop.f32.mrf.mxu0 }
 0x156   : > { %v5399_v27 = vpop.f32.mrf.mxu1 }
 0x157   : > { %v7230_v29 = vadd.f32 %v5398_v24, %v5334_v20  ;;  %v5336_v30 = vpop.f32.mrf.mxu0  ;;  %v6602_v24 = vld [vmem:[#allocation5 + $0x538] sm:$0xff]  }
 0x158   : > { %v5337_v32 = vadd.f32 %v5336_v30, %v5335_v25  ;;  %v5400_v33 = vpop.f32.mrf.mxu1  ;;  %v6606_v30 = vld [vmem:[#allocation5 + $0x570] sm:$0xff]  }
 0x159   : > { %v5401_v36 = vadd.f32 %v5400_v33, %v5399_v27  ;;  %v5338_v37 = vpop.f32.mrf.mxu0  ;;  %3914 = vmatmul.mubr.bf16.gmra.mxu0 %v6558_v22  ;;  %v6599_v22 = vld [vmem:[%s7083_s29 + $0x48] ss:$108 sps:$4 sm:$0xff]   ;;  %v6609_v33 = vld [vmem:[%s7083_s29 + $0x124] ss:$108 sps:$4 sm:$0xff]  }
 0x15a   : > { %v5402_v38 = vpop.f32.mrf.mxu1  ;;  %4011 = vmatmul.mubr.bf16.gmra.mxu1 %v6563_v26  ;;  %3921 = vmatprep.mubr.bf16.mxu0 %v6572_v28  ;;  %v6605_v27 = vld [vmem:[%s7083_s29 + $0x11c] ss:$108 sps:$4 sm:$0xff]  }
 0x15b   : > { %v7233_v39 = vadd.f32 %v5401_v36, %v5337_v32  ;;  %v5339_v40 = vpop.f32.mrf.mxu0  ;;  %4018 = vmatprep.mubr.bf16.mxu1 %v6577_v31 }
 0x15c   : > { %v5340_v41 = vadd.f32 %v5339_v40, %v5338_v37  ;;  %v5403_v42 = vpop.f32.mrf.mxu1  ;;  %v6636_v37 = vld [vmem:[#allocation5 + $0x5b8] sm:$0xff]  }
 0x15d   : > { %v5404_v43 = vadd.f32 %v5403_v42, %v5402_v38  ;;  %v5341_v44 = vpop.f32.mrf.mxu0 }
 0x15e   : > { %v5405_v47 = vpop.f32.mrf.mxu1 }
 0x15f   : > { %v7238_v50 = vadd.f32 %v5404_v43, %v5340_v41  ;;  %v5342_v51 = vpop.f32.mrf.mxu0  ;;  %v6637_v41 = vld [vmem:[#allocation5 + $0x5f0] sm:$0xff]  }
 0x160   : > { %v5343_v53 = vadd.f32 %v5342_v51, %v5341_v44  ;;  %v5406_v54 = vpop.f32.mrf.mxu1  ;;  %v6610_v43 = vld [vmem:[#allocation5 + $0x530] sm:$0xff]  }
 0x161   : > { %v5407_v55 = vadd.f32 %v5406_v54, %v5405_v47  ;;  %v5344_v56 = vpop.f32.mrf.mxu0  ;;  %3922 = vmatmul.mubr.bf16.gmra.mxu0 %v6570_v45  ;;  %v6614_v47 = vld [vmem:[#allocation5 + $0x568] sm:$0xff]   ;;  %v6641_v54 = vld [vmem:[#allocation5 + $0x5b0] sm:$0xff]  }
 0x162   : > { %v5408_v57 = vpop.f32.mrf.mxu1  ;;  %4019 = vmatmul.mubr.bf16.gmra.mxu1 %v6575_v46  ;;  %3929 = vmatprep.mubr.bf16.mxu0 %v6584_v48  ;;  %v6603_v46 = vld [vmem:[%s7083_s29 + $0x118] ss:$108 sps:$4 sm:$0xff]  }
 0x163   : > { %v7241_v58 = vadd.f32 %v5407_v55, %v5343_v53  ;;  %v5345_v60 = vpop.f32.mrf.mxu0  ;;  %4026 = vmatprep.mubr.bf16.mxu1 %v6589_v52  ;;  %v6607_v52 = vld [vmem:[%s7083_s29 + $0x120] ss:$108 sps:$4 sm:$0xff]  }
 0x164   : > { %v5346_v62 = vadd.f32 %v5345_v60, %v5344_v56  ;;  %v5409_v63 = vpop.f32.mrf.mxu1  ;;  %v6613_v53 = vld [vmem:[%s7083_s29 + $0x1f4] ss:$108 sps:$4 sm:$0xff]  }
 0x165   : > { %v5410_v0 = vadd.f32 %v5409_v63, %v5408_v57  ;;  %v5347_v1 = vpop.f32.mrf.mxu0  ;;  %v6647_v57 = vld [vmem:[#allocation5 + $0x5e8] sm:$0xff]  }
 0x166   : > { %v5411_v3 = vpop.f32.mrf.mxu1  ;;  %v6617_v63 = vld [vmem:[%s7083_s29 + $0x1fc] ss:$108 sps:$4 sm:$0xff]  }
 0x167   : > { %v7246_v6 = vadd.f32 %v5410_v0, %v5346_v62  ;;  %v5348_v7 = vpop.f32.mrf.mxu0 }
 0x168   : > { %v5349_v11 = vadd.f32 %v5348_v7, %v5347_v1  ;;  %v5412_v12 = vpop.f32.mrf.mxu1  ;;  %v6618_v1 = vld [vmem:[#allocation5 + $0x528] sm:$0xff]  }
 0x169   : > { %v5413_v13 = vadd.f32 %v5412_v12, %v5411_v3  ;;  %v5350_v14 = vpop.f32.mrf.mxu0  ;;  %3930 = vmatmul.mubr.bf16.gmra.mxu0 %v6582_v2  ;;  %v6622_v2 = vld [vmem:[#allocation5 + $0x560] sm:$0xff]   ;;  %v6648_v7 = vld [vmem:[#allocation5 + $0x5a8] sm:$0xff]  }
 0x16a   : > { %v5414_v15 = vpop.f32.mrf.mxu1  ;;  %4027 = vmatmul.mubr.bf16.gmra.mxu1 %v6587_v4  ;;  %4067 = vmatprep.mubr.bf16.mxu0 %v6596_v5 }
 0x16b   : > { %v7249_v16 = vadd.f32 %v5413_v13, %v5349_v11  ;;  %v5351_v17 = vpop.f32.mrf.mxu0  ;;  %4164 = vmatprep.mubr.bf16.mxu1 %v6601_v9 }
 0x16c   : > { %v5352_v20 = vadd.f32 %v5351_v17, %v5350_v14  ;;  %v5415_v21 = vpop.f32.mrf.mxu1  ;;  %v6626_v14 = vld [vmem:[#allocation5 + $0x520] sm:$0xff]   ;;  %v6611_v17 = vld [vmem:[%s7083_s29 + $0x1f0] ss:$108 sps:$4 sm:$0xff]  }
 0x16d   : > { %v5416_v25 = vadd.f32 %v5415_v21, %v5414_v15  ;;  %v5353_v26 = vpop.f32.mrf.mxu0 }
 0x16e   : > { %v5417_v28 = vpop.f32.mrf.mxu1 }
 0x16f   : > { %v7254_v31 = vadd.f32 %v5416_v25, %v5352_v20  ;;  %v5354_v32 = vpop.f32.mrf.mxu0  ;;  %v6653_v25 = vld [vmem:[#allocation5 + $0x5a0] sm:$0xff]  }
 0x170   : > { %v5355_v35 = vadd.f32 %v5354_v32, %v5353_v26  ;;  %v5418_v36 = vpop.f32.mrf.mxu1 }
 0x171   : > { %v5419_v38 = vadd.f32 %v5418_v36, %v5417_v28  ;;  %v5436_v40 = vpop.f32.mrf.mxu0  ;;  %4068 = vmatmul.mubr.bf16.vlgmr.msra.gmra.mxu0 %v6594_v19  ;;  %v6630_v19 = vld [vmem:[#allocation5 + $0x558] sm:$0xff]  }
 0x172   : > { %5933 = vmatpush3.bf16.msra.mxu0 %v6602_v24  ;;  %v5500_v42 = vpop.f32.mrf.mxu1  ;;  %4165 = vmatmul.mubr.bf16.vlgmr.msra.gmra.mxu1 %v6599_v22  ;;  %v6615_v24 = vld [vmem:[%s7083_s29 + $0x1f8] ss:$108 sps:$4 sm:$0xff]  }
 0x173   : > { %v7257_v44 = vadd.f32 %v5419_v38, %v5355_v35  ;;  %v5437_v45 = vpop.f32.mrf.mxu0  ;;  %4075 = vmatprep.mubr.bf16.mxu0 %v6605_v27  ;;  %5934 = vmatprep.subr.bf16.mxu0 %v6606_v30  ;;  %v6621_v27 = vld [vmem:[%s7083_s29 + $0x2cc] ss:$108 sps:$4 sm:$0xff]  }
 0x174   : > { %v5438_v48 = vadd.f32 %v5437_v45, %v5436_v40  ;;  %v5501_v51 = vpop.f32.mrf.mxu1  ;;  %4172 = vmatprep.mubr.bf16.mxu1 %v6609_v33  ;;  %5997 = vmatpush3.bf16.msra.mxu1 %v6636_v37  ;;  %v6659_v28 = vld [vmem:[#allocation5 + $0x5d8] sm:$0xff]   ;;  %v6625_v33 = vld [vmem:[%s7083_s29 + $0x2d4] ss:$108 sps:$4 sm:$0xff]  }
 0x175   : > { %v5439_v55 = vpop.f32.mrf.mxu0  ;;  %v5502_v56 = vadd.f32 %v5501_v51, %v5500_v42  ;;  %5998 = vmatprep.subr.bf16.mxu1 %v6637_v41  ;;  %v6635_v36 = vld [vmem:[#allocation5 + $0x518] sm:$0xff]   ;;  %v6642_v37 = vld [vmem:[#allocation5 + $0x550] sm:$0xff]  }
 0x176   : > { %v3488_v60 = vadd.f32 %v5438_v48, %v7199_v61  ;;  %v5503_v62 = vpop.f32.mrf.mxu1  ;;  %5935 = vmatpush3.bf16.msra.mxu0 %v6610_v43  ;;  %v6649_v61 = vld [vmem:[#allocation5 + $0x5e0] sm:$0xff]   ;;  %v6660_v42 = vld [vmem:[#allocation5 + $0x598] sm:$0xff]   ;;  %v6619_v51 = vld [vmem:[%s7083_s29 + $0x2c8] ss:$108 sps:$4 sm:$0xff]  }
 0x177   : > { %v5440_v0 = vpop.f32.mrf.mxu0  ;;  %5936 = vmatprep.subr.bf16.mxu0 %v6614_v47 }
 0x178   : > { %v7264_v3 = vadd.f32 %v5502_v56, %v3488_v60  ;;  %v5441_v4 = vadd.f32 %v5440_v0, %v5439_v55  ;;  %v5504_v5 = vpop.f32.mrf.mxu1  ;;  %5999 = vmatpush3.bf16.msra.mxu1 %v6641_v54  ;;  %v6623_v56 = vld [vmem:[%s7083_s29 + $0x2d0] ss:$108 sps:$4 sm:$0xff]   ;;  %v6654_v60 = vld [vmem:[#allocation5 + $0x548] sm:$0xff]  }
 0x179   : > { %v5442_v9 = vpop.f32.mrf.mxu0  ;;  %v5505_v11 = vadd.f32 %v5504_v5, %v5503_v62  ;;  %4076 = vmatmul.mubr.bf16.gmra.mxu0 %v6603_v46  ;;  %6000 = vmatprep.subr.bf16.mxu1 %v6647_v57  ;;  %v6629_v57 = vld [vmem:[%s7083_s29 + $0x3a4] ss:$108 sps:$4 sm:$0xff]   ;;  %v6671_v0 = vld [vmem:[#allocation5 + $0x5c8] sm:$0xff]  }
 0x17a   : > { %v3491_v12 = vadd.f32 %v5441_v4, %v7201_v8  ;;  %v5506_v13 = vpop.f32.mrf.mxu1  ;;  %4173 = vmatmul.mubr.bf16.gmra.mxu1 %v6607_v52  ;;  %4083 = vmatprep.mubr.bf16.mxu0 %v6613_v53  ;;  %v6646_v52 = vld [vmem:[#allocation5 + $0x510] sm:$0xff]   ;;  %v6634_v4 = vld [vmem:[%s7083_s29 + $0x3ac] ss:$108 sps:$4 sm:$0xff]  }
 0x17b   : > { %v5443_v15 = vpop.f32.mrf.mxu0  ;;  %4180 = vmatprep.mubr.bf16.mxu1 %v6617_v63  ;;  %5937 = vmatpush3.bf16.msra.mxu0 %v6618_v1  ;;  %v6665_v62 = vld [vmem:[#allocation5 + $0x590] sm:$0xff]   ;;  %v6658_v5 = vld [vmem:[#allocation5 + $0x508] sm:$0xff]  }
 0x17c   : > { %v7268_v20 = vadd.f32 %v5505_v11, %v3491_v12  ;;  %v5444_v21 = vadd.f32 %v5443_v15, %v5442_v9  ;;  %v5507_v22 = vpop.f32.mrf.mxu1  ;;  %5938 = vmatprep.subr.bf16.mxu0 %v6622_v2  ;;  %6001 = vmatpush3.bf16.msra.mxu1 %v6648_v7  ;;  %v6666_v9 = vld [vmem:[#allocation5 + $0x540] sm:$0xff]  }
 0x17d   : > { %v5445_v8 = vpop.f32.mrf.mxu0  ;;  %v5508_v26 = vadd.f32 %v5507_v22, %v5506_v13  ;;  %6002 = vmatprep.subr.bf16.mxu1 %v6649_v61  ;;  %v6672_v13 = vld [vmem:[#allocation5 + $0x588] sm:$0xff]  }
 0x17e   : > { %v3496_v30 = vadd.f32 %v5444_v21, %v7207_v23  ;;  %v5509_v32 = vpop.f32.mrf.mxu1  ;;  %v6661_v23 = vld [vmem:[#allocation5 + $0x5d0] sm:$0xff]   ;;  %v6627_v22 = vld [vmem:[%s7083_s29 + $0x3a0] ss:$108 sps:$4 sm:$0xff]  }
 0x17f   : > { %v5446_v35 = vpop.f32.mrf.mxu0  ;;  %5939 = vmatpush3.bf16.msra.mxu0 %v6626_v14 }
 0x180   : > { %v7274_v38 = vadd.f32 %v5508_v26, %v3496_v30  ;;  %v5447_v40 = vadd.f32 %v5446_v35, %v5445_v8  ;;  %v5510_v41 = vpop.f32.mrf.mxu1  ;;  %5940 = vmatprep.subr.bf16.mxu0 %v6630_v19  ;;  %6003 = vmatpush3.bf16.msra.mxu1 %v6653_v25  ;;  %v6677_v25 = vld [vmem:[#allocation5 + $0x580] sm:$0xff]  }
 0x181   : > { %v5448_v43 = vpop.f32.mrf.mxu0  ;;  %v5511_v45 = vadd.f32 %v5510_v41, %v5509_v32  ;;  %4084 = vmatmul.mubr.bf16.gmra.mxu0 %v6611_v17  ;;  %6004 = vmatprep.subr.bf16.mxu1 %v6659_v28  ;;  %v6673_v17 = vld [vmem:[#allocation5 + $0x5c0] sm:$0xff]   ;;  %v6678_v28 = vld [vmem:[#allocation5 + $0x678] sm:$0xff]  }
 0x182   : > { %v3499_v46 = vadd.f32 %v5447_v40, %v7209_v34  ;;  %v5512_v47 = vpop.f32.mrf.mxu1  ;;  %4181 = vmatmul.mubr.bf16.gmra.mxu1 %v6615_v24  ;;  %4091 = vmatprep.mubr.bf16.mxu0 %v6621_v27  ;;  %v6670_v24 = vld [vmem:[#allocation5 + $0x500] sm:$0xff]   ;;  %v7290_v32 = vld [vmem:[#allocation5 + $0x6b8] sm:$0xff]  }
 0x183   : > { %v5449_v48 = vpop.f32.mrf.mxu0  ;;  %4188 = vmatprep.mubr.bf16.mxu1 %v6625_v33  ;;  %5941 = vmatpush3.bf16.msra.mxu0 %v6635_v36  ;;  %v6632_v36 = vld [vmem:[%s7083_s29 + $0x3a8] ss:$108 sps:$4 sm:$0xff]   ;;  %v6645_v41 = vld [vmem:[%s7083_s29 + $0x484] ss:$108 sps:$4 sm:$0xff]  }
 0x184   : > { %v7278_v53 = vadd.f32 %v5511_v45, %v3499_v46  ;;  %v5450_v54 = vadd.f32 %v5449_v48, %v5448_v43  ;;  %v5513_v55 = vpop.f32.mrf.mxu1  ;;  %5942 = vmatprep.subr.bf16.mxu0 %v6642_v37  ;;  %6005 = vmatpush3.bf16.msra.mxu1 %v6660_v42  ;;  %v6640_v37 = vld [vmem:[%s7083_s29 + $0x47c] ss:$108 sps:$4 sm:$0xff]  }
 0x185   : > { %v5451_v34 = vpop.f32.mrf.mxu0  ;;  %v5514_v63 = vadd.f32 %v5513_v55, %v5512_v47  ;;  %6006 = vmatprep.subr.bf16.mxu1 %v6661_v23  ;;  %v6638_v55 = vld [vmem:[%s7083_s29 + $0x478] ss:$108 sps:$4 sm:$0xff]  }
 0x186   : > { %v3504_v1 = vadd.f32 %v5450_v54, %v7215_v49  ;;  %v5515_v2 = vpop.f32.mrf.mxu1 }
 0x187   : > { %v5452_v7 = vpop.f32.mrf.mxu0  ;;  %5943 = vmatpush3.bf16.msra.mxu0 %v6646_v52 }
 0x188   : > { %v7284_v11 = vadd.f32 %v5514_v63, %v3504_v1  ;;  %v5453_v61 = vadd.f32 %v5452_v7, %v5451_v34  ;;  %v5516_v12 = vpop.f32.mrf.mxu1  ;;  %5944 = vmatprep.subr.bf16.mxu0 %v6654_v60  ;;  %6007 = vmatpush3.bf16.msra.mxu1 %v6665_v62  ;;  %v6643_v60 = vld [vmem:[%s7083_s29 + $0x480] ss:$108 sps:$4 sm:$0xff]  }
 0x189   : > { %v5454_v14 = vpop.f32.mrf.mxu0  ;;  %v5517_v15 = vadd.f32 %v5516_v12, %v5515_v2  ;;  %4092 = vmatmul.mubr.bf16.gmra.mxu0 %v6619_v51  ;;  %6008 = vmatprep.subr.bf16.mxu1 %v6671_v0  ;;  %v6652_v63 = vld [vmem:[%s7083_s29 + $0x554] ss:$108 sps:$4 sm:$0xff]  }
 0x18a   : > { %v3507_v49 = vadd.f32 %v5453_v61, %v7217_v59  ;;  %v5518_v19 = vpop.f32.mrf.mxu1  ;;  %4189 = vmatmul.mubr.bf16.gmra.mxu1 %v6623_v56  ;;  %4099 = vmatprep.mubr.bf16.mxu0 %v6629_v57 }
 0x18b   : > { %v5455_v21 = vpop.f32.mrf.mxu0  ;;  %4196 = vmatprep.mubr.bf16.mxu1 %v6634_v4  ;;  %5945 = vmatpush3.bf16.msra.mxu0 %v6658_v5 }
 0x18c   : > { %v7288_v8 = vadd.f32 %v5517_v15, %v3507_v49  ;;  %v5456_v26 = vadd.f32 %v5455_v21, %v5454_v14  ;;  %v5519_v27 = vpop.f32.mrf.mxu1  ;;  %5946 = vmatprep.subr.bf16.mxu0 %v6666_v9  ;;  %6009 = vmatpush3.bf16.msra.mxu1 %v6672_v13  ;;  %v6650_v49 = vld [vmem:[%s7083_s29 + $0x550] ss:$108 sps:$4 sm:$0xff]  }
 0x18d   : > { %v5457_v59 = vpop.f32.mrf.mxu0  ;;  %v5520_v30 = vadd.f32 %v5519_v27, %v5518_v19  ;;  %6010 = vmatprep.subr.bf16.mxu1 %v6673_v17 }
 0x18e   : > { %v3512_v33 = vadd.f32 %v5456_v26, %v7222_v10  ;;  %v5521_v35 = vpop.f32.mrf.mxu1 }
 0x18f   : > { %v5458_v40 = vpop.f32.mrf.mxu0  ;;  %5947 = vmatpush3.bf16.msra.mxu0 %v6670_v24  ;;  %v6664_v24 = vld [vmem:[%s7083_s29 + $0x62c] ss:$108 sps:$4 sm:$0xff]  }
 0x190   : > { %v7296_v42 = vadd.f32 %v5520_v30, %v3512_v33  ;;  %v5459_v43 = vadd.f32 %v5458_v40, %v5457_v59  ;;  %v5522_v45 = vpop.f32.mrf.mxu1  ;;  %6011 = vmatpush3.bf16.msra.mxu1 %v6677_v25  ;;  %6060 = vmatprep.subr.bf16.mxu0 %v6678_v28 }
 0x191   : > { %v5460_v23 = vpop.f32.mrf.mxu0  ;;  %v5523_v46 = vadd.f32 %v5522_v45, %v5521_v35  ;;  %4100 = vmatmul.mubr.bf16.gmra.mxu0 %v6627_v22  ;;  %6140 = vmatprep.subr.bf16.mxu1 %v7290_v32  ;;  %v6655_v22 = vld [vmem:[%s7083_s29 + $0x558] ss:$108 sps:$4 sm:$0xff]  }
 0x192   : > { %v3515_v10 = vadd.f32 %v5459_v43, %v7225_v18  ;;  %v5524_v47 = vpop.f32.mrf.mxu1  ;;  %4197 = vmatmul.mubr.bf16.gmra.mxu1 %v6632_v36  ;;  %4107 = vmatprep.mubr.bf16.mxu0 %v6640_v37  ;;  %v6657_v18 = vld [vmem:[%s7083_s29 + $0x55c] ss:$108 sps:$4 sm:$0xff]  }
 0x193   : > { %v5461_v48 = vpop.f32.mrf.mxu0  ;;  %4204 = vmatprep.mubr.bf16.mxu1 %v6645_v41  ;;  %v6662_v41 = vld [vmem:[%s7083_s29 + $0x628] ss:$108 sps:$4 sm:$0xff]  }
 0x194   : > { %v7300_v51 = vadd.f32 %v5523_v46, %v3515_v10  ;;  %v5462_v52 = vadd.f32 %v5461_v48, %v5460_v23  ;;  %v5525_v54 = vpop.f32.mrf.mxu1  ;;  %v6667_v23 = vld [vmem:[%s7083_s29 + $0x630] ss:$108 sps:$4 sm:$0xff]  }
 0x195   : > { %v5463_v56 = vpop.f32.mrf.mxu0  ;;  %v5526_v57 = vadd.f32 %v5525_v54, %v5524_v47  ;;  %v6676_v47 = vld [vmem:[%s7083_s29 + $0x54] ss:$108 sps:$4 sm:$0xff]  }
 0x196   : > { %v3520_v62 = vadd.f32 %v5462_v52, %v7230_v29  ;;  %v5527_v34 = vpop.f32.mrf.mxu1 }
 0x197   : > { %v5464_v0 = vpop.f32.mrf.mxu0 }
 0x198   : > { %v7307_v1 = vadd.f32 %v5526_v57, %v3520_v62  ;;  %v5465_v2 = vadd.f32 %v5464_v0, %v5463_v56  ;;  %v5528_v4 = vpop.f32.mrf.mxu1 }
 0x199   : > { %v5466_v5 = vpop.f32.mrf.mxu0  ;;  %v5529_v7 = vadd.f32 %v5528_v4, %v5527_v34  ;;  %4108 = vmatmul.mubr.bf16.gmra.mxu0 %v6638_v55 }
 0x19a   : > { %v3523_v9 = vadd.f32 %v5465_v2, %v7233_v39  ;;  %v5530_v61 = vpop.f32.mrf.mxu1  ;;  %4205 = vmatmul.mubr.bf16.gmra.mxu1 %v6643_v60  ;;  %4115 = vmatprep.mubr.bf16.mxu0 %v6652_v63  ;;  %v6669_v39 = vld [vmem:[%s7083_s29 + $0x634] ss:$108 sps:$4 sm:$0xff]  }
 0x19b   : > { %v5467_v29 = vpop.f32.mrf.mxu0  ;;  %4212 = vmatprep.mubr.bf16.mxu1 %v6657_v18  ;;  %v6674_v18 = vld [vmem:[%s7083_s29 + $0x50] ss:$108 sps:$4 sm:$0xff]  }
 0x19c   : > { %v7310_v12 = vadd.f32 %v5529_v7, %v3523_v9  ;;  %v5468_v13 = vadd.f32 %v5467_v29, %v5466_v5  ;;  %v5531_v14 = vpop.f32.mrf.mxu1  ;;  %v6679_v5 = vld [vmem:[%s7083_s29 + $0x58] ss:$108 sps:$4 sm:$0xff]  }
 0x19d   : > { %v5469_v15 = vpop.f32.mrf.mxu0  ;;  %v5532_v17 = vadd.f32 %v5531_v14, %v5530_v61  ;;  %v6682_v61 = vld [vmem:[#allocation5 + $0x638] sm:$0xff]  }
 0x19e   : > { %v3528_v19 = vadd.f32 %v5468_v13, %v7238_v50  ;;  %v5533_v21 = vpop.f32.mrf.mxu1  ;;  %v6685_v29 = vld [vmem:[%s7083_s29 + $0x12c] ss:$108 sps:$4 sm:$0xff]   ;;  %v6686_v13 = vld [vmem:[#allocation5 + $0x670] sm:$0xff]  }
 0x19f   : > { %v5470_v25 = vpop.f32.mrf.mxu0 }
 0x1a0   : > { %v7317_v26 = vadd.f32 %v5532_v17, %v3528_v19  ;;  %v5471_v27 = vadd.f32 %v5470_v25, %v5469_v15  ;;  %v5534_v28 = vpop.f32.mrf.mxu1  ;;  %v6690_v25 = vld [vmem:[#allocation5 + $0x630] sm:$0xff]  }
 0x1a1   : > { %v5472_v59 = vpop.f32.mrf.mxu0  ;;  %v5535_v30 = vadd.f32 %v5534_v28, %v5533_v21  ;;  %4116 = vmatmul.mubr.bf16.gmra.mxu0 %v6650_v49  ;;  %v6689_v49 = vld [vmem:[%s7083_s29 + $0x134] ss:$108 sps:$4 sm:$0xff]   ;;  %v6694_v28 = vld [vmem:[#allocation5 + $0x668] sm:$0xff]  }
 0x1a2   : > { %v3531_v33 = vadd.f32 %v5471_v27, %v7241_v58  ;;  %v5536_v35 = vpop.f32.mrf.mxu1  ;;  %4213 = vmatmul.mubr.bf16.gmra.mxu1 %v6655_v22  ;;  %4123 = vmatprep.mubr.bf16.mxu0 %v6664_v24  ;;  %v6681_v58 = vld [vmem:[%s7083_s29 + $0x5c] ss:$108 sps:$4 sm:$0xff]   ;;  %v6720_v22 = vld [vmem:[#allocation5 + $0x6b0] sm:$0xff]  }
 0x1a3   : > { %v5473_v50 = vpop.f32.mrf.mxu0  ;;  %4220 = vmatprep.mubr.bf16.mxu1 %v6669_v39  ;;  %v6683_v27 = vld [vmem:[%s7083_s29 + $0x128] ss:$108 sps:$4 sm:$0xff]  }
 0x1a4   : > { %v7320_v36 = vadd.f32 %v5535_v30, %v3531_v33  ;;  %v5474_v37 = vadd.f32 %v5473_v50, %v5472_v59  ;;  %v5537_v40 = vpop.f32.mrf.mxu1 }
 0x1a5   : > { %v5475_v43 = vpop.f32.mrf.mxu0  ;;  %v5538_v45 = vadd.f32 %v5537_v40, %v5536_v35  ;;  %v6687_v35 = vld [vmem:[%s7083_s29 + $0x130] ss:$108 sps:$4 sm:$0xff]  }
 0x1a6   : > { %v3536_v46 = vadd.f32 %v5474_v37, %v7246_v6  ;;  %v5539_v10 = vpop.f32.mrf.mxu1  ;;  %v6725_v37 = vld [vmem:[#allocation5 + $0x6a8] sm:$0xff]  }
 0x1a7   : > { %v5476_v48 = vpop.f32.mrf.mxu0 }
 0x1a8   : > { %v7327_v52 = vadd.f32 %v5538_v45, %v3536_v46  ;;  %v5477_v54 = vadd.f32 %v5476_v48, %v5475_v43  ;;  %v5540_v55 = vpop.f32.mrf.mxu1  ;;  %v6693_v43 = vld [vmem:[%s7083_s29 + $0x204] ss:$108 sps:$4 sm:$0xff]   ;;  %v6698_v46 = vld [vmem:[#allocation5 + $0x628] sm:$0xff]  }
 0x1a9   : > { %v5478_v56 = vpop.f32.mrf.mxu0  ;;  %v5541_v57 = vadd.f32 %v5540_v55, %v5539_v10  ;;  %4124 = vmatmul.mubr.bf16.gmra.mxu0 %v6662_v41  ;;  %v6730_v55 = vld [vmem:[#allocation5 + $0x6a0] sm:$0xff]  }
 0x1aa   : > { %v3539_v60 = vadd.f32 %v5477_v54, %v7249_v16  ;;  %v5542_v62 = vpop.f32.mrf.mxu1  ;;  %4221 = vmatmul.mubr.bf16.gmra.mxu1 %v6667_v23  ;;  %4261 = vmatprep.mubr.bf16.mxu0 %v6676_v47  ;;  %v6697_v23 = vld [vmem:[%s7083_s29 + $0x20c] ss:$108 sps:$4 sm:$0xff]  }
 0x1ab   : > { %v5479_v6 = vpop.f32.mrf.mxu0  ;;  %4358 = vmatprep.mubr.bf16.mxu1 %v6681_v58  ;;  %v6702_v58 = vld [vmem:[#allocation5 + $0x660] sm:$0xff]  }
 0x1ac   : > { %v7330_v34 = vadd.f32 %v5541_v57, %v3539_v60  ;;  %v5480_v63 = vadd.f32 %v5479_v6, %v5478_v56  ;;  %v5543_v0 = vpop.f32.mrf.mxu1  ;;  %v6706_v60 = vld [vmem:[#allocation5 + $0x620] sm:$0xff]  }
 0x1ad   : > { %v5481_v2 = vpop.f32.mrf.mxu0  ;;  %v5544_v4 = vadd.f32 %v5543_v0, %v5542_v62  ;;  %v6710_v0 = vld [vmem:[#allocation5 + $0x658] sm:$0xff]  }
 0x1ae   : > { %v3544_v7 = vadd.f32 %v5480_v63, %v7254_v31  ;;  %v5545_v9 = vpop.f32.mrf.mxu1 }
 0x1af   : > { %v5482_v16 = vpop.f32.mrf.mxu0 }
 0x1b0   : > { %v7336_v14 = vadd.f32 %v5544_v4, %v3544_v7  ;;  %v5483_v15 = vadd.f32 %v5482_v16, %v5481_v2  ;;  %v5546_v17 = vpop.f32.mrf.mxu1  ;;  %v6691_v2 = vld [vmem:[%s7083_s29 + $0x200] ss:$108 sps:$4 sm:$0xff]   ;;  %v6735_v4 = vld [vmem:[#allocation5 + $0x698] sm:$0xff]  }
 0x1b1   : > { %v5547_v19 = vadd.f32 %v5546_v17, %v5545_v9  ;;  %v5564_v21 = vpop.f32.mrf.mxu0  ;;  %4262 = vmatmul.mubr.bf16.vlgmr.msra.gmra.mxu0 %v6674_v18  ;;  %v6695_v9 = vld [vmem:[%s7083_s29 + $0x208] ss:$108 sps:$4 sm:$0xff]  }
 0x1b2   : > { %v3547_v24 = vadd.f32 %v5483_v15, %v7257_v44  ;;  %6061 = vmatpush3.bf16.msra.mxu0 %v6682_v61  ;;  %v5628_v31 = vpop.f32.mrf.mxu1  ;;  %4359 = vmatmul.mubr.bf16.vlgmr.msra.gmra.mxu1 %v6679_v5  ;;  %v6701_v61 = vld [vmem:[%s7083_s29 + $0x2dc] ss:$108 sps:$4 sm:$0xff]  }
 0x1b3   : > { %v5565_v39 = vpop.f32.mrf.mxu0  ;;  %4269 = vmatprep.mubr.bf16.mxu0 %v6685_v29  ;;  %6062 = vmatprep.subr.bf16.mxu0 %v6686_v13  ;;  %v6705_v29 = vld [vmem:[%s7083_s29 + $0x2e4] ss:$108 sps:$4 sm:$0xff]   ;;  %v6715_v13 = vld [vmem:[#allocation5 + $0x618] sm:$0xff]  }
 0x1b4   : > { %v7341_v59 = vadd.f32 %v5547_v19, %v3547_v24  ;;  %v5566_v30 = vadd.f32 %v5565_v39, %v5564_v21  ;;  %v5629_v33 = vpop.f32.mrf.mxu1  ;;  %4366 = vmatprep.mubr.bf16.mxu1 %v6689_v49  ;;  %6141 = vmatpush3.bf16.msra.mxu1 %v7290_v32  ;;  %v6719_v19 = vld [vmem:[#allocation5 + $0x650] sm:$0xff]  }
 0x1b5   : > { %v5567_v44 = vpop.f32.mrf.mxu0  ;;  %v5630_v50 = vadd.f32 %v5629_v33, %v5628_v31  ;;  %6142 = vmatprep.subr.bf16.mxu1 %v6720_v22  ;;  %v6740_v24 = vld [vmem:[#allocation5 + $0x690] sm:$0xff]   ;;  %v6729_v33 = vld [vmem:[#allocation5 + $0x648] sm:$0xff]  }
 0x1b6   : > { %v3682_v40 = vadd.f32 %v5566_v30, %v7264_v3  ;;  %v5631_v41 = vpop.f32.mrf.mxu1  ;;  %6063 = vmatpush3.bf16.msra.mxu0 %v6690_v25  ;;  %v6724_v39 = vld [vmem:[#allocation5 + $0x610] sm:$0xff]  }
 0x1b7   : > { %v5568_v45 = vpop.f32.mrf.mxu0  ;;  %6064 = vmatprep.subr.bf16.mxu0 %v6694_v28 }
 0x1b8   : > { %v7348_v10 = vadd.f32 %v5630_v50, %v3682_v40  ;;  %v5569_v47 = vadd.f32 %v5568_v45, %v5567_v44  ;;  %v5632_v48 = vpop.f32.mrf.mxu1  ;;  %6143 = vmatpush3.bf16.msra.mxu1 %v6720_v22  ;;  %v6699_v44 = vld [vmem:[%s7083_s29 + $0x2d8] ss:$108 sps:$4 sm:$0xff]   ;;  %v6745_v50 = vld [vmem:[#allocation5 + $0x688] sm:$0xff]  }
 0x1b9   : > { %v5570_v32 = vpop.f32.mrf.mxu0  ;;  %v5633_v54 = vadd.f32 %v5632_v48, %v5631_v41  ;;  %4270 = vmatmul.mubr.bf16.gmra.mxu0 %v6683_v27  ;;  %6144 = vmatprep.subr.bf16.mxu1 %v6725_v37  ;;  %v6703_v41 = vld [vmem:[%s7083_s29 + $0x2e0] ss:$108 sps:$4 sm:$0xff]  }
 0x1ba   : > { %v3685_v3 = vadd.f32 %v5569_v47, %v7268_v20  ;;  %v5634_v56 = vpop.f32.mrf.mxu1  ;;  %4367 = vmatmul.mubr.bf16.gmra.mxu1 %v6687_v35  ;;  %4277 = vmatprep.mubr.bf16.mxu0 %v6693_v43  ;;  %v6709_v43 = vld [vmem:[%s7083_s29 + $0x3b4] ss:$108 sps:$4 sm:$0xff]  }
 0x1bb   : > { %v5571_v57 = vpop.f32.mrf.mxu0  ;;  %4374 = vmatprep.mubr.bf16.mxu1 %v6697_v23  ;;  %6065 = vmatpush3.bf16.msra.mxu0 %v6698_v46  ;;  %v6714_v23 = vld [vmem:[%s7083_s29 + $0x3bc] ss:$108 sps:$4 sm:$0xff]  }
 0x1bc   : > { %v7351_v62 = vadd.f32 %v5633_v54, %v3685_v3  ;;  %v5572_v6 = vadd.f32 %v5571_v57, %v5570_v32  ;;  %v5635_v63 = vpop.f32.mrf.mxu1  ;;  %6066 = vmatprep.subr.bf16.mxu0 %v6702_v58  ;;  %6145 = vmatpush3.bf16.msra.mxu1 %v6725_v37  ;;  %v6734_v46 = vld [vmem:[#allocation5 + $0x608] sm:$0xff]   ;;  %v6739_v32 = vld [vmem:[#allocation5 + $0x640] sm:$0xff]  }
 0x1bd   : > { %v5573_v18 = vpop.f32.mrf.mxu0  ;;  %v5636_v20 = vadd.f32 %v5635_v63, %v5634_v56  ;;  %6146 = vmatprep.subr.bf16.mxu1 %v6730_v55  ;;  %v6749_v3 = vld [vmem:[#allocation5 + $0x680] sm:$0xff]  }
 0x1be   : > { %v3690_v5 = vadd.f32 %v5572_v6, %v7274_v38  ;;  %v5637_v7 = vpop.f32.mrf.mxu1 }
 0x1bf   : > { %v5574_v16 = vpop.f32.mrf.mxu0  ;;  %6067 = vmatpush3.bf16.msra.mxu0 %v6706_v60  ;;  %v6744_v60 = vld [vmem:[#allocation5 + $0x600] sm:$0xff]  }
 0x1c0   : > { %v7358_v15 = vadd.f32 %v5636_v20, %v3690_v5  ;;  %v5575_v17 = vadd.f32 %v5574_v16, %v5573_v18  ;;  %v5638_v49 = vpop.f32.mrf.mxu1  ;;  %6068 = vmatprep.subr.bf16.mxu0 %v6710_v0  ;;  %6147 = vmatpush3.bf16.msra.mxu1 %v6730_v55  ;;  %v6712_v5 = vld [vmem:[%s7083_s29 + $0x3b8] ss:$108 sps:$4 sm:$0xff]  }
 0x1c1   : > { %v5576_v21 = vpop.f32.mrf.mxu0  ;;  %v5639_v22 = vadd.f32 %v5638_v49, %v5637_v7  ;;  %4278 = vmatmul.mubr.bf16.gmra.mxu0 %v6691_v2  ;;  %6148 = vmatprep.subr.bf16.mxu1 %v6735_v4  ;;  %v6707_v2 = vld [vmem:[%s7083_s29 + $0x3b0] ss:$108 sps:$4 sm:$0xff]   ;;  %v6718_v7 = vld [vmem:[%s7083_s29 + $0x48c] ss:$108 sps:$4 sm:$0xff]  }
 0x1c2   : > { %v3693_v38 = vadd.f32 %v5575_v17, %v7278_v53  ;;  %v5640_v31 = vpop.f32.mrf.mxu1  ;;  %4375 = vmatmul.mubr.bf16.gmra.mxu1 %v6695_v9  ;;  %4285 = vmatprep.mubr.bf16.mxu0 %v6701_v61  ;;  %v6723_v61 = vld [vmem:[%s7083_s29 + $0x494] ss:$108 sps:$4 sm:$0xff]  }
 0x1c3   : > { %v5577_v25 = vpop.f32.mrf.mxu0  ;;  %4382 = vmatprep.mubr.bf16.mxu1 %v6705_v29  ;;  %6069 = vmatpush3.bf16.msra.mxu0 %v6715_v13 }
 0x1c4   : > { %v7361_v27 = vadd.f32 %v5639_v22, %v3693_v38  ;;  %v5578_v28 = vadd.f32 %v5577_v25, %v5576_v21  ;;  %v5641_v30 = vpop.f32.mrf.mxu1  ;;  %6070 = vmatprep.subr.bf16.mxu0 %v6719_v19  ;;  %6149 = vmatpush3.bf16.msra.mxu1 %v6735_v4 }
 0x1c5   : > { %v5579_v35 = vpop.f32.mrf.mxu0  ;;  %v5642_v53 = vadd.f32 %v5641_v30, %v5640_v31  ;;  %6150 = vmatprep.subr.bf16.mxu1 %v6740_v24 }
 0x1c6   : > { %v3698_v37 = vadd.f32 %v5578_v28, %v7284_v11  ;;  %v5643_v40 = vpop.f32.mrf.mxu1 }
 0x1c7   : > { %v5580_v45 = vpop.f32.mrf.mxu0  ;;  %6071 = vmatpush3.bf16.msra.mxu0 %v6724_v39  ;;  %v6716_v39 = vld [vmem:[%s7083_s29 + $0x488] ss:$108 sps:$4 sm:$0xff]  }
 0x1c8   : > { %v7368_v47 = vadd.f32 %v5642_v53, %v3698_v37  ;;  %v5581_v48 = vadd.f32 %v5580_v45, %v5579_v35  ;;  %v5644_v58 = vpop.f32.mrf.mxu1  ;;  %6072 = vmatprep.subr.bf16.mxu0 %v6729_v33  ;;  %6151 = vmatpush3.bf16.msra.mxu1 %v6740_v24  ;;  %v6721_v33 = vld [vmem:[%s7083_s29 + $0x490] ss:$108 sps:$4 sm:$0xff]  }
 0x1c9   : > { %v5582_v54 = vpop.f32.mrf.mxu0  ;;  %v5645_v55 = vadd.f32 %v5644_v58, %v5643_v40  ;;  %4286 = vmatmul.mubr.bf16.gmra.mxu0 %v6699_v44  ;;  %6152 = vmatprep.subr.bf16.mxu1 %v6745_v50  ;;  %v6728_v35 = vld [vmem:[%s7083_s29 + $0x564] ss:$108 sps:$4 sm:$0xff]  }
 0x1ca   : > { %v3701_v11 = vadd.f32 %v5581_v48, %v7288_v8  ;;  %v5646_v56 = vpop.f32.mrf.mxu1  ;;  %4383 = vmatmul.mubr.bf16.gmra.mxu1 %v6703_v41  ;;  %4293 = vmatprep.mubr.bf16.mxu0 %v6709_v43 }
 0x1cb   : > { %v5583_v57 = vpop.f32.mrf.mxu0  ;;  %4390 = vmatprep.mubr.bf16.mxu1 %v6714_v23  ;;  %6073 = vmatpush3.bf16.msra.mxu0 %v6734_v46 }
 0x1cc   : > { %v7371_v6 = vadd.f32 %v5645_v55, %v3701_v11  ;;  %v5584_v63 = vadd.f32 %v5583_v57, %v5582_v54  ;;  %v5647_v0 = vpop.f32.mrf.mxu1  ;;  %6074 = vmatprep.subr.bf16.mxu0 %v6739_v32  ;;  %6153 = vmatpush3.bf16.msra.mxu1 %v6745_v50  ;;  %v6726_v54 = vld [vmem:[%s7083_s29 + $0x560] ss:$108 sps:$4 sm:$0xff]   ;;  %v6731_v11 = vld [vmem:[%s7083_s29 + $0x568] ss:$108 sps:$4 sm:$0xff]  }
 0x1cd   : > { %v5585_v18 = vpop.f32.mrf.mxu0  ;;  %v5648_v20 = vadd.f32 %v5647_v0, %v5646_v56  ;;  %6154 = vmatprep.subr.bf16.mxu1 %v6749_v3  ;;  %v6738_v56 = vld [vmem:[%s7083_s29 + $0x63c] ss:$108 sps:$4 sm:$0xff]  }
 0x1ce   : > { %v3706_v8 = vadd.f32 %v5584_v63, %v7296_v42  ;;  %v5649_v4 = vpop.f32.mrf.mxu1 }
 0x1cf   : > { %v5586_v9 = vpop.f32.mrf.mxu0  ;;  %6075 = vmatpush3.bf16.msra.mxu0 %v6744_v60 }
 0x1d0   : > { %v7378_v16 = vadd.f32 %v5648_v20, %v3706_v8  ;;  %v5587_v29 = vadd.f32 %v5586_v9, %v5585_v18  ;;  %v5650_v13 = vpop.f32.mrf.mxu1  ;;  %6155 = vmatpush3.bf16.msra.mxu1 %v6749_v3 }
 0x1d1   : > { %v5588_v17 = vpop.f32.mrf.mxu0  ;;  %v5651_v49 = vadd.f32 %v5650_v13, %v5649_v4  ;;  %4294 = vmatmul.mubr.bf16.gmra.mxu0 %v6707_v2 }
 0x1d2   : > { %v3709_v19 = vadd.f32 %v5587_v29, %v7300_v51  ;;  %v5652_v42 = vpop.f32.mrf.mxu1  ;;  %4391 = vmatmul.mubr.bf16.gmra.mxu1 %v6712_v5  ;;  %4301 = vmatprep.mubr.bf16.mxu0 %v6718_v7  ;;  %v6733_v51 = vld [vmem:[%s7083_s29 + $0x56c] ss:$108 sps:$4 sm:$0xff]  }
 0x1d3   : > { %v5589_v21 = vpop.f32.mrf.mxu0  ;;  %4398 = vmatprep.mubr.bf16.mxu1 %v6723_v61  ;;  %v6736_v29 = vld [vmem:[%s7083_s29 + $0x638] ss:$108 sps:$4 sm:$0xff]  }
 0x1d4   : > { %v7381_v22 = vadd.f32 %v5651_v49, %v3709_v19  ;;  %v5590_v24 = vadd.f32 %v5589_v21, %v5588_v17  ;;  %v5653_v38 = vpop.f32.mrf.mxu1  ;;  %v6741_v49 = vld [vmem:[%s7083_s29 + $0x640] ss:$108 sps:$4 sm:$0xff]   ;;  %v6748_v19 = vld [vmem:[%s7083_s29 + $0x64] ss:$108 sps:$4 sm:$0xff]  }
 0x1d5   : > { %v5591_v31 = vpop.f32.mrf.mxu0  ;;  %v5654_v25 = vadd.f32 %v5653_v38, %v5652_v42 }
 0x1d6   : > { %v3714_v28 = vadd.f32 %v5590_v24, %v7307_v1  ;;  %v5655_v30 = vpop.f32.mrf.mxu1 }
 0x1d7   : > { %v5592_v53 = vpop.f32.mrf.mxu0 }
 0x1d8   : > { %v7388_v44 = vadd.f32 %v5654_v25, %v3714_v28  ;;  %v5593_v50 = vadd.f32 %v5592_v53, %v5591_v31  ;;  %v5656_v37 = vpop.f32.mrf.mxu1 }
 0x1d9   : > { %v5594_v40 = vpop.f32.mrf.mxu0  ;;  %v5657_v41 = vadd.f32 %v5656_v37, %v5655_v30  ;;  %4302 = vmatmul.mubr.bf16.gmra.mxu0 %v6716_v39 }
 0x1da   : > { %v3717_v43 = vadd.f32 %v5593_v50, %v7310_v12  ;;  %v5658_v45 = vpop.f32.mrf.mxu1  ;;  %4399 = vmatmul.mubr.bf16.gmra.mxu1 %v6721_v33  ;;  %4309 = vmatprep.mubr.bf16.mxu0 %v6728_v35  ;;  %v6743_v12 = vld [vmem:[%s7083_s29 + $0x644] ss:$108 sps:$4 sm:$0xff]   ;;  %v6746_v50 = vld [vmem:[%s7083_s29 + $0x60] ss:$108 sps:$4 sm:$0xff]  }
 0x1db   : > { %v5595_v1 = vpop.f32.mrf.mxu0  ;;  %4406 = vmatprep.mubr.bf16.mxu1 %v6733_v51 }
 0x1dc   : > { %v7391_v23 = vadd.f32 %v5657_v41, %v3717_v43  ;;  %v5596_v46 = vadd.f32 %v5595_v1, %v5594_v40  ;;  %v5659_v48 = vpop.f32.mrf.mxu1  ;;  %v6751_v41 = vld [vmem:[%s7083_s29 + $0x140] ss:$108 sps:$4 sm:$0xff]   ;;  %v6754_v43 = vld [vmem:[%s7083_s29 + $0x13c] ss:$108 sps:$4 sm:$0xff]  }
 0x1dd   : > { %v5597_v58 = vpop.f32.mrf.mxu0  ;;  %v5660_v32 = vadd.f32 %v5659_v48, %v5658_v45 }
 0x1de   : > { %v3722_v55 = vadd.f32 %v5596_v46, %v7317_v26  ;;  %v5661_v3 = vpop.f32.mrf.mxu1 }
 0x1df   : > { %v5598_v57 = vpop.f32.mrf.mxu0 }
 0x1e0   : > { %v7398_v60 = vadd.f32 %v5660_v32, %v3722_v55  ;;  %v5599_v63 = vadd.f32 %v5598_v57, %v5597_v58  ;;  %v5662_v0 = vpop.f32.mrf.mxu1 }
 0x1e1   : > { %v5600_v18 = vpop.f32.mrf.mxu0  ;;  %v5663_v20 = vadd.f32 %v5662_v0, %v5661_v3  ;;  %4310 = vmatmul.mubr.bf16.gmra.mxu0 %v6726_v54 }
 0x1e2   : > { %v3725_v2 = vadd.f32 %v5599_v63, %v7320_v36  ;;  %v5664_v8 = vpop.f32.mrf.mxu1  ;;  %4407 = vmatmul.mubr.bf16.gmra.mxu1 %v6731_v11  ;;  %4317 = vmatprep.mubr.bf16.mxu0 %v6738_v56  ;;  %v6750_v36 = vld [vmem:[%s7083_s29 + $0x68] ss:$108 sps:$4 sm:$0xff]   ;;  %v6752_v63 = vld [vmem:[%s7083_s29 + $0x138] ss:$108 sps:$4 sm:$0xff]  }
 0x1e3   : > { %v5601_v26 = vpop.f32.mrf.mxu0  ;;  %4414 = vmatprep.mubr.bf16.mxu1 %v6743_v12 }
 0x1e4   : > { %v7401_v4 = vadd.f32 %v5663_v20, %v3725_v2  ;;  %v5602_v5 = vadd.f32 %v5601_v26, %v5600_v18  ;;  %v5665_v7 = vpop.f32.mrf.mxu1  ;;  %v6757_v20 = vld [vmem:[%s7083_s29 + $0x214] ss:$108 sps:$4 sm:$0xff]   ;;  %v6759_v2 = vld [vmem:[%s7083_s29 + $0x2f0] ss:$108 sps:$4 sm:$0xff]  }
 0x1e5   : > { %v5603_v9 = vpop.f32.mrf.mxu0  ;;  %v5666_v61 = vadd.f32 %v5665_v7, %v5664_v8 }
 0x1e6   : > { %v3730_v13 = vadd.f32 %v5602_v5, %v7327_v52  ;;  %v5667_v17 = vpop.f32.mrf.mxu1 }
 0x1e7   : > { %v5604_v42 = vpop.f32.mrf.mxu0 }
 0x1e8   : > { %v7408_v21 = vadd.f32 %v5666_v61, %v3730_v13  ;;  %v5605_v24 = vadd.f32 %v5604_v42, %v5603_v9  ;;  %v5668_v38 = vpop.f32.mrf.mxu1 }
 0x1e9   : > { %v5606_v31 = vpop.f32.mrf.mxu0  ;;  %v5669_v25 = vadd.f32 %v5668_v38, %v5667_v17  ;;  %4318 = vmatmul.mubr.bf16.gmra.mxu0 %v6736_v29 }
 0x1ea   : > { %v3733_v39 = vadd.f32 %v5605_v24, %v7330_v34  ;;  %v5670_v28 = vpop.f32.mrf.mxu1  ;;  %4415 = vmatmul.mubr.bf16.gmra.mxu1 %v6741_v49  ;;  %4455 = vmatprep.mubr.bf16.mxu0 %v6748_v19  ;;  %v6758_v34 = vld [vmem:[%s7083_s29 + $0x218] ss:$108 sps:$4 sm:$0xff]   ;;  %v6755_v24 = vld [vmem:[%s7083_s29 + $0x210] ss:$108 sps:$4 sm:$0xff]  }
 0x1eb   : > { %v5607_v52 = vpop.f32.mrf.mxu0  ;;  %6156 = vmatprep.mubr.bf16.mxu1 %v6750_v36 }
 0x1ec   : > { %v7411_v30 = vadd.f32 %v5669_v25, %v3733_v39  ;;  %v5608_v33 = vadd.f32 %v5607_v52, %v5606_v31  ;;  %v5671_v35 = vpop.f32.mrf.mxu1  ;;  %v6762_v25 = vld [vmem:[%s7083_s29 + $0x2ec] ss:$108 sps:$4 sm:$0xff]  }
 0x1ed   : > { %v5609_v53 = vpop.f32.mrf.mxu0  ;;  %v5672_v51 = vadd.f32 %v5671_v35, %v5670_v28  ;;  %v6767_v39 = vld [vmem:[%s7083_s29 + $0x4a0] ss:$108 sps:$4 sm:$0xff]  }
 0x1ee   : > { %v3738_v37 = vadd.f32 %v5608_v33, %v7336_v14  ;;  %v5673_v40 = vpop.f32.mrf.mxu1 }
 0x1ef   : > { %v5610_v45 = vpop.f32.mrf.mxu0 }
 0x1f0   : > { %v7418_v1 = vadd.f32 %v5672_v51, %v3738_v37  ;;  %v5611_v46 = vadd.f32 %v5610_v45, %v5609_v53  ;;  %v5674_v48 = vpop.f32.mrf.mxu1 }
 0x1f1   : > { %v5675_v58 = vadd.f32 %v5674_v48, %v5673_v40  ;;  %v5692_v32 = vpop.f32.mrf.mxu0  ;;  %4456 = vmatmul.mubr.bf16.vlgmr.msra.gmra.mxu0 %v6746_v50 }
 0x1f2   : > { %v3741_v54 = vadd.f32 %v5611_v46, %v7341_v59  ;;  %v5756_v55 = vpop.f32.mrf.mxu1  ;;  %6157 = vmatmul.mubr.bf16.vlgmr.msra.gmra.mxu1 %v6751_v41  ;;  %4463 = vmatprep.mubr.bf16.mxu0 %v6754_v43  ;;  %v6766_v59 = vld [vmem:[%s7083_s29 + $0x3c8] ss:$108 sps:$4 sm:$0xff]  }
 0x1f3   : > { %v5693_v14 = vpop.f32.mrf.mxu0  ;;  %6160 = vmatprep.mubr.bf16.mxu1 %v6758_v34  ;;  %v6760_v46 = vld [vmem:[%s7083_s29 + $0x2e8] ss:$108 sps:$4 sm:$0xff]  }
 0x1f4   : > { %v7421_v3 = vadd.f32 %v5675_v58, %v3741_v54  ;;  %v5694_v11 = vadd.f32 %v5693_v14, %v5692_v32  ;;  %v5757_v56 = vpop.f32.mrf.mxu1  ;;  %v6765_v32 = vld [vmem:[%s7083_s29 + $0x3c4] ss:$108 sps:$4 sm:$0xff]  }
 0x1f5   : > { %v5695_v57 = vpop.f32.mrf.mxu0  ;;  %v5758_v12 = vadd.f32 %v5757_v56, %v5756_v55  ;;  %v6775_v54 = vld [vmem:[%s7083_s29 + $0x650] ss:$108 sps:$4 sm:$0xff]  }
 0x1f6   : > { %v3876_v0 = vadd.f32 %v5694_v11, %v7348_v10  ;;  %v5759_v18 = vpop.f32.mrf.mxu1 }
 0x1f7   : > { %v5696_v8 = vpop.f32.mrf.mxu0 }
 0x1f8   : > { %v7428_v26 = vadd.f32 %v5758_v12, %v3876_v0  ;;  %v5697_v5 = vadd.f32 %v5696_v8, %v5695_v57  ;;  %v5760_v7 = vpop.f32.mrf.mxu1 }
 0x1f9   : > { %v5698_v9 = vpop.f32.mrf.mxu0  ;;  %v5761_v61 = vadd.f32 %v5760_v7, %v5759_v18  ;;  %4464 = vmatmul.mubr.bf16.gmra.mxu0 %v6752_v63 }
 0x1fa   : > { %v3879_v29 = vadd.f32 %v5697_v5, %v7351_v62  ;;  %v5762_v13 = vpop.f32.mrf.mxu1  ;;  %4471 = vmatprep.mubr.bf16.mxu0 %v6757_v20  ;;  %6161 = vmatmul.mubr.bf16.gmra.mxu1 %v6759_v2  ;;  %v6774_v62 = vld [vmem:[%s7083_s29 + $0x578] ss:$108 sps:$4 sm:$0xff]  }
 0x1fb   : > { %v5699_v10 = vpop.f32.mrf.mxu0  ;;  %6164 = vmatprep.mubr.bf16.mxu1 %v6766_v59  ;;  %v6763_v59 = vld [vmem:[%s7083_s29 + $0x3c0] ss:$108 sps:$4 sm:$0xff]  }
 0x1fc   : > { %v7431_v17 = vadd.f32 %v5761_v61, %v3879_v29  ;;  %v5700_v49 = vadd.f32 %v5699_v10, %v5698_v9  ;;  %v5763_v19 = vpop.f32.mrf.mxu1  ;;  %v6770_v9 = vld [vmem:[%s7083_s29 + $0x49c] ss:$108 sps:$4 sm:$0xff]  }
 0x1fd   : > { %v5701_v42 = vpop.f32.mrf.mxu0  ;;  %v5764_v36 = vadd.f32 %v5763_v19, %v5762_v13 }
 0x1fe   : > { %v3884_v38 = vadd.f32 %v5700_v49, %v7358_v15  ;;  %v5765_v31 = vpop.f32.mrf.mxu1 }
 0x1ff   : > { %v5702_v28 = vpop.f32.mrf.mxu0 }
 0x200   : > { %v7438_v52 = vadd.f32 %v5764_v36, %v3884_v38  ;;  %v5703_v33 = vadd.f32 %v5702_v28, %v5701_v42  ;;  %v5766_v35 = vpop.f32.mrf.mxu1 }
 0x201   : > { %v5704_v53 = vpop.f32.mrf.mxu0  ;;  %v5767_v51 = vadd.f32 %v5766_v35, %v5765_v31  ;;  %4472 = vmatmul.mubr.bf16.gmra.mxu0 %v6755_v24 }
 0x202   : > { %v3887_v50 = vadd.f32 %v5703_v33, %v7361_v27  ;;  %v5768_v37 = vpop.f32.mrf.mxu1  ;;  %4479 = vmatprep.mubr.bf16.mxu0 %v6762_v25  ;;  %6165 = vmatmul.mubr.bf16.gmra.mxu1 %v6767_v39  ;;  %v6768_v39 = vld [vmem:[%s7083_s29 + $0x498] ss:$108 sps:$4 sm:$0xff]   ;;  %v6773_v33 = vld [vmem:[%s7083_s29 + $0x574] ss:$108 sps:$4 sm:$0xff]  }
 0x203   : > { %v5705_v15 = vpop.f32.mrf.mxu0  ;;  %6168 = vmatprep.mubr.bf16.mxu1 %v6774_v62 }
 0x204   : > { %v7441_v40 = vadd.f32 %v5767_v51, %v3887_v50  ;;  %v5706_v41 = vadd.f32 %v5705_v15, %v5704_v53  ;;  %v5769_v43 = vpop.f32.mrf.mxu1 }
 0x205   : > { %v5707_v45 = vpop.f32.mrf.mxu0  ;;  %v5770_v34 = vadd.f32 %v5769_v43, %v5768_v37 }
 0x206   : > { %v3892_v48 = vadd.f32 %v5706_v41, %v7368_v47  ;;  %v5771_v58 = vpop.f32.mrf.mxu1 }
 0x207   : > { %v5708_v55 = vpop.f32.mrf.mxu0 }
 0x208   : > { %v7447_v14 = vadd.f32 %v5770_v34, %v3892_v48  ;;  %v5709_v27 = vadd.f32 %v5708_v55, %v5707_v45  ;;  %v5772_v11 = vpop.f32.mrf.mxu1  ;;  %v6778_v55 = vld [vmem:[%s7083_s29 + $0x64c] ss:$108 sps:$4 sm:$0xff]  }
 0x209   : > { %v5710_v56 = vpop.f32.mrf.mxu0  ;;  %v5773_v57 = vadd.f32 %v5772_v11, %v5771_v58  ;;  %4480 = vmatmul.mubr.bf16.gmra.mxu0 %v6760_v46  ;;  %v6771_v58 = vld [vmem:[%s7083_s29 + $0x570] ss:$108 sps:$4 sm:$0xff]  }
 0x20a   : > { %v3895_v12 = vadd.f32 %v5709_v27, %v7371_v6  ;;  %v5774_v63 = vpop.f32.mrf.mxu1  ;;  %4487 = vmatprep.mubr.bf16.mxu0 %v6765_v32  ;;  %6169 = vmatmul.mubr.bf16.gmra.mxu1 %v6775_v54 }
 0x20b   : > { %v5711_v0 = vpop.f32.mrf.mxu0 }
 0x20c   : > { %v7450_v47 = vadd.f32 %v5773_v57, %v3895_v12  ;;  %v5712_v18 = vadd.f32 %v5711_v0, %v5710_v56  ;;  %v5775_v20 = vpop.f32.mrf.mxu1 }
 0x20d   : > { %v5713_v2 = vpop.f32.mrf.mxu0  ;;  %v5776_v8 = vadd.f32 %v5775_v20, %v5774_v63 }
 0x20e   : > { %v3900_v5 = vadd.f32 %v5712_v18, %v7378_v16  ;;  %v5777_v7 = vpop.f32.mrf.mxu1 }
 0x20f   : > { %v5714_v61 = vpop.f32.mrf.mxu0 }
 0x210   : > { %v7455_v29 = vadd.f32 %v5776_v8, %v3900_v5  ;;  %v5715_v6 = vadd.f32 %v5714_v61, %v5713_v2  ;;  %v5778_v13 = vpop.f32.mrf.mxu1  ;;  %v6776_v5 = vld [vmem:[%s7083_s29 + $0x648] ss:$108 sps:$4 sm:$0xff]  }
 0x211   : > { %v5716_v10 = vpop.f32.mrf.mxu0  ;;  %v5779_v49 = vadd.f32 %v5778_v13, %v5777_v7  ;;  %4488 = vmatmul.mubr.bf16.gmra.mxu0 %v6763_v59 }
 0x212   : > { %v3903_v19 = vadd.f32 %v5715_v6, %v7381_v22  ;;  %v5780_v42 = vpop.f32.mrf.mxu1  ;;  %4495 = vmatprep.mubr.bf16.mxu0 %v6770_v9 }
 0x213   : > { %v5717_v36 = vpop.f32.mrf.mxu0 }
 0x214   : > { %v7458_v24 = vadd.f32 %v5779_v49, %v3903_v19  ;;  %v5718_v16 = vadd.f32 %v5717_v36, %v5716_v10  ;;  %v5781_v38 = vpop.f32.mrf.mxu1 }
 0x215   : > { %v5719_v31 = vpop.f32.mrf.mxu0  ;;  %v5782_v25 = vadd.f32 %v5781_v38, %v5780_v42 }
 0x216   : > { %v3908_v28 = vadd.f32 %v5718_v16, %v7388_v44  ;;  %v5783_v62 = vpop.f32.mrf.mxu1 }
 0x217   : > { %v5720_v35 = vpop.f32.mrf.mxu0 }
 0x218   : > { %v7463_v53 = vadd.f32 %v5782_v25, %v3908_v28  ;;  %v5721_v51 = vadd.f32 %v5720_v35, %v5719_v31  ;;  %v5784_v22 = vpop.f32.mrf.mxu1 }
 0x219   : > { %v5722_v50 = vpop.f32.mrf.mxu0  ;;  %v5785_v37 = vadd.f32 %v5784_v22, %v5783_v62  ;;  %4496 = vmatmul.mubr.bf16.gmra.mxu0 %v6768_v39 }
 0x21a   : > { %v3911_v15 = vadd.f32 %v5721_v51, %v7391_v23  ;;  %v5786_v41 = vpop.f32.mrf.mxu1  ;;  %4503 = vmatprep.mubr.bf16.mxu0 %v6773_v33 }
 0x21b   : > { %v5723_v43 = vpop.f32.mrf.mxu0 }
 0x21c   : > { %v7466_v45 = vadd.f32 %v5785_v37, %v3911_v15  ;;  %v5724_v44 = vadd.f32 %v5723_v43, %v5722_v50  ;;  %v5787_v34 = vpop.f32.mrf.mxu1 }
 0x21d   : > { %v5725_v46 = vpop.f32.mrf.mxu0  ;;  %v5788_v48 = vadd.f32 %v5787_v34, %v5786_v41 }
 0x21e   : > { %v3916_v32 = vadd.f32 %v5724_v44, %v7398_v60  ;;  %v5789_v54 = vpop.f32.mrf.mxu1 }
 0x21f   : > { %v5726_v27 = vpop.f32.mrf.mxu0 }
 0x220   : > { %v7471_v11 = vadd.f32 %v5788_v48, %v3916_v32  ;;  %v5727_v56 = vadd.f32 %v5726_v27, %v5725_v46  ;;  %v5790_v23 = vpop.f32.mrf.mxu1 }
 0x221   : > { %v5728_v57 = vpop.f32.mrf.mxu0  ;;  %v5791_v12 = vadd.f32 %v5790_v23, %v5789_v54  ;;  %4504 = vmatmul.mubr.bf16.gmra.mxu0 %v6771_v58 }
 0x222   : > { %v3919_v63 = vadd.f32 %v5727_v56, %v7401_v4  ;;  %v5792_v0 = vpop.f32.mrf.mxu1  ;;  %4511 = vmatprep.mubr.bf16.mxu0 %v6778_v55 }
 0x223   : > { %v5729_v18 = vpop.f32.mrf.mxu0 }
 0x224   : > { %v7474_v20 = vadd.f32 %v5791_v12, %v3919_v63  ;;  %v5730_v2 = vadd.f32 %v5729_v18, %v5728_v57  ;;  %v5793_v60 = vpop.f32.mrf.mxu1 }
 0x225   : > { %v5731_v8 = vpop.f32.mrf.mxu0  ;;  %v5794_v59 = vadd.f32 %v5793_v60, %v5792_v0 }
 0x226   : > { %v3924_v7 = vadd.f32 %v5730_v2, %v7408_v21  ;;  %v5795_v9 = vpop.f32.mrf.mxu1 }
 0x227   : > { %v5732_v61 = vpop.f32.mrf.mxu0 }
 0x228   : > { %v7478_v6 = vadd.f32 %v5794_v59, %v3924_v7  ;;  %v5733_v13 = vadd.f32 %v5732_v61, %v5731_v8  ;;  %v5796_v10 = vpop.f32.mrf.mxu1 }
 0x229   : > { %v5734_v49 = vpop.f32.mrf.mxu0  ;;  %v5797_v4 = vadd.f32 %v5796_v10, %v5795_v9  ;;  %4512 = vmatmul.mubr.bf16.gmra.mxu0 %v6776_v5 }
 0x22a   : > { %v3927_v19 = vadd.f32 %v5733_v13, %v7411_v30  ;;  %v5798_v42 = vpop.f32.mrf.mxu1 }
 0x22b   : > { %v5735_v36 = vpop.f32.mrf.mxu0 }
 0x22c   : > { %v7481_v16 = vadd.f32 %v5797_v4, %v3927_v19  ;;  %v5736_v38 = vadd.f32 %v5735_v36, %v5734_v49  ;;  %v5799_v31 = vpop.f32.mrf.mxu1 }
 0x22d   : > { %v5737_v25 = vpop.f32.mrf.mxu0  ;;  %v5800_v39 = vadd.f32 %v5799_v31, %v5798_v42 }
 0x22e   : > { %v3932_v21 = vadd.f32 %v5736_v38, %v7418_v1  ;;  %v5801_v28 = vpop.f32.mrf.mxu1 }
 0x22f   : > { %v5738_v62 = vpop.f32.mrf.mxu0 }
 0x230   : > { %v7484_v33 = vadd.f32 %v5800_v39, %v3932_v21  ;;  %v5739_v35 = vadd.f32 %v5738_v62, %v5737_v25  ;;  %v5802_v51 = vpop.f32.mrf.mxu1 }
 0x231   : > { %v5803_v22 = vadd.f32 %v5802_v51, %v5801_v28  ;;  %v5820_v50 = vpop.f32.mrf.mxu0 }
 0x232   : > { %v3935_v30 = vadd.f32 %v5739_v35, %v7421_v3  ;;  %v5884_v37 = vpop.f32.mrf.mxu1 }
 0x233   : > { %v5821_v15 = vpop.f32.mrf.mxu0 }
 0x234   : > { %v7487_v41 = vadd.f32 %v5803_v22, %v3935_v30  ;;  %v5822_v43 = vadd.f32 %v5821_v15, %v5820_v50  ;;  %v5885_v44 = vpop.f32.mrf.mxu1 }
 0x235   : > { %v5823_v34 = vpop.f32.mrf.mxu0  ;;  %v5886_v46 = vadd.f32 %v5885_v44, %v5884_v37 }
 0x236   : > { %v4070_v1 = vadd.f32 %v5822_v43, %v7428_v26  ;;  %v5887_v48 = vpop.f32.mrf.mxu1 }
 0x237   : > { %v5824_v58 = vpop.f32.mrf.mxu0 }
 0x238   : > { %v7490_v32 = vadd.f32 %v5886_v46, %v4070_v1  ;;  %v5825_v54 = vadd.f32 %v5824_v58, %v5823_v34  ;;  %v5888_v55 = vpop.f32.mrf.mxu1 }
 0x239   : > { %v5826_v27 = vpop.f32.mrf.mxu0  ;;  %v5889_v56 = vadd.f32 %v5888_v55, %v5887_v48 }
 0x23a   : > { %v4073_v3 = vadd.f32 %v5825_v54, %v7431_v17  ;;  %v5890_v23 = vpop.f32.mrf.mxu1 }
 0x23b   : > { %v5827_v57 = vpop.f32.mrf.mxu0 }
 0x23c   : > { %v7493_v12 = vadd.f32 %v5889_v56, %v4073_v3  ;;  %v5828_v63 = vadd.f32 %v5827_v57, %v5826_v27  ;;  %v5891_v0 = vpop.f32.mrf.mxu1 }
 0x23d   : > { %v5829_v18 = vpop.f32.mrf.mxu0  ;;  %v5892_v2 = vadd.f32 %v5891_v0, %v5890_v23 }
 0x23e   : > { %v4078_v26 = vadd.f32 %v5828_v63, %v7438_v52  ;;  %v5893_v60 = vpop.f32.mrf.mxu1 }
 0x23f   : > { %v5830_v8 = vpop.f32.mrf.mxu0 }
 0x240   : > { %v7496_v59 = vadd.f32 %v5892_v2, %v4078_v26  ;;  %v5831_v5 = vadd.f32 %v5830_v8, %v5829_v18  ;;  %v5894_v7 = vpop.f32.mrf.mxu1 }
 0x241   : > { %v5832_v9 = vpop.f32.mrf.mxu0  ;;  %v5895_v61 = vadd.f32 %v5894_v7, %v5893_v60 }
 0x242   : > { %v4081_v17 = vadd.f32 %v5831_v5, %v7441_v40  ;;  %v5896_v13 = vpop.f32.mrf.mxu1 }
 0x243   : > { %v5833_v10 = vpop.f32.mrf.mxu0 }
 0x244   : > { %v7499_v49 = vadd.f32 %v5895_v61, %v4081_v17  ;;  %v5834_v4 = vadd.f32 %v5833_v10, %v5832_v9  ;;  %v5897_v19 = vpop.f32.mrf.mxu1 }
 0x245   : > { %v5835_v42 = vpop.f32.mrf.mxu0  ;;  %v5898_v36 = vadd.f32 %v5897_v19, %v5896_v13 }
 0x246   : > { %v4086_v52 = vadd.f32 %v5834_v4, %v7447_v14  ;;  %v5899_v38 = vpop.f32.mrf.mxu1 }
 0x247   : > { %v5836_v31 = vpop.f32.mrf.mxu0 }
 0x248   : > { %v7502_v25 = vadd.f32 %v5898_v36, %v4086_v52  ;;  %v5837_v39 = vadd.f32 %v5836_v31, %v5835_v42  ;;  %v5900_v21 = vpop.f32.mrf.mxu1 }
 0x249   : > { %v5838_v28 = vpop.f32.mrf.mxu0  ;;  %v5901_v62 = vadd.f32 %v5900_v21, %v5899_v38 }
 0x24a   : > { %v4089_v40 = vadd.f32 %v5837_v39, %v7450_v47  ;;  %v5902_v35 = vpop.f32.mrf.mxu1 }
 0x24b   : > { %v5839_v51 = vpop.f32.mrf.mxu0 }
 0x24c   : > { %v7505_v22 = vadd.f32 %v5901_v62, %v4089_v40  ;;  %v5840_v50 = vadd.f32 %v5839_v51, %v5838_v28  ;;  %v5903_v30 = vpop.f32.mrf.mxu1 }
 0x24d   : > { %v5841_v37 = vpop.f32.mrf.mxu0  ;;  %v5904_v15 = vadd.f32 %v5903_v30, %v5902_v35 }
 0x24e   : > { %v4094_v14 = vadd.f32 %v5840_v50, %v7455_v29  ;;  %v5905_v43 = vpop.f32.mrf.mxu1 }
 0x24f   : > { %v5842_v44 = vpop.f32.mrf.mxu0 }
 0x250   : > { %v7508_v34 = vadd.f32 %v5904_v15, %v4094_v14  ;;  %v5843_v46 = vadd.f32 %v5842_v44, %v5841_v37  ;;  %v5906_v1 = vpop.f32.mrf.mxu1 }
 0x251   : > { %v5844_v48 = vpop.f32.mrf.mxu0  ;;  %v5907_v58 = vadd.f32 %v5906_v1, %v5905_v43 }
 0x252   : > { %v4097_v47 = vadd.f32 %v5843_v46, %v7458_v24  ;;  %v5908_v54 = vpop.f32.mrf.mxu1 }
 0x253   : > { %v5845_v55 = vpop.f32.mrf.mxu0 }
 0x254   : > { %v7511_v27 = vadd.f32 %v5907_v58, %v4097_v47  ;;  %v5846_v56 = vadd.f32 %v5845_v55, %v5844_v48  ;;  %v5909_v3 = vpop.f32.mrf.mxu1 }
 0x255   : > { %v5847_v23 = vpop.f32.mrf.mxu0  ;;  %v5910_v57 = vadd.f32 %v5909_v3, %v5908_v54 }
 0x256   : > { %v4102_v29 = vadd.f32 %v5846_v56, %v7463_v53  ;;  %v5911_v63 = vpop.f32.mrf.mxu1 }
 0x257   : > { %v5848_v0 = vpop.f32.mrf.mxu0 }
 0x258   : > { %v7514_v18 = vadd.f32 %v5910_v57, %v4102_v29  ;;  %v5849_v2 = vadd.f32 %v5848_v0, %v5847_v23  ;;  %v5912_v26 = vpop.f32.mrf.mxu1 }
 0x259   : > { %v5850_v60 = vpop.f32.mrf.mxu0  ;;  %v5913_v8 = vadd.f32 %v5912_v26, %v5911_v63 }
 0x25a   : > { %v4105_v24 = vadd.f32 %v5849_v2, %v7466_v45  ;;  %v5914_v5 = vpop.f32.mrf.mxu1 }
 0x25b   : > { %v5851_v7 = vpop.f32.mrf.mxu0 }
 0x25c   : > { %v7517_v9 = vadd.f32 %v5913_v8, %v4105_v24  ;;  %v5852_v61 = vadd.f32 %v5851_v7, %v5850_v60  ;;  %v5915_v17 = vpop.f32.mrf.mxu1 }
 0x25d   : > { %v5853_v13 = vpop.f32.mrf.mxu0  ;;  %v5916_v10 = vadd.f32 %v5915_v17, %v5914_v5 }
 0x25e   : > { %7842 = vst [vmem:[#allocation14_spill] sm:$0xff] %v7517_v9  ;;  %v4110_v53 = vadd.f32 %v5852_v61, %v7471_v11  ;;  %v5917_v4 = vpop.f32.mrf.mxu1 }
 0x25f   : > { %v5854_v19 = vpop.f32.mrf.mxu0 }
 0x260   : > { %v7520_v42 = vadd.f32 %v5916_v10, %v4110_v53  ;;  %v5855_v36 = vadd.f32 %v5854_v19, %v5853_v13  ;;  %v5918_v52 = vpop.f32.mrf.mxu1 }
 0x261   : > { %v5856_v38 = vpop.f32.mrf.mxu0  ;;  %v5919_v31 = vadd.f32 %v5918_v52, %v5917_v4 }
 0x262   : > { %7843 = vst [vmem:[#allocation15_spill] sm:$0xff] %v7520_v42  ;;  %v4113_v45 = vadd.f32 %v5855_v36, %v7474_v20  ;;  %v5920_v39 = vpop.f32.mrf.mxu1 }
 0x263   : > { %v5857_v21 = vpop.f32.mrf.mxu0 }
 0x264   : > { %v7523_v28 = vadd.f32 %v5919_v31, %v4113_v45  ;;  %v5858_v62 = vadd.f32 %v5857_v21, %v5856_v38  ;;  %v5921_v40 = vpop.f32.mrf.mxu1 }
 0x265   : > { %v5859_v35 = vpop.f32.mrf.mxu0  ;;  %v5922_v51 = vadd.f32 %v5921_v40, %v5920_v39 }
 0x266   : > { %7844 = vst [vmem:[#allocation16_spill] sm:$0xff] %v7523_v28  ;;  %v4118_v11 = vadd.f32 %v5858_v62, %v7478_v6  ;;  %v5923_v50 = vpop.f32.mrf.mxu1 }
 0x267   : > { %v5860_v30 = vpop.f32.mrf.mxu0 }
 0x268   : > { %v7526_v37 = vadd.f32 %v5922_v51, %v4118_v11  ;;  %v5861_v15 = vadd.f32 %v5860_v30, %v5859_v35  ;;  %v5924_v14 = vpop.f32.mrf.mxu1 }
 0x269   : > { %v5862_v43 = vpop.f32.mrf.mxu0  ;;  %v5925_v44 = vadd.f32 %v5924_v14, %v5923_v50 }
 0x26a   : > { %7845 = vst [vmem:[#allocation17_spill] sm:$0xff] %v7526_v37  ;;  %v4121_v20 = vadd.f32 %v5861_v15, %v7481_v16  ;;  %v5926_v46 = vpop.f32.mrf.mxu1 }
 0x26b   : > { %v5863_v1 = vpop.f32.mrf.mxu0 }
 0x26c   : > { %v7529_v48 = vadd.f32 %v5925_v44, %v4121_v20  ;;  %v5864_v58 = vadd.f32 %v5863_v1, %v5862_v43  ;;  %v5927_v47 = vpop.f32.mrf.mxu1 }
 0x26d   : > { %v5865_v54 = vpop.f32.mrf.mxu0  ;;  %v5928_v55 = vadd.f32 %v5927_v47, %v5926_v46 }
 0x26e   : > { %7846 = vst [vmem:[#allocation18_spill] sm:$0xff] %v7529_v48  ;;  %v4126_v6 = vadd.f32 %v5864_v58, %v7484_v33  ;;  %v5929_v56 = vpop.f32.mrf.mxu1 }
 0x26f   : > { %v5866_v3 = vpop.f32.mrf.mxu0 }
 0x270   : > { %v7532_v23 = vadd.f32 %v5928_v55, %v4126_v6  ;;  %v5867_v57 = vadd.f32 %v5866_v3, %v5865_v54  ;;  %v5930_v29 = vpop.f32.mrf.mxu1 }
 0x271   : > { %v5931_v63 = vadd.f32 %v5930_v29, %v5929_v56  ;;  %v5948_v0 = vpop.f32.mrf.mxu0 }
 0x272   : > { %7847 = vst [vmem:[#allocation19_spill] sm:$0xff] %v7532_v23  ;;  %v4129_v16 = vadd.f32 %v5867_v57, %v7487_v41  ;;  %v7535_v2 = vpop.f32.mrf.mxu1 }
 0x273   : > { %v5949_v26 = vpop.f32.mrf.mxu0 }
 0x274   : > { %v7537_v60 = vadd.f32 %v5931_v63, %v4129_v16  ;;  %v6013_v8 = vpop.f32.mrf.mxu1 }
 0x275   : > { %v5951_v24 = vpop.f32.mrf.mxu0 }
 0x276   : > { %7848 = vst [vmem:[#allocation20_spill] sm:$0xff] %v7537_v60  ;;  %v7539_v5 = vpop.f32.mrf.mxu1 }
 0x277   : > { %v5952_v33 = vpop.f32.mrf.mxu0 }
 0x278   : > { %v7541_v7 = vpop.f32.mrf.mxu1 }
 0x279   : > { %v5954_v61 = vpop.f32.mrf.mxu0 }
 0x27a   : > { %v7543_v17 = vpop.f32.mrf.mxu1 }
 0x27b   : > { %v5955_v13 = vpop.f32.mrf.mxu0 }
 0x27c   : > { %v7545_v10 = vpop.f32.mrf.mxu1 }
 0x27d   : > { %v7547_v53 = vpop.f32.mrf.mxu0 }
 0x27e   : > { %v7549_v41 = vpop.f32.mrf.mxu1 }
 0x27f   : > { %v7551_v4 = vpop.f32.mrf.mxu0 }
 0x280   : > { %v7553_v19 = vpop.f32.mrf.mxu1 }
 0x281   : > { %v7555_v36 = vpop.f32.mrf.mxu0 }
 0x282   : > { %v7557_v52 = vpop.f32.mrf.mxu1 }
 0x283   : > { %v7559_v38 = vpop.f32.mrf.mxu0 }
 0x284   : > { %v7561_v31 = vpop.f32.mrf.mxu1 }
 0x285   : > { %v7563_v45 = vpop.f32.mrf.mxu0 }
 0x286   : > { %v7565_v39 = vpop.f32.mrf.mxu1 }
 0x287   : > { %v7567_v21 = vpop.f32.mrf.mxu0 }
 0x288   : > { %v7569_v62 = vpop.f32.mrf.mxu1 }
 0x289   : > { %v7571_v40 = vpop.f32.mrf.mxu0 }
 0x28a   : > { %v7573_v35 = vpop.f32.mrf.mxu1 }
 0x28b   : > { %v7575_v51 = vpop.f32.mrf.mxu0 }
 0x28c   : > { %v7577_v11 = vpop.f32.mrf.mxu1 }
 0x28d   : > { %v7579_v50 = vpop.f32.mrf.mxu0 }
 0x28e   : > { %v7581_v30 = vpop.f32.mrf.mxu1 }
 0x28f   : > { %v7583_v15 = vpop.f32.mrf.mxu0 }
 0x290   : > { %v7585_v14 = vpop.f32.mrf.mxu1 }
 0x291   : > { %v7587_v43 = vpop.f32.mrf.mxu0 }
 0x292   : > { %v7589_v44 = vpop.f32.mrf.mxu1 }
 0x293   : > { %v7591_v20 = vpop.f32.mrf.mxu0 }
 0x294   : > { %v7593_v46 = vpop.f32.mrf.mxu1 }
 0x295   : > { %v7595_v1 = vpop.f32.mrf.mxu0 }
 0x296   : > { %v7597_v58 = vpop.f32.mrf.mxu1 }
 0x297   : > { %v7599_v47 = vpop.f32.mrf.mxu0 }
 0x298   : > { %v7601_v54 = vpop.f32.mrf.mxu1 }
 0x299   : > { %v7603_v55 = vpop.f32.mrf.mxu0 }
 0x29a   : > { %v7605_v6 = vpop.f32.mrf.mxu1 }
 0x29b   : > { %7849 = vst [vmem:[#allocation21_spill] sm:$0xff] %v7605_v6  ;;  %v7607_v56 = vpop.f32.mrf.mxu0 }
 0x29c   : > { %v7609_v3 = vpop.f32.mrf.mxu1 }
 0x29d   : > { %7850 = vst [vmem:[#allocation22_spill] sm:$0xff] %v7609_v3  ;;  %v7611_v57 = vpop.f32.mrf.mxu0 }
 0x29e   : > { %7851 = vst [vmem:[#allocation23_spill] sm:$0xff] %v7611_v57  ;;  %v7613_v29 = vpop.f32.mrf.mxu1 }
 0x29f   : > { %7852 = vst [vmem:[#allocation24_spill] sm:$0xff] %v7613_v29  ;;  %v7615_v63 = vpop.f32.mrf.mxu0 }
 0x2a0   : > { %7853 = vst [vmem:[#allocation25_spill] sm:$0xff] %v7615_v63  ;;  %v7617_v16 = vpop.f32.mrf.mxu1 }
 0x2a1   : > { %7854 = vst [vmem:[#allocation26_spill] sm:$0xff] %v7617_v16  ;;  %v7619_v60 = vpop.f32.mrf.mxu0 }
 0x2a2   : > { %7855 = vst [vmem:[#allocation27_spill] sm:$0xff] %v7619_v60  ;;  %v7621_v23 = vpop.f32.mrf.mxu1  ;;  %v5950_v60 = vadd.f32 %v5949_v26, %v5948_v0 }
 0x2a3   : > { %7856 = vst [vmem:[#allocation28_spill] sm:$0xff] %v7621_v23  ;;  %v7623_v48 = vpop.f32.mrf.mxu0 }
 0x2a4   : > { %7857 = vst [vmem:[#allocation29_spill] sm:$0xff] %v7623_v48  ;;  %v7625_v37 = vpop.f32.mrf.mxu1 }
 0x2a5   : > { %7858 = vst [vmem:[#allocation30_spill] sm:$0xff] %v7625_v37  ;;  %v7627_v28 = vpop.f32.mrf.mxu0 }
 0x2a6   : > { %7859 = vst [vmem:[#allocation31_spill] sm:$0xff] %v7627_v28  ;;  %v7629_v6 = vpop.f32.mrf.mxu1 }
 0x2a7   : > { %7860 = vst [vmem:[#allocation32_spill] sm:$0xff] %v7629_v6  ;;  %v7631_v3 = vpop.f32.mrf.mxu0  ;;  %v4264_v6 = vadd.f32 %v5950_v60, %v7490_v32 }
 0x2a8   : > { %7861 = vst [vmem:[#allocation33_spill] sm:$0xff] %v7631_v3  ;;  %v7633_v57 = vpop.f32.mrf.mxu1  ;;  %v5953_v3 = vadd.f32 %v5952_v33, %v5951_v24 }
 0x2a9   : > { %7862 = vst [vmem:[#allocation34_spill] sm:$0xff] %v7633_v57  ;;  %v7635_v29 = vpop.f32.mrf.mxu0  ;;  %v6014_v57 = vadd.f32 %v6013_v8, %v7535_v2  ;;  %v6020_v8 = vadd.f32 %v7545_v10, %v7543_v17 }
 0x2aa   : > { %7863 = vst [vmem:[#allocation35_spill] sm:$0xff] %v7635_v29  ;;  %v7637_v63 = vpop.f32.mrf.mxu1 }
 0x2ab   : > { %7864 = vst [vmem:[#allocation36_spill] sm:$0xff] %v7637_v63  ;;  %v7639_v16 = vpop.f32.mrf.mxu0  ;;  %v4361_v26 = vadd.f32 %v6014_v57, %v4264_v6 }
 0x2ac   : > { %7865 = vst [vmem:[#allocation37_spill] sm:$0xff] %v7639_v16  ;;  %v7641_v23 = vpop.f32.mrf.mxu1  ;;  %v5956_v16 = vadd.f32 %v5955_v13, %v5954_v61  ;;  %v5959_v61 = vadd.f32 %v7551_v4, %v7547_v53 }
 0x2ad   : > { %7866 = vst [vmem:[#allocation38_spill] sm:$0xff] %v7641_v23  ;;  %v7643_v48 = vpop.f32.mrf.mxu0  ;;  %v4267_v23 = vadd.f32 %v5953_v3, %v7493_v12 }
 0x2ae   : > { %7867 = vst [vmem:[#allocation39_spill] sm:$0xff] %v7643_v48  ;;  %v7645_v37 = vpop.f32.mrf.mxu1  ;;  %v6017_v48 = vadd.f32 %v7541_v7, %v7539_v5  ;;  %v4272_v2 = vadd.f32 %v5956_v16, %v7496_v59  ;;  %v5962_v59 = vadd.f32 %v7559_v38, %v7555_v36  ;;  %v6026_v36 = vadd.f32 %v7561_v31, %v7557_v52 }
 0x2af   : > { %7868 = vst [vmem:[#allocation40_spill] sm:$0xff] %v7645_v37  ;;  %v7647_v28 = vpop.f32.mrf.mxu0  ;;  %v6029_v52 = vadd.f32 %v7569_v62, %v7565_v39  ;;  %v5971_v39 = vadd.f32 %v7583_v15, %v7579_v50 }
 0x2b0   : > { %7869 = vst [vmem:[#allocation41_spill] sm:$0xff] %v7647_v28  ;;  %v7651_v29 = vpop.f32.mrf.mxu1  ;;  %v4364_v33 = vadd.f32 %v6017_v48, %v4267_v23  ;;  %v4369_v7 = vadd.f32 %v6020_v8, %v4272_v2  ;;  %v4275_v48 = vadd.f32 %v5959_v61, %v7499_v49  ;;  %v6023_v23 = vadd.f32 %v7553_v19, %v7549_v41 }
 0x2b1   : > { %v6076_v63 = vpop.f32.mrf.mxu0  ;;  %v4280_v16 = vadd.f32 %v5962_v59, %v7502_v25  ;;  %v5965_v49 = vadd.f32 %v7567_v21, %v7563_v45  ;;  %v5968_v45 = vadd.f32 %v7575_v51, %v7571_v40 }
 0x2b2   : > { %v6158_v42 = vpop.f32.mrf.mxu1  ;;  %v4372_v19 = vadd.f32 %v6023_v23, %v4275_v48 }
 0x2b3   : > { %v6077_v0 = vpop.f32.mrf.mxu0  ;;  %v4377_v61 = vadd.f32 %v6026_v36, %v4280_v16  ;;  %v4283_v25 = vadd.f32 %v5965_v49, %v7505_v22  ;;  %v6032_v22 = vadd.f32 %v7577_v11, %v7573_v35  ;;  %v4288_v40 = vadd.f32 %v5968_v45, %v7508_v34 }
 0x2b4   : > { %v6078_v37 = vadd.f32 %v6077_v0, %v6076_v63  ;;  %v4554_v28 = vpop.f32.mrf.mxu1  ;;  %v6035_v35 = vadd.f32 %v7585_v14, %v7581_v30  ;;  %v5974_v11 = vadd.f32 %v7591_v20, %v7587_v43  ;;  %v6038_v30 = vadd.f32 %v7593_v46, %v7589_v44 }
 0x2b5   : > { %v6079_v9 = vpop.f32.mrf.mxu0  ;;  %v4380_v59 = vadd.f32 %v6029_v52, %v4283_v25  ;;  %v4385_v34 = vadd.f32 %v6032_v22, %v4288_v40  ;;  %v5977_v43 = vadd.f32 %v7599_v47, %v7595_v1  ;;  %v5980_v44 = vadd.f32 %v7607_v56, %v7603_v55  ;;  %v7870_v1 = vld [vmem:[#allocation14_spill] sm:$0xff]  ;;  %v7875_v55 = vld [vmem:[#allocation25_spill] sm:$0xff] }
 0x2b6   : > { %v4458_v32 = vadd.f32 %v6078_v37, %v4361_v26  ;;  %v6159_v60 = vpop.f32.mrf.mxu1 }
 0x2b7   : > { %v6080_v24 = vpop.f32.mrf.mxu0  ;;  %v4299_v47 = vadd.f32 %v5977_v43, %v7870_v1  ;;  %v7883_v43 = vld [vmem:[#allocation31_spill] sm:$0xff] }
 0x2b8   : > { %v6081_v12 = vadd.f32 %v6080_v24, %v6079_v9  ;;  %v4555_v13 = vadd.f32 %v4554_v28, %v4458_v32  ;;  %v4557_v5 = vpop.f32.mrf.mxu1 }
 0x2b9   : > { %v6082_v6 = vpop.f32.mrf.mxu0 }
 0x2ba   : > { %4617 = vst [vmem:[%s7662_s20] sm:$0xff] %v4555_v13  ;;  %v4461_v37 = vadd.f32 %v6081_v12, %v4364_v33  ;;  %v7670_v53 = vpop.f32.mrf.mxu1  ;;  %v4654_v4 = vmul.f32 %v4555_v13, %v4555_v13 }
 0x2bb   : > { %v6083_v17 = vpop.f32.mrf.mxu0 }
 0x2bc   : > { %v6084_v9 = vadd.f32 %v6083_v17, %v6082_v6  ;;  %v4558_v28 = vadd.f32 %v4557_v5, %v4461_v37  ;;  %v4570_v2 = vpop.f32.mrf.mxu1 }
 0x2bd   : > { %v6085_v10 = vpop.f32.mrf.mxu0 }
 0x2be   : > { %v4466_v3 = vadd.f32 %v6084_v9, %v4369_v7  ;;  %4618 = vst [vmem:[%s7662_s20 + $0x8] sm:$0xff] %v4558_v28  ;;  %v4633_v57 = vadd.f32 %v4558_v28, %v4555_v13  ;;  %v4655_v63 = vmul.f32 %v4558_v28, %v4558_v28  ;;  %v6163_v6 = vpop.f32.mrf.mxu1 }
 0x2bf   : > { %v6086_v41 = vpop.f32.mrf.mxu0 }
 0x2c0   : > { %v4563_v38 = vadd.f32 %v6158_v42, %v4466_v3  ;;  %v4670_v0 = vadd.f32 %v4655_v63, %v4654_v4  ;;  %v6087_v26 = vadd.f32 %v6086_v41, %v6085_v10  ;;  %v4573_v23 = vpop.f32.mrf.mxu1  ;;  %v4291_v4 = vadd.f32 %v5971_v39, %v7511_v27 }
 0x2c1   : > { %v6088_v32 = vpop.f32.mrf.mxu0 }
 0x2c2   : > { %4619 = vst [vmem:[%s7662_s20 + $0x10] sm:$0xff] %v4563_v38  ;;  %v4656_v8 = vmul.f32 %v4563_v38, %v4563_v38  ;;  %v4634_v24 = vadd.f32 %v4633_v57, %v4563_v38  ;;  %v4469_v33 = vadd.f32 %v6087_v26, %v4372_v19  ;;  %v7696_v16 = vpop.f32.mrf.mxu1  ;;  %v4388_v27 = vadd.f32 %v6035_v35, %v4291_v4 }
 0x2c3   : > { %v6089_v31 = vpop.f32.mrf.mxu0  ;;  %v4296_v19 = vadd.f32 %v5974_v11, %v7514_v18  ;;  %v6041_v18 = vadd.f32 %v7601_v54, %v7597_v58  ;;  %v7873_v58 = vld [vmem:[#allocation22_spill] sm:$0xff]  ;;  %v7879_v11 = vld [vmem:[#allocation27_spill] sm:$0xff] }
 0x2c4   : > { %v4671_v42 = vadd.f32 %v4670_v0, %v4656_v8  ;;  %v4566_v21 = vadd.f32 %v6159_v60, %v4469_v33  ;;  %v6090_v12 = vadd.f32 %v6089_v31, %v6088_v32  ;;  %v4586_v32 = vpop.f32.mrf.mxu1 }
 0x2c5   : > { %v6091_v13 = vpop.f32.mrf.mxu0  ;;  %v4393_v33 = vadd.f32 %v6038_v30, %v4296_v19  ;;  %v7881_v19 = vld [vmem:[#allocation28_spill] sm:$0xff]  ;;  %v7882_v30 = vld [vmem:[#allocation30_spill] sm:$0xff] }
 0x2c6   : > { %4620 = vst [vmem:[%s7662_s20 + $0x18] sm:$0xff] %v4566_v21  ;;  %v4657_v5 = vmul.f32 %v4566_v21, %v4566_v21  ;;  %v4474_v37 = vadd.f32 %v6090_v12, %v4377_v61  ;;  %v4635_v7 = vadd.f32 %v4634_v24, %v4566_v21  ;;  %v6167_v31 = vpop.f32.mrf.mxu1  ;;  %v7871_v12 = vld [vmem:[#allocation15_spill] sm:$0xff] }
 0x2c7   : > { %v6092_v62 = vpop.f32.mrf.mxu0 }
 0x2c8   : > { %v6093_v51 = vadd.f32 %v6092_v62, %v6091_v13  ;;  %v4571_v60 = vadd.f32 %v4570_v2, %v4474_v37  ;;  %v4672_v17 = vadd.f32 %v4671_v42, %v4657_v5  ;;  %v4304_v13 = vadd.f32 %v5980_v44, %v7871_v12  ;;  %v7872_v5 = vld [vmem:[#allocation21_spill] sm:$0xff]  ;;  %v7874_v37 = vld [vmem:[#allocation23_spill] sm:$0xff]  ;;  %v4589_v40 = vpop.f32.mrf.mxu1 }
 0x2c9   : > { %v6094_v48 = vpop.f32.mrf.mxu0  ;;  %v6044_v54 = vadd.f32 %v7873_v58, %v7872_v5  ;;  %v5983_v56 = vadd.f32 %v7875_v55, %v7874_v37 }
 0x2ca   : > { %4621 = vst [vmem:[%s7662_s20 + $0x20] sm:$0xff] %v4571_v60  ;;  %v4636_v9 = vadd.f32 %v4635_v7, %v4571_v60  ;;  %v4658_v28 = vmul.f32 %v4571_v60, %v4571_v60  ;;  %v4477_v10 = vadd.f32 %v6093_v51, %v4380_v59  ;;  %v4396_v59 = vadd.f32 %v6041_v18, %v4299_v47  ;;  %v7886_v47 = vld [vmem:[#allocation18_spill] sm:$0xff] }
 0x2cb   : > { %v6095_v50 = vpop.f32.mrf.mxu0 }
 0x2cc   : > { %v4673_v15 = vadd.f32 %v4672_v17, %v4658_v28  ;;  %v6096_v3 = vadd.f32 %v6095_v50, %v6094_v48  ;;  %v4574_v57 = vadd.f32 %v4573_v23, %v4477_v10  ;;  %v4401_v48 = vadd.f32 %v6044_v54, %v4304_v13  ;;  %v7876_v23 = vld [vmem:[#allocation16_spill] sm:$0xff]  ;;  %v7878_v10 = vld [vmem:[#allocation26_spill] sm:$0xff]  ;;  %v7880_v50 = vld [vmem:[#allocation29_spill] sm:$0xff] }
 0x2cd   : > { %v6097_v63 = vpop.f32.mrf.mxu0  ;;  %v7877_v28 = vld [vmem:[#allocation24_spill] sm:$0xff] }
 0x2ce   : > { %v4482_v36 = vadd.f32 %v6096_v3, %v4385_v34  ;;  %4622 = vst [vmem:[%s7662_s20 + $0x28] sm:$0xff] %v4574_v57  ;;  %v4637_v49 = vadd.f32 %v4636_v9, %v4574_v57  ;;  %v4659_v41 = vmul.f32 %v4574_v57, %v4574_v57  ;;  %v4307_v9 = vadd.f32 %v5983_v56, %v7876_v23 }
 0x2cf   : > { %v6098_v14 = vpop.f32.mrf.mxu0  ;;  %v6047_v4 = vadd.f32 %v7878_v10, %v7877_v28  ;;  %v5986_v34 = vadd.f32 %v7880_v50, %v7879_v11 }
 0x2d0   : > { %v4579_v20 = vadd.f32 %v7670_v53, %v4482_v36  ;;  %v4674_v38 = vadd.f32 %v4673_v15, %v4659_v41  ;;  %v6099_v0 = vadd.f32 %v6098_v14, %v6097_v63  ;;  %v6050_v14 = vadd.f32 %v7882_v30, %v7881_v19 }
 0x2d1   : > { %v6100_v26 = vpop.f32.mrf.mxu0 }
 0x2d2   : > { %4623 = vst [vmem:[%s7662_s20 + $0x30] sm:$0xff] %v4579_v20  ;;  %v4660_v2 = vmul.f32 %v4579_v20, %v4579_v20  ;;  %v4638_v8 = vadd.f32 %v4637_v49, %v4579_v20  ;;  %v4485_v24 = vadd.f32 %v6099_v0, %v4388_v27  ;;  %v4404_v27 = vadd.f32 %v6047_v4, %v4307_v9  ;;  %v7884_v20 = vld [vmem:[#allocation33_spill] sm:$0xff] }
 0x2d3   : > { %v6101_v46 = vpop.f32.mrf.mxu0 }
 0x2d4   : > { %v4675_v53 = vadd.f32 %v4674_v38, %v4660_v2  ;;  %v4582_v61 = vadd.f32 %v6163_v6, %v4485_v24  ;;  %v6102_v25 = vadd.f32 %v6101_v46, %v6100_v26  ;;  %v5989_v38 = vadd.f32 %v7884_v20, %v7883_v43  ;;  %v6170_v26 = vpop.f32.mrf.mxu1 }
 0x2d5   : > { %v6103_v52 = vpop.f32.mrf.mxu0 }
 0x2d6   : > { %4624 = vst [vmem:[%s7662_s20 + $0x38] sm:$0xff] %v4582_v61  ;;  %v4661_v45 = vmul.f32 %v4582_v61, %v4582_v61  ;;  %v4490_v42 = vadd.f32 %v6102_v25, %v4393_v33  ;;  %v4639_v21 = vadd.f32 %v4638_v8, %v4582_v61  ;;  %v7887_v61 = vld [vmem:[#allocation32_spill] sm:$0xff]  ;;  %v7888_v25 = vld [vmem:[#allocation34_spill] sm:$0xff]  ;;  %v4602_v13 = vpop.f32.mrf.mxu1 }
 0x2d7   : > { %v6104_v7 = vpop.f32.mrf.mxu0 }
 0x2d8   : > { %v6105_v22 = vadd.f32 %v6104_v7, %v6103_v52  ;;  %v4587_v6 = vadd.f32 %v4586_v32, %v4490_v42  ;;  %v4676_v39 = vadd.f32 %v4675_v53, %v4661_v45  ;;  %v7885_v32 = vld [vmem:[#allocation17_spill] sm:$0xff]  ;;  %v4315_v53 = vadd.f32 %v5989_v38, %v7886_v47  ;;  %v7889_v45 = vld [vmem:[#allocation35_spill] sm:$0xff] }
 0x2d9   : > { %v6106_v62 = vpop.f32.mrf.mxu0  ;;  %v4312_v2 = vadd.f32 %v5986_v34, %v7885_v32  ;;  %v6053_v52 = vadd.f32 %v7888_v25, %v7887_v61  ;;  %v7890_v42 = vld [vmem:[#allocation37_spill] sm:$0xff]  ;;  %v7896_v34 = vld [vmem:[#allocation40_spill] sm:$0xff] }
 0x2da   : > { %4625 = vst [vmem:[%s7662_s20 + $0x40] sm:$0xff] %v4587_v6  ;;  %v4640_v51 = vadd.f32 %v4639_v21, %v4587_v6  ;;  %v4662_v60 = vmul.f32 %v4587_v6, %v4587_v6  ;;  %v4493_v17 = vadd.f32 %v6105_v22, %v4396_v59  ;;  %v5992_v21 = vadd.f32 %v7890_v42, %v7889_v45  ;;  %v7891_v22 = vld [vmem:[#allocation19_spill] sm:$0xff] }
 0x2db   : > { %v6107_v35 = vpop.f32.mrf.mxu0  ;;  %v4409_v5 = vadd.f32 %v6050_v14, %v4312_v2  ;;  %v4412_v59 = vadd.f32 %v6053_v52, %v4315_v53 }
 0x2dc   : > { %v4677_v15 = vadd.f32 %v4676_v39, %v4662_v60  ;;  %v6108_v3 = vadd.f32 %v6107_v35, %v6106_v62  ;;  %v4590_v57 = vadd.f32 %v4589_v40, %v4493_v17  ;;  %v4320_v6 = vadd.f32 %v5992_v21, %v7891_v22  ;;  %v7892_v39 = vld [vmem:[#allocation36_spill] sm:$0xff]  ;;  %v7893_v62 = vld [vmem:[#allocation38_spill] sm:$0xff]  ;;  %v6171_v60 = vpop.f32.mrf.mxu1  ;;  %v7894_v17 = vld [vmem:[#allocation39_spill] sm:$0xff] }
 0x2dd   : > { %v6109_v63 = vpop.f32.mrf.mxu0  ;;  %v6056_v40 = vadd.f32 %v7893_v62, %v7892_v39 }
 0x2de   : > { %v4498_v36 = vadd.f32 %v6108_v3, %v4401_v48  ;;  %4626 = vst [vmem:[%s7662_s20 + $0x48] sm:$0xff] %v4590_v57  ;;  %v4641_v49 = vadd.f32 %v4640_v51, %v4590_v57  ;;  %v4663_v41 = vmul.f32 %v4590_v57, %v4590_v57  ;;  %v7895_v48 = vld [vmem:[#allocation41_spill] sm:$0xff]  ;;  %v4605_v3 = vpop.f32.mrf.mxu1 }
 0x2df   : > { %v6110_v0 = vpop.f32.mrf.mxu0  ;;  %v5995_v23 = vadd.f32 %v7895_v48, %v7894_v17  ;;  %v4417_v50 = vadd.f32 %v6056_v40, %v4320_v6 }
 0x2e0   : > { %v4595_v8 = vadd.f32 %v7696_v16, %v4498_v36  ;;  %v4678_v24 = vadd.f32 %v4677_v15, %v4663_v41  ;;  %v6111_v33 = vadd.f32 %v6110_v0, %v6109_v63  ;;  %v6059_v15 = vadd.f32 %v7651_v29, %v7896_v34  ;;  %v7897_v63 = vld [vmem:[#allocation20_spill] sm:$0xff] }
 0x2e1   : > { %v6112_v18 = vpop.f32.mrf.mxu0  ;;  %v4323_v36 = vadd.f32 %v5995_v23, %v7897_v63 }
 0x2e2   : > { %4627 = vst [vmem:[%s7662_s20 + $0x50] sm:$0xff] %v4595_v8  ;;  %v4664_v44 = vmul.f32 %v4595_v8, %v4595_v8  ;;  %v4642_v46 = vadd.f32 %v4641_v49, %v4595_v8  ;;  %v4501_v1 = vadd.f32 %v6111_v33, %v4404_v27 }
 0x2e3   : > { %v6113_v12 = vpop.f32.mrf.mxu0  ;;  %v4420_v38 = vadd.f32 %v6059_v15, %v4323_v36 }
 0x2e4   : > { %v4679_v16 = vadd.f32 %v4678_v24, %v4664_v44  ;;  %v4598_v58 = vadd.f32 %v6167_v31, %v4501_v1  ;;  %v6114_v54 = vadd.f32 %v6113_v12, %v6112_v18 }
 0x2e5   : > { %v6115_v37 = vpop.f32.mrf.mxu0 }
 0x2e6   : > { %4628 = vst [vmem:[%s7662_s20 + $0x58] sm:$0xff] %v4598_v58  ;;  %v4665_v55 = vmul.f32 %v4598_v58, %v4598_v58  ;;  %v4506_v56 = vadd.f32 %v6114_v54, %v4409_v5  ;;  %v4643_v7 = vadd.f32 %v4642_v46, %v4598_v58 }
 0x2e7   : > { %v6116_v51 = vpop.f32.mrf.mxu0 }
 0x2e8   : > { %v4603_v9 = vadd.f32 %v4602_v13, %v4506_v56  ;;  %v4680_v31 = vadd.f32 %v4679_v16, %v4665_v55  ;;  %v6117_v28 = vadd.f32 %v6116_v51, %v6115_v37 }
 0x2e9   : > { %v6118_v10 = vpop.f32.mrf.mxu0 }
 0x2ea   : > { %4629 = vst [vmem:[%s7662_s20 + $0x60] sm:$0xff] %v4603_v9  ;;  %v4644_v4 = vadd.f32 %v4643_v7, %v4603_v9  ;;  %v4666_v35 = vmul.f32 %v4603_v9, %v4603_v9  ;;  %v4509_v11 = vadd.f32 %v6117_v28, %v4412_v59 }
 0x2eb   : > { %v6119_v57 = vpop.f32.mrf.mxu0 }
 0x2ec   : > { %v4681_v49 = vadd.f32 %v4680_v31, %v4666_v35  ;;  %v4606_v41 = vadd.f32 %v4605_v3, %v4509_v11  ;;  %v6120_v27 = vadd.f32 %v6119_v57, %v6118_v10 }
 0x2ed   : > { %v6121_v19 = vpop.f32.mrf.mxu0 }
 0x2ee   : > { %4630 = vst [vmem:[%s7662_s20 + $0x68] sm:$0xff] %v4606_v41  ;;  %v4645_v30 = vadd.f32 %v4644_v4, %v4606_v41  ;;  %v4667_v14 = vmul.f32 %v4606_v41, %v4606_v41  ;;  %v4514_v43 = vadd.f32 %v6120_v27, %v4417_v50 }
 0x2ef   : > { %v6122_v20 = vpop.f32.mrf.mxu0 }
 0x2f0   : > { %v4682_v0 = vadd.f32 %v4681_v49, %v4667_v14  ;;  %v4611_v29 = vadd.f32 %v6170_v26, %v4514_v43  ;;  %v6123_v32 = vadd.f32 %v6122_v20, %v6121_v19 }
 0x2f2   : > { %4631 = vst [vmem:[%s7662_s20 + $0x70] sm:$0xff] %v4611_v29  ;;  %v4646_v2 = vadd.f32 %v4645_v30, %v4611_v29  ;;  %v4668_v8 = vmul.f32 %v4611_v29, %v4611_v29  ;;  %v4517_v24 = vadd.f32 %v6123_v32, %v4420_v38 }
 0x2f4   : > { %v4683_v33 = vadd.f32 %v4682_v0, %v4668_v8  ;;  %v4614_v26 = vadd.f32 %v6171_v60, %v4517_v24 }
 0x2f6   : > { %4632 = vst [vmem:[%s7662_s20 + $0x78] sm:$0xff] %v4614_v26  ;;  %v4647_v18 = vadd.f32 %v4646_v2, %v4614_v26  ;;  %v4669_v44 = vmul.f32 %v4614_v26, %v4614_v26 }
 0x2f7   : > { %6846 = shalt.err (!%p6843_p0)
}
 0x2f8   : > { %s6847_s11 = scalar_lea.hbm %s7753_s30, 2048  ;;  %s6851_s28 = scalar_lea.hbm %s7825_s2, 4096 }
 0x2f9   : > { %p6848_p5 = scmp.ne.s32.totalorder %s7753_s30, %s6847_s11  ;;  %p6852_p4 = scmp.lt.s32.totalorder %s7753_s30, %s7825_s2 }
 0x2fa   : > { %p6853_p6 = scmp.lt.s32.totalorder %s6851_s28, %s6847_s11 }
 0x2fb   : > { %p6849_p9 = pnand %p6848_p5, %p7898_p11 }
 0x2fc   : > { %p6854_p8 = por %p6853_p6, %p6852_p4 }
 0x2fd   : > { %p6850_p1 = pneg %p6849_p9 }
 0x2ff   : > { %p6855_p3 = pnand %p6854_p8, %p6850_p1 }
 0x301   : > { %6858 = shalt.err (!%p6855_p3)
}
 0x302   : > { %s6940_s20 = smov 128   ;;  %s6941_s17 = smov 8   ;;  %v4648_v46 = vrot.slane %v4647_v18, 4  ;;  %v4684_v1 = vadd.f32 %v4683_v33, %v4669_v44  ;;  %vm4691_vm0 = vcmask 1040384  }
 0x303   : > { %6181 = dma.vmem_to_hbm [thread:$0]  (%p7898_p11), %s7755_s21, 2048, %s7753_s30, %s4695_s4, %s6940_s20, %s6940_s20, %s6941_s17  }
 0x304   : > { %v4649_v47 = vadd.f32 %v4648_v46, %v4647_v18  ;;  %v4685_v53 = vrot.slane %v4684_v1, 4  ;;  %s4851_s23 = sshll.u32 %s7079_s26, 1  ;;  %s5288_s25 = sshll.u32 %s6984_s16, 5 }
 0x305   : > { %s215_s7 = scalar_lea.vmem [#allocation8], %s4851_s23  ;;  %s7786_s4 = scalar_lea.hbm %s7826_s3, %s5288_s25 }
 0x306   : > { %v4650_v61 = vrot.slane %v4649_v47, 2  ;;  %v4686_v25 = vadd.f32 %v4685_v53, %v4684_v1  ;;  %s4729_s8 = sshll.u32 %s215_s7, 4  ;;  %s4700_s9 = scalar_lea.sflag [#allocation9], %s7079_s26  ;;  %s4730_s8 = int_to_ptr.vmem [resolvable:$true] %s4729_s8 }
 0x307   : > { %s6859_s10 = scalar_lea.vmem %s4730_s8, 32  ;;  %s6942_s16 = smov [#allocation8]  }
 0x308   : > { %v4651_v52 = vadd.f32 %v4650_v61, %v4649_v47  ;;  %v4687_v45 = vrot.slane %v4686_v25, 2  ;;  %p6860_p7 = scmp.ne.s32.totalorder %s4730_s8, %s6859_s10  ;;  %s6863_s11 = sshll.u32 %s6942_s16, 4  ;;  %s6864_s11 = int_to_ptr.vmem [resolvable:$false] %s6863_s11 }
 0x309   : > { %s6865_s22 = scalar_lea.vmem %s6864_s11, 64  ;;  %p6866_p2 = scmp.lt.s32.totalorder %s4730_s8, %s6864_s11 }
 0x30a   : > { %v4652_v42 = vrot.slane %v4651_v52, 1  ;;  %v4688_v21 = vadd.f32 %v4687_v45, %v4686_v25  ;;  %p6861_p12 = pnand %p6860_p7, %p7898_p11  ;;  %p6867_p13 = scmp.lt.s32.totalorder %s6865_s22, %s6859_s10 }
 0x30c   : > { %v4689_v12 = vrot.slane %v4688_v21, 1  ;;  %v4653_v13 = vadd.f32 %v4652_v42, %v4651_v52  ;;  %p6862_p10 = pneg %p6861_p12  ;;  %p6868_p0 = por %p6867_p13, %p6866_p2 }
 0x30e   : > { %v4690_v5 = vadd.f32 %v4689_v12, %v4688_v21  ;;  %p6869_p5 = pnand %p6868_p0, %p6862_p10 }
 0x310   : > { %v4692_v16 = vsel %vm4691_vm0, %v4653_v13, %v4690_v5 }
 0x311   : > { %4693 = vst [vmem:[%s215_s7] sm:$0x3] %v4692_v16 }
 0x312   : > { %6872 = shalt.err (!%p6869_p5)
}
 0x313   : > { %s6873_s27 = scalar_lea.hbm %s7786_s4, 32  ;;  %s6877_s29 = scalar_lea.hbm %s7826_s3, 64 }
 0x314   : > { %p6874_p9 = scmp.ne.s32.totalorder %s7786_s4, %s6873_s27  ;;  %p6878_p6 = scmp.lt.s32.totalorder %s7786_s4, %s7826_s3 }
 0x315   : > { %p6879_p8 = scmp.lt.s32.totalorder %s6877_s29, %s6873_s27 }
 0x316   : > { %p6875_p1 = pnand %p6874_p9, %p7898_p11 }
 0x317   : > { %p6880_p3 = por %p6879_p8, %p6878_p6 }
 0x318   : > { %p6876_p4 = pneg %p6875_p1 }
 0x31a   : > { %p6881_p7 = pnand %p6880_p3, %p6876_p4 }
 0x31c   : > { %6884 = shalt.err (!%p6881_p7)
}
 0x31d   : > { %6182 = dma.vmem_to_hbm [thread:$0]  (%p7898_p11), %s4730_s8, 32, %s7786_s4, %s4700_s9  }
 0x31e PF: > { %s4741_s17 = sand.u32 1, %s6919_s12   ;;  %p7899_p12 = scmp.ne.s32.totalorder %s7832_s19, 0 }
 0x31f   : > { %p7900_p10 = scmp.ge.s32.totalorder %s6931_s15, 2  ;;  %s4742_s23 = scalar_lea.sflag [#allocation4], %s4741_s17 }
 0x321   : > { %p6194_p2 = pnand %p7900_p10, %p7899_p12 }
 0x323   : > { %p6195_p13 = pneg %p6194_p2 }
 0x325   : > { %6910 = dma.done.wait (%p6195_p13), %s4742_s23, 2048  }
 0x326   : > { %6912 = vsyncadd (%p6195_p13), %s4742_s23, 4294965248  ;;  %s4751_s25 = scalar_lea.sflag [#allocation9], %s4741_s17 }
 0x327   : > { %6914 = dma.done.wait (%p6195_p13), %s4751_s25, 32  }
 0x328   : > { %6916 = vsyncadd (%p6195_p13), %s4751_s25, 4294967264  ;;  %p21_p11 = scmp.ge.s32.totalorder %s7017_s24, 4   ;;  %s7901_s12 = smov %s6923_s13 }
 0x329   : > { %s7902_s13 = smov %s6927_s14  ;;  %s7903_s14 = smov %s7034_s5 }
 0x32a   : > { %s7904_s15 = smov %s7017_s24  ;;  %23 = sbr.rel (!%p21_p11) target bundleno = 8 (0x8), region = 94 }
 0x32f   :  { %4756 = vsyncpa [#allocation3], 1 }
 0x330   :  { %4758 = vsyncpa [#allocation3 + $0x1], 1 }
 0x331   :  { %4759 = vsyncpa [#allocation6], 1 }
 0x332   :  { %4760 = vsyncpa [#allocation4], 1 }
 0x333   :  { %4762 = vsyncpa [#allocation4 + $0x1], 1 }
 0x334   :  { %4763 = vsyncpa [#allocation9], 1 }
 0x335   :  { %4765 = vsyncpa [#allocation9 + $0x1], 1 }

</bundles_post_ra>
